<compile_context>
chip_gen: v7x
topology: tpu7x:2x2x1
jax: 0.10.0
libtpu: 0.0.40
codegen_flags: <defaults>
</compile_context>

<pallas_src>
import numpy as np
import jax
import jax.numpy as jnp
from jax import lax
from jax.experimental import pallas as pl
from jax.experimental.pallas import tpu as pltpu


def _round_up(n, m):
    return (n + m - 1) // m * m


# ----------------------------- kernel -----------------------------------------
def _erf_f32(x):
    # Abramowitz & Stegun 7.1.26 (|err| <= 1.5e-7).  exp() issues to the EUP;
    # used instead of lax.erf to guarantee a Mosaic lowering.
    a1, a2, a3, a4, a5 = (0.254829592, -0.284496736, 1.421413741,
                          -1.453152027, 1.061405429)
    pp = 0.3275911
    ax = jnp.abs(x)
    t = 1.0 / (1.0 + pp * ax)
    poly = ((((a5 * t + a4) * t + a3) * t + a2) * t + a1) * t
    y = 1.0 - poly * jnp.exp(-ax * ax)
    return jnp.where(x >= 0, y, -y)


def _make_local_block_kernel(approximate_gelu=False):
    def kernel(top_ref, body_ref, bot_ref, w3_ref, c_ref,
               w1_ref, b3_ref, w2_ref, b4_ref, ls_ref, o_ref):
        # top_ref  : (1, 1,  W, Cp) row above the band (zeroed at image top)
        # body_ref : (1, TH, W, Cp) the row band
        # bot_ref  : (1, 1,  W, Cp) row below the band (zeroed at image bottom)
        # w3_ref   : (9, Cp)   folded depthwise 3x3 taps (identity+dw1x1 in tap 4)
        # c_ref    : (1, Cp)   folded per-channel bias
        # w1_ref   : (Cp, Hd)  folded pointwise conv1 (+BN3 scale), bf16
        # b3_ref   : (1, Hd)
        # w2_ref   : (Hd, Cp)  folded pointwise conv2 (+BN4 scale), bf16
        # b4_ref   : (1, Cp)
        # ls_ref   : (1, Cp)   layer_scale
        # o_ref    : (1, TH, W, Cp)
        f32 = jnp.float32
        TH, W, Cp = o_ref.shape[1], o_ref.shape[2], o_ref.shape[3]
        N = TH * W

        i = pl.program_id(1)
        nh = pl.num_programs(1)

        # --- 3-D band with 1-row H halo (halo rows zeroed at image edges).
        body = body_ref[0].astype(f32)                           # (TH, W, Cp)
        top = top_ref[0].astype(f32) * (i > 0).astype(f32)       # (1,  W, Cp)
        bot = bot_ref[0].astype(f32) * (i < nh - 1).astype(f32)  # (1,  W, Cp)
        xb = jnp.concatenate([top, body, bot], axis=0)           # (TH+2, W, Cp)

        # --- W-direction halo: two zero-padded shifted copies, built once.
        zcol = jnp.zeros((TH + 2, 1, Cp), f32)
        xl = jnp.concatenate([zcol, xb[:, :W - 1, :]], axis=1)   # x[., w-1, .]
        xr = jnp.concatenate([xb[:, 1:, :], zcol], axis=1)       # x[., w+1, .]

        # --- RepDW: 9-tap depthwise 3x3 (BNs, identity and dw1x1 folded).
        #     dy taps slice along the leading (non-tiled) axis -> no repack.
        w3 = w3_ref[...].astype(f32)                             # (9, Cp)
        acc = None
        for dy in range(3):
            for src, dx in ((xl, 0), (xb, 1), (xr, 2)):
                t = src[dy:dy + TH] * w3[3 * dy + dx].reshape(1, 1, Cp)
                acc = t if acc is None else acc + t
        z = acc + c_ref[...].reshape(1, 1, Cp)                   # (TH, W, Cp)

        # --- FFN: flatten once, 1x1 conv -> GELU -> 1x1 conv.
        #     bf16 MXU operands, f32 accumulation; elementwise stays f32.
        z2 = z.reshape(N, Cp)
        u = jnp.dot(z2.astype(jnp.bfloat16), w1_ref[...],
                    preferred_element_type=jnp.float32) + b3_ref[...]
        if approximate_gelu:
            # tanh form (EUP) — optional for VALU-bound v5e, needs sign-off.
            u = 0.5 * u * (1.0 + jnp.tanh(0.7978845608028654
                                          * (u + 0.044715 * u * u * u)))
        else:
            # exact GELU (erf), matches PyTorch nn.GELU()
            u = 0.5 * u * (1.0 + _erf_f32(u * 0.7071067811865476))
        v = jnp.dot(u.astype(jnp.bfloat16), w2_ref[...],
                    preferred_element_type=jnp.float32) + b4_ref[...]

        # --- residual + layer_scale
        out = body + ls_ref[...].reshape(1, 1, Cp) * v.reshape(TH, W, Cp)
        o_ref[0] = out.astype(o_ref.dtype)

    return kernel


# ----------------------------- parameter folding -------------------------------
def fold_local_block_params(p, eps=1e-5):
    """Fold all BNs + identity + dw1x1 into a compact, lane-padded weight set.
    Call once per block and reuse across forward passes."""
    C = p["dw3_w"].shape[0]
    hidden = p["pw1_w"].shape[0]
    f32 = jnp.float32

    def bn_affine(g, b, m, v):
        s = g / jnp.sqrt(v + eps)
        return s, b - m * s

    s1, o1 = bn_affine(p["bn1_g"], p["bn1_b"], p["bn1_m"], p["bn1_v"])
    s2, o2 = bn_affine(p["bn2_g"], p["bn2_b"], p["bn2_m"], p["bn2_v"])
    s3, o3 = bn_affine(p["bn3_g"], p["bn3_b"], p["bn3_m"], p["bn3_v"])
    s4, o4 = bn_affine(p["bn4_g"], p["bn4_b"], p["bn4_m"], p["bn4_v"])

    # z = BN2( BN1(dw3(x)) + dw1(x) + x )
    #   = conv3x3(x; w3*s1*s2) + s2*(w_dw1 + 1)*x + (s2*(o1 + b_dw1) + o2)
    w3 = p["dw3_w"][:, 0, :, :].reshape(C, 9).T * (s1 * s2)[None, :]    # (9, C)
    w3 = w3.at[4].add(s2 * (p["dw1_w"] + 1.0))       # fold identity + dw1x1
    c = s2 * (o1 + p["dw1_b"]) + o2                                     # (C,)
    W1 = p["pw1_w"][:, :, 0, 0].T * s3[None, :]                         # (C, hidden)
    W2 = p["pw2_w"][:, :, 0, 0].T * s4[None, :]                         # (hidden, C)
    ls = p["layer_scale"]

    # Lane-dense padding: channel / hidden axes to multiples of 128.
    Cp = _round_up(C, 128)
    Hd = _round_up(hidden, 128)
    pc, ph = Cp - C, Hd - hidden
    return dict(
        C=C, Cp=Cp, hidden=hidden, Hd=Hd,
        w3=jnp.pad(w3.astype(f32), ((0, 0), (0, pc))),
        c=jnp.pad(c.astype(f32), ((0, pc),)).reshape(1, Cp),
        b3=jnp.pad(o3.astype(f32), ((0, ph),)).reshape(1, Hd),
        b4=jnp.pad(o4.astype(f32), ((0, pc),)).reshape(1, Cp),
        ls=jnp.pad(ls.astype(f32), ((0, pc),)).reshape(1, Cp),
        W1=jnp.pad(W1, ((0, pc), (0, ph))).astype(jnp.bfloat16),
        W2=jnp.pad(W2, ((0, ph), (0, pc))).astype(jnp.bfloat16),
    )


# ----------------------------- tiling / VMEM budget ----------------------------
def _band_vmem_bytes(th, W, Cp, Hd, act_bytes):
    """Rough per-step VMEM estimate: double-buffered band/halo/out blocks,
    constant weight blocks (2 copies), and in-kernel f32 temporaries
    (xb/xl/xr, depthwise accum, out, and the (N,Hd) f32 `u`)."""
    n, nb = th * W, (th + 2) * W
    band_io = 2 * 2 * n * Cp * act_bytes          # body in + out, double-buffered
    halo_io = 2 * 2 * 2 * W * Cp * act_bytes      # two 1-row halos, double-buffered
    temps = 4 * (3 * nb * Cp + 3 * n * Cp + n * Hd)
    weights = 2 * 2 * 2 * Cp * Hd + 4 * 16 * Cp + 4 * Hd
    return band_io + halo_io + temps + weights


def _pick_row_tile(H, W, Cp, Hd, act_bytes, vmem_budget, max_rows=1024):
    """Largest divisor of H whose band has <= max_rows flattened rows and fits
    the VMEM budget (targets ~256-1024 rows per matmul; works for H=7/14/28)."""
    th = 1
    for d in range(1, H + 1):
        if H % d == 0 and d * W <= max_rows and \
                _band_vmem_bytes(d, W, Cp, Hd, act_bytes) <= vmem_budget:
            th = d
    return th


# ----------------------------- entry points ------------------------------------
def local_block_pallas_nhwc_padded(x, fp, *, row_tile=None,
                                   vmem_budget=28 * 1024 * 1024,
                                   approximate_gelu=False):
    """Core entry point.  x: (B, H, W, Cp) with Cp = lane-padded channels
    (multiple of 128, matching fold_local_block_params).  Returns (B, H, W, Cp).

    No HBM-level pad / slice / transpose: keep this padded NHWC layout across a
    whole LocalBlock stack (pad once at network entry).  Padded channels are
    passed through untouched by the residual and never leak into real channels.
    vmem_budget is re-derivable per TPU generation (28 MiB is v7x-safe)."""
    B, H, W, Cp = x.shape
    assert Cp == fp["w3"].shape[1], "x must be padded to fp's Cp"
    Hd = fp["W1"].shape[1]
    act_bytes = jnp.dtype(x.dtype).itemsize

    if row_tile is None:
        TH = _pick_row_tile(H, W, Cp, Hd, act_bytes, vmem_budget)
    else:
        assert H % row_tile == 0, "row_tile must divide H"
        TH = row_tile
    nH = H // TH
    est = _band_vmem_bytes(TH, W, Cp, Hd, act_bytes)
    vmem_limit = int(min(64 * 1024 * 1024, max(32 * 1024 * 1024, 2 * est)))

    # Halo rows come from two extra 1-row views of the same input; their index
    # maps are clamped at the image edges and the kernel zeroes them there.
    top_spec = pl.BlockSpec((1, 1, W, Cp),
                            lambda b, i: (b, jnp.maximum(i * TH - 1, 0), 0, 0))
    body_spec = pl.BlockSpec((1, TH, W, Cp), lambda b, i: (b, i, 0, 0))
    bot_spec = pl.BlockSpec((1, 1, W, Cp),
                            lambda b, i: (b, jnp.minimum((i + 1) * TH, H - 1), 0, 0))
    const = lambda shape: pl.BlockSpec(shape, lambda b, i: (0, 0))

    return pl.pallas_call(
        _make_local_block_kernel(approximate_gelu),
        out_shape=jax.ShapeDtypeStruct((B, H, W, Cp), x.dtype),
        grid=(B, nH),
        in_specs=[
            top_spec, body_spec, bot_spec,
            const((9, Cp)),       # w3
            const((1, Cp)),       # c
            const((Cp, Hd)),      # W1 (bf16)
            const((1, Hd)),       # b3
            const((Hd, Cp)),      # W2 (bf16)
            const((1, Cp)),       # b4
            const((1, Cp)),       # layer_scale
        ],
        out_specs=pl.BlockSpec((1, TH, W, Cp), lambda b, i: (b, i, 0, 0)),
        compiler_params=pltpu.CompilerParams(
            dimension_semantics=("parallel", "parallel"),
            vmem_limit_bytes=vmem_limit),
    )(x, x, x, fp["w3"], fp["c"], fp["W1"], fp["b3"], fp["W2"], fp["b4"], fp["ls"])


def local_block_pallas_nhwc(x_nhwc, p, eps=1e-5, row_tile=None):
    """Single-block convenience wrapper (NHWC, unpadded C).  The channel pad /
    slice here are one-off boundary glue; a real TinyViM stack should pad once
    and chain local_block_pallas_nhwc_padded to avoid the extra HBM passes."""
    fp = fold_local_block_params(p, eps)
    C, Cp = fp["C"], fp["Cp"]
    if Cp != C:
        x_nhwc = jnp.pad(x_nhwc, ((0, 0), (0, 0), (0, 0), (0, Cp - C)))
    out = local_block_pallas_nhwc_padded(x_nhwc, fp, row_tile=row_tile)
    return out[..., :C] if Cp != C else out


def local_block_pallas(x_nchw, p, eps=1e-5, row_tile=None):
    """NCHW boundary matching the PyTorch module.  The transposes are glue —
    in a multi-block pipeline stay (padded) NHWC end-to-end."""
    x_nhwc = jnp.transpose(x_nchw, (0, 2, 3, 1))
    out_nhwc = local_block_pallas_nhwc(x_nhwc, p, eps=eps, row_tile=row_tile)
    return jnp.transpose(out_nhwc, (0, 3, 1, 2))


# ----------------------------- pure-JAX reference (unfolded, NCHW) -------------
def local_block_reference(x, p, eps=1e-5):
    C = x.shape[1]

    def bn(t, g, b, m, v):
        s = (g / jnp.sqrt(v + eps))[None, :, None, None]
        return (t - m[None, :, None, None]) * s + b[None, :, None, None]

    y1 = lax.conv_general_dilated(x, p["dw3_w"], (1, 1), ((1, 1), (1, 1)),
                                  feature_group_count=C,
                                  dimension_numbers=("NCHW", "OIHW", "NCHW"))
    y1 = bn(y1, p["bn1_g"], p["bn1_b"], p["bn1_m"], p["bn1_v"])
    y2 = x * p["dw1_w"][None, :, None, None] + p["dw1_b"][None, :, None, None]
    z = bn(y1 + y2 + x, p["bn2_g"], p["bn2_b"], p["bn2_m"], p["bn2_v"])

    u = jnp.einsum("bchw,oc->bohw", z, p["pw1_w"][:, :, 0, 0])
    u = bn(u, p["bn3_g"], p["bn3_b"], p["bn3_m"], p["bn3_v"])
    u = jax.nn.gelu(u, approximate=False)
    v = jnp.einsum("bchw,oc->bohw", u, p["pw2_w"][:, :, 0, 0])
    v = bn(v, p["bn4_g"], p["bn4_b"], p["bn4_m"], p["bn4_v"])
    return x + p["layer_scale"][None, :, None, None] * v


# ----------------------------- deterministic synthetic params ------------------
def init_params(key, dim, hidden):
    ks = jax.random.split(key, 24)
    f32 = jnp.float32
    p = {}
    p["dw3_w"] = 0.02 * jax.random.normal(ks[0], (dim, 1, 3, 3), f32)
    p["dw1_w"] = 0.02 * jax.random.normal(ks[1], (dim,), f32)
    p["dw1_b"] = jnp.zeros((dim,), f32)                  # conv bias init 0
    p["pw1_w"] = 0.02 * jax.random.normal(ks[2], (hidden, dim, 1, 1), f32)
    p["pw2_w"] = 0.02 * jax.random.normal(ks[3], (dim, hidden, 1, 1), f32)

    def bn_set(i, n):
        return (0.5 + jax.random.uniform(ks[i], (n,), f32),        # gamma
                0.1 * jax.random.normal(ks[i + 1], (n,), f32),     # beta
                0.1 * jax.random.normal(ks[i + 2], (n,), f32),     # running mean
                0.5 + jax.random.uniform(ks[i + 3], (n,), f32))    # running var

    p["bn1_g"], p["bn1_b"], p["bn1_m"], p["bn1_v"] = bn_set(4, dim)
    p["bn2_g"], p["bn2_b"], p["bn2_m"], p["bn2_v"] = bn_set(8, dim)
    p["bn3_g"], p["bn3_b"], p["bn3_m"], p["bn3_v"] = bn_set(12, hidden)
    p["bn4_g"], p["bn4_b"], p["bn4_m"], p["bn4_v"] = bn_set(16, dim)
    p["layer_scale"] = jnp.ones((dim,), f32)             # matches nn.Parameter(ones)
    return p


if __name__ == "__main__":
    # TODO(synk): DropPath (stochastic depth) is identity at inference and is
    # therefore not implemented as a kernel op.
    B, C, H, W = 2, 4, 16, 16
    hidden = 8
    key = jax.random.PRNGKey(0)
    kx, kp = jax.random.split(key)
    x = jax.random.normal(kx, (B, C, H, W), jnp.float32)
    params = init_params(kp, C, hidden)

    ref = local_block_reference(x, params)

    # Auto-tiled run (single band: H*W = 256 flattened rows).
    out = jax.block_until_ready(local_block_pallas(x, params))
    assert out.shape == (B, C, H, W)
    np.testing.assert_allclose(np.asarray(out), np.asarray(ref),
                               rtol=5e-3, atol=5e-3)

    # Forced 4-row bands to exercise the multi-band H-halo path.
    out_tiled = jax.block_until_ready(local_block_pallas(x, params, row_tile=4))
    np.testing.assert_allclose(np.asarray(out_tiled), np.asarray(ref),
                               rtol=5e-3, atol=5e-3)

    print("KERNEL_OK")
</pallas_src>

<mosaic_0001>
module attributes {stable_mosaic.version = 11 : i64} {
  func.func @kernel(%arg0: i32, %arg1: i32, %arg2: memref<1x1x16x128xf32, #tpu.memory_space<vmem>>, %arg3: memref<1x16x16x128xf32, #tpu.memory_space<vmem>>, %arg4: memref<1x1x16x128xf32, #tpu.memory_space<vmem>>, %arg5: memref<9x128xf32, #tpu.memory_space<vmem>>, %arg6: memref<1x128xf32, #tpu.memory_space<vmem>>, %arg7: memref<128x128xbf16, #tpu.memory_space<vmem>>, %arg8: memref<1x128xf32, #tpu.memory_space<vmem>>, %arg9: memref<128x128xbf16, #tpu.memory_space<vmem>>, %arg10: memref<1x128xf32, #tpu.memory_space<vmem>>, %arg11: memref<1x128xf32, #tpu.memory_space<vmem>>, %arg12: memref<1x16x16x128xf32, #tpu.memory_space<vmem>>) attributes {dimension_semantics = [#tpu.dimension_semantics<parallel>, #tpu.dimension_semantics<parallel>], iteration_bounds = array<i64: 2, 1>, scalar_prefetch = 0 : i64, scratch_operands = 0 : i64, tpu.core_type = #tpu.core_type<tc>, window_params = [{transform_indices = @transform_0, window_bounds = array<i64: 1, 1, 16, 128>}, {transform_indices = @transform_1, window_bounds = array<i64: 1, 16, 16, 128>}, {transform_indices = @transform_2, window_bounds = array<i64: 1, 1, 16, 128>}, {pipeline_mode = #tpu.pipeline_mode<synchronous>, transform_indices = @transform_3, window_bounds = array<i64: 9, 128>}, {pipeline_mode = #tpu.pipeline_mode<synchronous>, transform_indices = @transform_4, window_bounds = array<i64: 1, 128>}, {pipeline_mode = #tpu.pipeline_mode<synchronous>, transform_indices = @transform_5, window_bounds = array<i64: 128, 128>}, {pipeline_mode = #tpu.pipeline_mode<synchronous>, transform_indices = @transform_6, window_bounds = array<i64: 1, 128>}, {pipeline_mode = #tpu.pipeline_mode<synchronous>, transform_indices = @transform_7, window_bounds = array<i64: 128, 128>}, {pipeline_mode = #tpu.pipeline_mode<synchronous>, transform_indices = @transform_8, window_bounds = array<i64: 1, 128>}, {pipeline_mode = #tpu.pipeline_mode<synchronous>, transform_indices = @transform_9, window_bounds = array<i64: 1, 128>}, {transform_indices = @transform_10, window_bounds = array<i64: 1, 16, 16, 128>}]} {
    %c0 = arith.constant 0 : index
    %c0_0 = arith.constant 0 : index
    %c0_1 = arith.constant 0 : index
    %c0_2 = arith.constant 0 : index
    %0 = vector.load %arg3[%c0, %c0_0, %c0_1, %c0_2] : memref<1x16x16x128xf32, #tpu.memory_space<vmem>>, vector<1x16x16x128xf32>
    %1 = vector.shape_cast %0 : vector<1x16x16x128xf32> to vector<16x16x128xf32>
    %c0_3 = arith.constant 0 : index
    %c0_4 = arith.constant 0 : index
    %c0_5 = arith.constant 0 : index
    %c0_6 = arith.constant 0 : index
    %2 = vector.load %arg2[%c0_3, %c0_4, %c0_5, %c0_6] : memref<1x1x16x128xf32, #tpu.memory_space<vmem>>, vector<1x1x16x128xf32>
    %3 = vector.shape_cast %2 : vector<1x1x16x128xf32> to vector<1x16x128xf32>
    %c0_i32 = arith.constant 0 : i32
    %4 = arith.cmpi sgt, %arg1, %c0_i32 : i32
    %5 = arith.extui %4 : i1 to i32
    %6 = arith.sitofp %5 : i32 to f32
    %7 = vector.broadcast %6 : f32 to vector<1x16x128xf32>
    %8 = arith.mulf %3, %7 : vector<1x16x128xf32>
    %c0_7 = arith.constant 0 : index
    %c0_8 = arith.constant 0 : index
    %c0_9 = arith.constant 0 : index
    %c0_10 = arith.constant 0 : index
    %9 = vector.load %arg4[%c0_7, %c0_8, %c0_9, %c0_10] : memref<1x1x16x128xf32, #tpu.memory_space<vmem>>, vector<1x1x16x128xf32>
    %10 = vector.shape_cast %9 : vector<1x1x16x128xf32> to vector<1x16x128xf32>
    %c0_i32_11 = arith.constant 0 : i32
    %11 = arith.cmpi slt, %arg1, %c0_i32_11 : i32
    %12 = arith.extui %11 : i1 to i32
    %13 = arith.sitofp %12 : i32 to f32
    %14 = vector.broadcast %13 : f32 to vector<1x16x128xf32>
    %15 = arith.mulf %10, %14 : vector<1x16x128xf32>
    %16 = tpu.concatenate %8, %1, %15 in 0 : vector<1x16x128xf32>, vector<16x16x128xf32>, vector<1x16x128xf32> -> vector<18x16x128xf32>
    %cst = arith.constant 0.000000e+00 : f32
    %17 = vector.broadcast %cst : f32 to vector<18x1x128xf32>
    %18 = vector.extract_strided_slice %16 {offsets = [0, 0, 0], sizes = [18, 15, 128], strides = [1, 1, 1]} : vector<18x16x128xf32> to vector<18x15x128xf32>
    %19 = tpu.concatenate %17, %18 in 1 : vector<18x1x128xf32>, vector<18x15x128xf32> -> vector<18x16x128xf32>
    %20 = vector.extract_strided_slice %16 {offsets = [0, 1, 0], sizes = [18, 15, 128], strides = [1, 1, 1]} : vector<18x16x128xf32> to vector<18x15x128xf32>
    %21 = tpu.concatenate %20, %17 in 1 : vector<18x15x128xf32>, vector<18x1x128xf32> -> vector<18x16x128xf32>
    %c0_12 = arith.constant 0 : index
    %c0_13 = arith.constant 0 : index
    %22 = vector.load %arg5[%c0_12, %c0_13] : memref<9x128xf32, #tpu.memory_space<vmem>>, vector<9x128xf32>
    %23 = vector.extract_strided_slice %19 {offsets = [0, 0, 0], sizes = [16, 16, 128], strides = [1, 1, 1]} : vector<18x16x128xf32> to vector<16x16x128xf32>
    %24 = vector.extract_strided_slice %22 {offsets = [0, 0], sizes = [1, 128], strides = [1, 1]} : vector<9x128xf32> to vector<1x128xf32>
    %25 = vector.shape_cast %24 : vector<1x128xf32> to vector<128xf32>
    %26 = vector.shape_cast %25 : vector<128xf32> to vector<1x1x128xf32>
    %27 = vector.broadcast %26 : vector<1x1x128xf32> to vector<16x16x128xf32>
    %28 = arith.mulf %23, %27 : vector<16x16x128xf32>
    %29 = vector.extract_strided_slice %16 {offsets = [0, 0, 0], sizes = [16, 16, 128], strides = [1, 1, 1]} : vector<18x16x128xf32> to vector<16x16x128xf32>
    %30 = vector.extract_strided_slice %22 {offsets = [1, 0], sizes = [1, 128], strides = [1, 1]} : vector<9x128xf32> to vector<1x128xf32>
    %31 = vector.shape_cast %30 : vector<1x128xf32> to vector<128xf32>
    %32 = vector.shape_cast %31 : vector<128xf32> to vector<1x1x128xf32>
    %33 = vector.broadcast %32 : vector<1x1x128xf32> to vector<16x16x128xf32>
    %34 = arith.mulf %29, %33 : vector<16x16x128xf32>
    %35 = arith.addf %28, %34 : vector<16x16x128xf32>
    %36 = vector.extract_strided_slice %21 {offsets = [0, 0, 0], sizes = [16, 16, 128], strides = [1, 1, 1]} : vector<18x16x128xf32> to vector<16x16x128xf32>
    %37 = vector.extract_strided_slice %22 {offsets = [2, 0], sizes = [1, 128], strides = [1, 1]} : vector<9x128xf32> to vector<1x128xf32>
    %38 = vector.shape_cast %37 : vector<1x128xf32> to vector<128xf32>
    %39 = vector.shape_cast %38 : vector<128xf32> to vector<1x1x128xf32>
    %40 = vector.broadcast %39 : vector<1x1x128xf32> to vector<16x16x128xf32>
    %41 = arith.mulf %36, %40 : vector<16x16x128xf32>
    %42 = arith.addf %35, %41 : vector<16x16x128xf32>
    %43 = vector.extract_strided_slice %19 {offsets = [1, 0, 0], sizes = [16, 16, 128], strides = [1, 1, 1]} : vector<18x16x128xf32> to vector<16x16x128xf32>
    %44 = vector.extract_strided_slice %22 {offsets = [3, 0], sizes = [1, 128], strides = [1, 1]} : vector<9x128xf32> to vector<1x128xf32>
    %45 = vector.shape_cast %44 : vector<1x128xf32> to vector<128xf32>
    %46 = vector.shape_cast %45 : vector<128xf32> to vector<1x1x128xf32>
    %47 = vector.broadcast %46 : vector<1x1x128xf32> to vector<16x16x128xf32>
    %48 = arith.mulf %43, %47 : vector<16x16x128xf32>
    %49 = arith.addf %42, %48 : vector<16x16x128xf32>
    %50 = vector.extract_strided_slice %16 {offsets = [1, 0, 0], sizes = [16, 16, 128], strides = [1, 1, 1]} : vector<18x16x128xf32> to vector<16x16x128xf32>
    %51 = vector.extract_strided_slice %22 {offsets = [4, 0], sizes = [1, 128], strides = [1, 1]} : vector<9x128xf32> to vector<1x128xf32>
    %52 = vector.shape_cast %51 : vector<1x128xf32> to vector<128xf32>
    %53 = vector.shape_cast %52 : vector<128xf32> to vector<1x1x128xf32>
    %54 = vector.broadcast %53 : vector<1x1x128xf32> to vector<16x16x128xf32>
    %55 = arith.mulf %50, %54 : vector<16x16x128xf32>
    %56 = arith.addf %49, %55 : vector<16x16x128xf32>
    %57 = vector.extract_strided_slice %21 {offsets = [1, 0, 0], sizes = [16, 16, 128], strides = [1, 1, 1]} : vector<18x16x128xf32> to vector<16x16x128xf32>
    %58 = vector.extract_strided_slice %22 {offsets = [5, 0], sizes = [1, 128], strides = [1, 1]} : vector<9x128xf32> to vector<1x128xf32>
    %59 = vector.shape_cast %58 : vector<1x128xf32> to vector<128xf32>
    %60 = vector.shape_cast %59 : vector<128xf32> to vector<1x1x128xf32>
    %61 = vector.broadcast %60 : vector<1x1x128xf32> to vector<16x16x128xf32>
    %62 = arith.mulf %57, %61 : vector<16x16x128xf32>
    %63 = arith.addf %56, %62 : vector<16x16x128xf32>
    %64 = vector.extract_strided_slice %19 {offsets = [2, 0, 0], sizes = [16, 16, 128], strides = [1, 1, 1]} : vector<18x16x128xf32> to vector<16x16x128xf32>
    %65 = vector.extract_strided_slice %22 {offsets = [6, 0], sizes = [1, 128], strides = [1, 1]} : vector<9x128xf32> to vector<1x128xf32>
    %66 = vector.shape_cast %65 : vector<1x128xf32> to vector<128xf32>
    %67 = vector.shape_cast %66 : vector<128xf32> to vector<1x1x128xf32>
    %68 = vector.broadcast %67 : vector<1x1x128xf32> to vector<16x16x128xf32>
    %69 = arith.mulf %64, %68 : vector<16x16x128xf32>
    %70 = arith.addf %63, %69 : vector<16x16x128xf32>
    %71 = vector.extract_strided_slice %16 {offsets = [2, 0, 0], sizes = [16, 16, 128], strides = [1, 1, 1]} : vector<18x16x128xf32> to vector<16x16x128xf32>
    %72 = vector.extract_strided_slice %22 {offsets = [7, 0], sizes = [1, 128], strides = [1, 1]} : vector<9x128xf32> to vector<1x128xf32>
    %73 = vector.shape_cast %72 : vector<1x128xf32> to vector<128xf32>
    %74 = vector.shape_cast %73 : vector<128xf32> to vector<1x1x128xf32>
    %75 = vector.broadcast %74 : vector<1x1x128xf32> to vector<16x16x128xf32>
    %76 = arith.mulf %71, %75 : vector<16x16x128xf32>
    %77 = arith.addf %70, %76 : vector<16x16x128xf32>
    %78 = vector.extract_strided_slice %21 {offsets = [2, 0, 0], sizes = [16, 16, 128], strides = [1, 1, 1]} : vector<18x16x128xf32> to vector<16x16x128xf32>
    %79 = vector.extract_strided_slice %22 {offsets = [8, 0], sizes = [1, 128], strides = [1, 1]} : vector<9x128xf32> to vector<1x128xf32>
    %80 = vector.shape_cast %79 : vector<1x128xf32> to vector<128xf32>
    %81 = vector.shape_cast %80 : vector<128xf32> to vector<1x1x128xf32>
    %82 = vector.broadcast %81 : vector<1x1x128xf32> to vector<16x16x128xf32>
    %83 = arith.mulf %78, %82 : vector<16x16x128xf32>
    %84 = arith.addf %77, %83 : vector<16x16x128xf32>
    %c0_14 = arith.constant 0 : index
    %c0_15 = arith.constant 0 : index
    %85 = vector.load %arg6[%c0_14, %c0_15] : memref<1x128xf32, #tpu.memory_space<vmem>>, vector<1x128xf32>
    %86 = vector.shape_cast %85 : vector<1x128xf32> to vector<1x1x128xf32>
    %87 = vector.broadcast %86 : vector<1x1x128xf32> to vector<16x16x128xf32>
    %88 = arith.addf %84, %87 : vector<16x16x128xf32>
    %89 = vector.shape_cast %88 : vector<16x16x128xf32> to vector<256x128xf32>
    %90 = arith.truncf %89 : vector<256x128xf32> to vector<256x128xbf16>
    %c0_16 = arith.constant 0 : index
    %c0_17 = arith.constant 0 : index
    %91 = vector.load %arg7[%c0_16, %c0_17] : memref<128x128xbf16, #tpu.memory_space<vmem>>, vector<128x128xbf16>
    %cst_18 = arith.constant dense<0.000000e+00> : vector<256x128xf32>
    %92 = tpu.matmul %90, %91, %cst_18 {dimension_numbers = #tpu.dot_dimension_numbers<[1], [0], [0], [1], [0, 0, 1, 1], [], []>} : vector<256x128xbf16>, vector<128x128xbf16>, vector<256x128xf32> -> vector<256x128xf32>
    %c0_19 = arith.constant 0 : index
    %c0_20 = arith.constant 0 : index
    %93 = vector.load %arg8[%c0_19, %c0_20] : memref<1x128xf32, #tpu.memory_space<vmem>>, vector<1x128xf32>
    %94 = vector.broadcast %93 : vector<1x128xf32> to vector<256x128xf32>
    %95 = arith.addf %92, %94 : vector<256x128xf32>
    %cst_21 = arith.constant 5.000000e-01 : f32
    %96 = vector.broadcast %cst_21 : f32 to vector<256x128xf32>
    %97 = arith.mulf %96, %95 : vector<256x128xf32>
    %cst_22 = arith.constant 0.707106769 : f32
    %98 = vector.broadcast %cst_22 : f32 to vector<256x128xf32>
    %99 = arith.mulf %95, %98 : vector<256x128xf32>
    %100 = math.absf %99 : vector<256x128xf32>
    %cst_23 = arith.constant 0.327591091 : f32
    %101 = vector.broadcast %cst_23 : f32 to vector<256x128xf32>
    %102 = arith.mulf %101, %100 : vector<256x128xf32>
    %cst_24 = arith.constant 1.000000e+00 : f32
    %103 = vector.broadcast %cst_24 : f32 to vector<256x128xf32>
    %104 = arith.addf %103, %102 : vector<256x128xf32>
    %cst_25 = arith.constant 1.000000e+00 : f32
    %105 = vector.broadcast %cst_25 : f32 to vector<256x128xf32>
    %106 = arith.divf %105, %104 : vector<256x128xf32>
    %cst_26 = arith.constant 1.06140542 : f32
    %107 = vector.broadcast %cst_26 : f32 to vector<256x128xf32>
    %108 = arith.mulf %107, %106 : vector<256x128xf32>
    %cst_27 = arith.constant -1.45315206 : f32
    %109 = vector.broadcast %cst_27 : f32 to vector<256x128xf32>
    %110 = arith.addf %108, %109 : vector<256x128xf32>
    %111 = arith.mulf %110, %106 : vector<256x128xf32>
    %cst_28 = arith.constant 1.42141378 : f32
    %112 = vector.broadcast %cst_28 : f32 to vector<256x128xf32>
    %113 = arith.addf %111, %112 : vector<256x128xf32>
    %114 = arith.mulf %113, %106 : vector<256x128xf32>
    %cst_29 = arith.constant -0.284496725 : f32
    %115 = vector.broadcast %cst_29 : f32 to vector<256x128xf32>
    %116 = arith.addf %114, %115 : vector<256x128xf32>
    %117 = arith.mulf %116, %106 : vector<256x128xf32>
    %cst_30 = arith.constant 0.254829586 : f32
    %118 = vector.broadcast %cst_30 : f32 to vector<256x128xf32>
    %119 = arith.addf %117, %118 : vector<256x128xf32>
    %120 = arith.mulf %119, %106 : vector<256x128xf32>
    %cst_31 = arith.constant 0.000000e+00 : f32
    %121 = vector.broadcast %cst_31 : f32 to vector<256x128xf32>
    %122 = arith.subf %121, %100 : vector<256x128xf32>
    %123 = arith.mulf %122, %100 : vector<256x128xf32>
    %124 = math.exp %123 : vector<256x128xf32>
    %125 = arith.mulf %120, %124 : vector<256x128xf32>
    %cst_32 = arith.constant 1.000000e+00 : f32
    %126 = vector.broadcast %cst_32 : f32 to vector<256x128xf32>
    %127 = arith.subf %126, %125 : vector<256x128xf32>
    %cst_33 = arith.constant 0.000000e+00 : f32
    %128 = vector.broadcast %cst_33 : f32 to vector<256x128xf32>
    %129 = arith.cmpf oge, %99, %128 : vector<256x128xf32>
    %cst_34 = arith.constant 0.000000e+00 : f32
    %130 = vector.broadcast %cst_34 : f32 to vector<256x128xf32>
    %131 = arith.subf %130, %127 : vector<256x128xf32>
    %132 = arith.select %129, %127, %131 : vector<256x128xi1>, vector<256x128xf32>
    %cst_35 = arith.constant 1.000000e+00 : f32
    %133 = vector.broadcast %cst_35 : f32 to vector<256x128xf32>
    %134 = arith.addf %133, %132 : vector<256x128xf32>
    %135 = arith.mulf %97, %134 : vector<256x128xf32>
    %136 = arith.truncf %135 : vector<256x128xf32> to vector<256x128xbf16>
    %c0_36 = arith.constant 0 : index
    %c0_37 = arith.constant 0 : index
    %137 = vector.load %arg9[%c0_36, %c0_37] : memref<128x128xbf16, #tpu.memory_space<vmem>>, vector<128x128xbf16>
    %cst_38 = arith.constant dense<0.000000e+00> : vector<256x128xf32>
    %138 = tpu.matmul %136, %137, %cst_38 {dimension_numbers = #tpu.dot_dimension_numbers<[1], [0], [0], [1], [0, 0, 1, 1], [], []>} : vector<256x128xbf16>, vector<128x128xbf16>, vector<256x128xf32> -> vector<256x128xf32>
    %c0_39 = arith.constant 0 : index
    %c0_40 = arith.constant 0 : index
    %139 = vector.load %arg10[%c0_39, %c0_40] : memref<1x128xf32, #tpu.memory_space<vmem>>, vector<1x128xf32>
    %140 = vector.broadcast %139 : vector<1x128xf32> to vector<256x128xf32>
    %141 = arith.addf %138, %140 : vector<256x128xf32>
    %c0_41 = arith.constant 0 : index
    %c0_42 = arith.constant 0 : index
    %142 = vector.load %arg11[%c0_41, %c0_42] : memref<1x128xf32, #tpu.memory_space<vmem>>, vector<1x128xf32>
    %143 = vector.shape_cast %142 : vector<1x128xf32> to vector<1x1x128xf32>
    %144 = vector.shape_cast %141 : vector<256x128xf32> to vector<16x16x128xf32>
    %145 = vector.broadcast %143 : vector<1x1x128xf32> to vector<16x16x128xf32>
    %146 = arith.mulf %145, %144 : vector<16x16x128xf32>
    %147 = arith.addf %1, %146 : vector<16x16x128xf32>
    %c0_43 = arith.constant 0 : index
    %c0_44 = arith.constant 0 : index
    %c0_45 = arith.constant 0 : index
    %c0_46 = arith.constant 0 : index
    %148 = vector.load %arg12[%c0_43, %c0_44, %c0_45, %c0_46] : memref<1x16x16x128xf32, #tpu.memory_space<vmem>>, vector<1x16x16x128xf32>
    %149 = vector.shape_cast %148 : vector<1x16x16x128xf32> to vector<16x16x128xf32>
    %150 = vector.shape_cast %147 : vector<16x16x128xf32> to vector<1x16x16x128xf32>
    tpu.vector_store %arg12[%c0_43, %c0_44, %c0_45, %c0_46], %150 {strides = array<i32>} : memref<1x16x16x128xf32, #tpu.memory_space<vmem>>, vector<1x16x16x128xf32>,
    return
  }
  func.func @transform_0(%arg0: i32, %arg1: i32) -> (i32, i32, i32, i32) {
    %c16_i32 = arith.constant 16 : i32
    %0 = arith.muli %arg1, %c16_i32 : i32
    %c1_i32 = arith.constant 1 : i32
    %1 = arith.subi %0, %c1_i32 : i32
    %c0_i32 = arith.constant 0 : i32
    %2 = arith.maxsi %1, %c0_i32 : i32
    %c0_i32_0 = arith.constant 0 : i32
    %c0_i32_1 = arith.constant 0 : i32
    %c0_i32_2 = arith.constant 0 : i32
    return %arg0, %2, %c0_i32_0, %c0_i32_1 : i32, i32, i32, i32
  }
  func.func @transform_1(%arg0: i32, %arg1: i32) -> (i32, i32, i32, i32) {
    %c0_i32 = arith.constant 0 : i32
    %c0_i32_0 = arith.constant 0 : i32
    %c0_i32_1 = arith.constant 0 : i32
    return %arg0, %arg1, %c0_i32, %c0_i32_0 : i32, i32, i32, i32
  }
  func.func @transform_2(%arg0: i32, %arg1: i32) -> (i32, i32, i32, i32) {
    %c1_i32 = arith.constant 1 : i32
    %0 = arith.addi %arg1, %c1_i32 : i32
    %c16_i32 = arith.constant 16 : i32
    %1 = arith.muli %0, %c16_i32 : i32
    %c15_i32 = arith.constant 15 : i32
    %2 = arith.minsi %1, %c15_i32 : i32
    %c0_i32 = arith.constant 0 : i32
    %c0_i32_0 = arith.constant 0 : i32
    %c0_i32_1 = arith.constant 0 : i32
    return %arg0, %2, %c0_i32, %c0_i32_0 : i32, i32, i32, i32
  }
  func.func @transform_3(%arg0: i32, %arg1: i32) -> (i32, i32) {
    %c0_i32 = arith.constant 0 : i32
    %c0_i32_0 = arith.constant 0 : i32
    %c0_i32_1 = arith.constant 0 : i32
    return %c0_i32, %c0_i32_0 : i32, i32
  }
  func.func @transform_4(%arg0: i32, %arg1: i32) -> (i32, i32) {
    %c0_i32 = arith.constant 0 : i32
    %c0_i32_0 = arith.constant 0 : i32
    %c0_i32_1 = arith.constant 0 : i32
    return %c0_i32, %c0_i32_0 : i32, i32
  }
  func.func @transform_5(%arg0: i32, %arg1: i32) -> (i32, i32) {
    %c0_i32 = arith.constant 0 : i32
    %c0_i32_0 = arith.constant 0 : i32
    %c0_i32_1 = arith.constant 0 : i32
    return %c0_i32, %c0_i32_0 : i32, i32
  }
  func.func @transform_6(%arg0: i32, %arg1: i32) -> (i32, i32) {
    %c0_i32 = arith.constant 0 : i32
    %c0_i32_0 = arith.constant 0 : i32
    %c0_i32_1 = arith.constant 0 : i32
    return %c0_i32, %c0_i32_0 : i32, i32
  }
  func.func @transform_7(%arg0: i32, %arg1: i32) -> (i32, i32) {
    %c0_i32 = arith.constant 0 : i32
    %c0_i32_0 = arith.constant 0 : i32
    %c0_i32_1 = arith.constant 0 : i32
    return %c0_i32, %c0_i32_0 : i32, i32
  }
  func.func @transform_8(%arg0: i32, %arg1: i32) -> (i32, i32) {
    %c0_i32 = arith.constant 0 : i32
    %c0_i32_0 = arith.constant 0 : i32
    %c0_i32_1 = arith.constant 0 : i32
    return %c0_i32, %c0_i32_0 : i32, i32
  }
  func.func @transform_9(%arg0: i32, %arg1: i32) -> (i32, i32) {
    %c0_i32 = arith.constant 0 : i32
    %c0_i32_0 = arith.constant 0 : i32
    %c0_i32_1 = arith.constant 0 : i32
    return %c0_i32, %c0_i32_0 : i32, i32
  }
  func.func @transform_10(%arg0: i32, %arg1: i32) -> (i32, i32, i32, i32) {
    %c0_i32 = arith.constant 0 : i32
    %c0_i32_0 = arith.constant 0 : i32
    %c0_i32_1 = arith.constant 0 : i32
    return %arg0, %arg1, %c0_i32, %c0_i32_0 : i32, i32, i32, i32
  }
}

</mosaic_0001>

<bundles_post_ra>
// kernel: tpu_custom_call.1
= control target key start
LH: loop header
LB: loop body
LE: loop exit
PB: predicated region body
PF: predicated region fallthrough
CT: control target
= control target key end

     0   :  { %s6242_s0 = inlined_call_operand.hbm [shape: f32[2,16,16,128], index: 0, kind: input, shape index: {}]   ;;  %s6243_s1 = inlined_call_operand.hbm [shape: f32[2,16,16,128], index: 1, kind: input, shape index: {}]   ;;  %s6244_s2 = inlined_call_operand.hbm [shape: f32[2,16,16,128], index: 2, kind: input, shape index: {}]   ;;  %s6245_s3 = inlined_call_operand.hbm [shape: f32[9,128], index: 3, kind: input, shape index: {}]   ;;  %s6246_s4 = inlined_call_operand.vmem [shape: f32[1,128], index: 4, kind: input, shape index: {}]   ;;  %s6247_s5 = inlined_call_operand.hbm [shape: bf16[128,128], index: 5, kind: input, shape index: {}]   ;;  %s6248_s6 = inlined_call_operand.vmem [shape: f32[1,128], index: 6, kind: input, shape index: {}]   ;;  %s6249_s7 = inlined_call_operand.hbm [shape: bf16[128,128], index: 7, kind: input, shape index: {}]   ;;  %s6250_s8 = inlined_call_operand.vmem [shape: f32[1,128], index: 8, kind: input, shape index: {}]   ;;  %s6251_s9 = inlined_call_operand.vmem [shape: f32[1,128], index: 9, kind: input, shape index: {}]   ;;  %s6252_s10 = inlined_call_operand.hbm [shape: f32[2,16,16,128], index: 10, kind: output, shape index: {}]  }
   0x1   :  { %6293 = sst [smem:[#allocation47_spill]] %s6243_s1 }
   0x2   :  { %6294 = sst [smem:[#allocation48_spill]] %s6245_s3 }
   0x3   :  { %6295 = sst [smem:[#allocation49_spill]] %s6246_s4 }
   0x4   :  { %6296 = sst [smem:[#allocation50_spill]] %s6248_s6 }
   0x5   :  { %6297 = sst [smem:[#allocation51_spill]] %s6250_s8 }
   0x6   :  { %6298 = sst [smem:[#allocation52_spill]] %s6251_s9 }
   0x7   :  { %6299 = sst [smem:[#allocation53_spill]] %s6252_s10 }
   0x8   :  { %15 = vsyncpa [#allocation3], 0 }
   0x9   :  { %17 = vsyncpa [#allocation3 + $0x1], 0 }
   0xa   :  { %18 = vsyncpa [#allocation6], 0 }
   0xb   :  { %20 = vsyncpa [#allocation6 + $0x1], 0 }
   0xc   :  { %21 = vsyncpa [#allocation9], 0 }
   0xd   :  { %22 = vsyncpa [#allocation12], 0 }
   0xe   :  { %23 = vsyncpa [#allocation4], 0 }
   0xf   :  { %25 = vsyncpa [#allocation4 + $0x1], 0  ;;  %s3955_s13 = smov 0   ;;  %s3957_s14 = smov 0  }
  0x10   :  { %s3959_s15 = smov 0   ;;  %s3961_s16 = smov 0  }
  0x11   :  { %s3963_s17 = smov 0   ;;  %s3965_s18 = smov 0  }
  0x12 LB: > { %6300 = sst [smem:[#allocation19_spill]] %s3865_s13  ;;  %s3986_s19 = sadd.s32 4294967295, %s3885_s18   ;;  %s3885_s18 = sphi %s3965_s18, %s31_s18   ;;  %s3881_s17 = sphi %s3963_s17, %s6389_s17   ;;  %s3877_s16 = sphi %s3961_s16, %s6388_s16   ;;  %s3873_s15 = sphi %s3959_s15, %s6387_s15   ;;  %s3869_s14 = sphi %s3957_s14, %s6391_s14   ;;  %s3865_s13 = sphi %s3955_s13, %s6390_s13  }
  0x13   : > { %6301 = sst [smem:[#allocation20_spill]] %s3873_s15  ;;  %s3130_s20 = sadd.s32 4294967294, %s3885_s18  }
  0x14   : > { %6302 = sst [smem:[#allocation21_spill]] %s3877_s16  ;;  %p67_p0 = scmp.ne.s32.totalorder %s3873_s15, %s3869_s14 }
  0x15   : > { %6303 = sst [smem:[#allocation22_spill]] %s3881_s17  ;;  %p68_p1 = scmp.eq.s32.totalorder %s3885_s18, 0 }
  0x16   : > { %6304 = sst [smem:[#allocation23_spill]] %s3885_s18  ;;  %p73_p2 = scmp.ne.s32.totalorder %s3869_s14, %s3865_s13 }
  0x17   : > { %6305 = sst [smem:[#allocation24_spill]] %s3986_s19  ;;  %p6258_p3 = scmp.eq.s32.totalorder %s3986_s19, 0 }
  0x18   : > { %p3995_p4 = por %p68_p1, %p67_p0  ;;  %p310_p5 = scmp.eq.s32.totalorder %s3986_s19, 1 }
  0x19   : > { %p4002_p6 = por %p6258_p3, %p73_p2  ;;  %p316_p7 = scmp.eq.s32.totalorder %s3130_s20, 1 }
  0x1a   : > { %p4006_p8 = por %p310_p5, %p67_p0  ;;  %p3131_p9 = scmp.ge.s32.totalorder %s3885_s18, 1 }
  0x1b   : > { %s6307_s22 = scalar_select %p4002_p6, 1, 0 }
  0x1c   : > { %s6308_s23 = scalar_select %p4006_p8, 1, 0 }
  0x1d   : > { %p4011_p10 = por %p316_p7, %p73_p2  ;;  %p323_p11 = scmp.lt.s32.totalorder %s3885_s18, 3 }
  0x1e   : > { %6309 = sst [smem:[#allocation25_spill]] %s6308_s23  ;;  %s3887_s26 = smov [#allocation8]  }
  0x1f   : > { %s6310_s24 = scalar_select %p4011_p10, 1, 0 }
  0x20   : > { %p4016_p12 = pnand %p3131_p9, %p323_p11  ;;  %s335_s27 = sshll.u32 %s3887_s26, 4  ;;  %s4020_s27 = int_to_ptr.vmem [resolvable:$true] %s335_s27 }
  0x21   : > { %6311 = sst [smem:[#allocation26_spill]] %s6310_s24  ;;  %s43_s29 = sadd.s32 1, %s3881_s17 }
  0x22   : > { %s6312_s25 = scalar_select %p4016_p12, 1, 0 }
  0x23   : > { %p3349_p13 = pneg %p4016_p12  ;;  %p4033_p2 = scmp.ge.s32.totalorder %s43_s29, 2 }
  0x24   : > { %s6315_s3 = sld [smem:[#allocation48_spill]] }
  0x25   : > { %p4027_p1 = pnand %p3349_p13, %p6258_p3 }
  0x27   : > { %s6313_s28 = scalar_select %p4027_p1, 1, 0 }
  0x28   : > { %p4045_p7 = pneg %p4027_p1 }
  0x2a   : > { %s3617_s26 = scalar_lea.hbm %s6315_s3, 256 }
  0x2b   : > { %p3618_p5 = scmp.ne.s32.totalorder %s6315_s3, %s3617_s26  ;;  %p3624_p13 = scmp.lt.u32.totalorder %s3617_s26, %s6315_s3 }
  0x2c   : > { %s6316_s10 = scalar_select %p4045_p7, 1, 0 }
  0x2d   : > { %p3620_p9 = pnand %p4045_p7, %p3618_p5 }
  0x2f   : > { %p3621_p11 = pneg %p3620_p9 }
  0x31   : > { %p3626_p0 = pnand %p3624_p13, %p3621_p11 }
  0x33   : > { %3629 = shalt.err (!%p3626_p0)
}
  0x34   : > { %s3630_s13 = scalar_lea.vmem %s4020_s27, 256  ;;  %p3638_p6 = scmp.lt.s32.totalorder %s4020_s27, %s4020_s27 }
  0x35   : > { %p3631_p3 = scmp.ne.s32.totalorder %s4020_s27, %s3630_s13  ;;  %p3639_p12 = scmp.lt.s32.totalorder %s3630_s13, %s3630_s13 }
  0x37   : > { %p3633_p10 = pnand %p3631_p3, %p4045_p7  ;;  %p3640_p5 = por %p3639_p12, %p3638_p6 }
  0x39   : > { %p3634_p8 = pneg %p3633_p10 }
  0x3b   : > { %p3641_p9 = pnand %p3640_p5, %p3634_p8 }
  0x3d   : > { %3644 = shalt.err (!%p3641_p9)
}
  0x3e   : > { %s6262_s24 = smov 128   ;;  %s6264_s23 = smov 8  }
  0x3f   : > { %3352 = dma.hbm_to_vmem [thread:$0]  (!%p4027_p1), %s6315_s3, 256, %s4020_s27, [#allocation9], %s6262_s24, %s6262_s24, %s6264_s23  }
  0x40   : > { %s6393_s29 = smov (%p4033_p2, %s43_s29), 0  ;;  %p3376_p3 = scmp.lt.s32.totalorder %s3885_s18, 2 }
  0x41   : > { %6317 = sst [smem:[#allocation27_spill]] %s6393_s29  ;;  %s4075_s20 = sand.u32 1, %s3873_s15  }
  0x42   : > { %s55_s26 = ssub.s32 %s3881_s17, %s6393_s29  ;;  %s4080_s13 = sshll.u32 %s3881_s17, 12 }
  0x43   : > { %p58_p6 = scmp.eq.s32.totalorder %s55_s26, 0  ;;  %p4084_p8 = pnand %p3376_p3, %p3995_p4 }
  0x44   : > { %s414_s27 = sand.u32 1, %s3885_s18   ;;  %s3139_s11 = sshll.u32 %s4075_s20, 8 }
  0x45   : > { %s6318_s16 = scalar_select %p4084_p8, 1, 0 }
  0x46   : > { %s6319_s30 = sadd.s32 1, %s3873_s15  ;;  %s6321_s1 = sld [smem:[#allocation47_spill]] }
  0x47   : > { %s4093_s12 = scalar_select %p58_p6, %s3873_s15, %s6319_s30  }
  0x48   : > { %s418_s21 = scalar_lea.vmem [#allocation5], %s3139_s11  ;;  %s3890_s29 = smov [#allocation10]  }
  0x49   : > { %6320 = sst [smem:[#allocation28_spill]] %s4093_s12  ;;  %s428_s26 = sshll.u32 %s418_s21, 4  ;;  %s4101_s26 = int_to_ptr.vmem [resolvable:$true] %s428_s26 }
  0x4a   : > { %s4103_s17 = sshll.u32 %s3890_s29, 4  ;;  %s4105_s18 = scalar_lea.sflag [#allocation6], %s414_s27  ;;  %s352_s17 = int_to_ptr.vmem [resolvable:$true] %s4103_s17 }
  0x4b   : > { %p4111_p10 = pneg %p4084_p8 }
  0x4c   : > { %s4099_s3 = scalar_lea.hbm %s6321_s1, %s4080_s13  ;;  %s3650_s21 = scalar_lea.hbm %s6321_s1, 8192 }
  0x4d   : > { %s3645_s30 = scalar_lea.hbm %s4099_s3, 4096  ;;  %p3651_p2 = scmp.lt.u32.totalorder %s4099_s3, %s6321_s1 }
  0x4e   : > { %p3646_p4 = scmp.ne.s32.totalorder %s4099_s3, %s3645_s30  ;;  %p3652_p11 = scmp.lt.u32.totalorder %s3650_s21, %s3645_s30 }
  0x4f   : > { %s6322_s24 = scalar_select %p4111_p10, 1, 0 }
  0x50   : > { %p3648_p12 = pnand %p4111_p10, %p3646_p4  ;;  %p3653_p13 = por %p3652_p11, %p3651_p2 }
  0x51   : > { %p3654_p5 = scmp.lt.u32.totalorder %s3645_s30, %s4099_s3 }
  0x52   : > { %p3649_p0 = pneg %p3648_p12 }
  0x53   : > { %p3655_p9 = por %p3654_p5, %p3653_p13 }
  0x55   : > { %p3656_p3 = pnand %p3655_p9, %p3649_p0 }
  0x57   : > { %3659 = shalt.err (!%p3656_p3)
}
  0x58   : > { %s3660_s27 = scalar_lea.vmem %s4101_s26, 4096  ;;  %s3891_s23 = smov [#allocation5]  }
  0x59   : > { %p3661_p6 = scmp.ne.s32.totalorder %s4101_s26, %s3660_s27  ;;  %s3665_s11 = sshll.u32 %s3891_s23, 4  ;;  %s3666_s11 = int_to_ptr.vmem [resolvable:$false] %s3665_s11 }
  0x5a   : > { %s3667_s12 = scalar_lea.vmem %s3666_s11, 8192  ;;  %p3668_p1 = scmp.lt.s32.totalorder %s4101_s26, %s3666_s11 }
  0x5b   : > { %p3663_p4 = pnand %p3661_p6, %p4111_p10  ;;  %p3669_p7 = scmp.lt.s32.totalorder %s3667_s12, %s3660_s27 }
  0x5d   : > { %p3664_p12 = pneg %p3663_p4  ;;  %p3670_p2 = por %p3669_p7, %p3668_p1 }
  0x5f   : > { %p3671_p11 = pnand %p3670_p2, %p3664_p12 }
  0x61   : > { %3674 = shalt.err (!%p3671_p11)
}
  0x62   : > { %s6323_s30 = smov 8   ;;  %s6324_s21 = smov 128  }
  0x63   : > { %3365 = dma.hbm_to_vmem [thread:$0]  (!%p4084_p8), %s4099_s3, 4096, %s4101_s26, %s4105_s18, %s6324_s21, %s6324_s21, %s6323_s30  }
  0x64   : > { %s3675_s11 = scalar_lea.hbm %s6247_s5, 1024  ;;  %p6325_p7 = scmp.ne.s32.totalorder %s6316_s10, 0 }
  0x65   : > { %p3676_p1 = scmp.ne.s32.totalorder %s6247_s5, %s3675_s11  ;;  %p3682_p5 = scmp.lt.u32.totalorder %s3675_s11, %s6247_s5 }
  0x67   : > { %p3678_p0 = pnand %p3676_p1, %p6325_p7 }
  0x69   : > { %p3679_p13 = pneg %p3678_p0 }
  0x6b   : > { %p3684_p9 = pnand %p3682_p5, %p3679_p13 }
  0x6d   : > { %3687 = shalt.err (!%p3684_p9)
}
  0x6e   : > { %s3688_s9 = scalar_lea.vmem %s352_s17, 1024  ;;  %p3696_p12 = scmp.lt.s32.totalorder %s352_s17, %s352_s17 }
  0x6f   : > { %p3689_p3 = scmp.ne.s32.totalorder %s352_s17, %s3688_s9  ;;  %p3697_p2 = scmp.lt.s32.totalorder %s3688_s9, %s3688_s9 }
  0x71   : > { %p3691_p6 = pnand %p3689_p3, %p6325_p7  ;;  %p3698_p11 = por %p3697_p2, %p3696_p12 }
  0x73   : > { %p3692_p4 = pneg %p3691_p6 }
  0x75   : > { %p3699_p8 = pnand %p3698_p11, %p3692_p4 }
  0x77   : > { %3702 = shalt.err (!%p3699_p8)
}
  0x78   : > { %s3892_s3 = smov 64   ;;  %s3893_s26 = smov 4  }
  0x79   : > { %p6326_p1 = scmp.ne.s32.totalorder %s6313_s28, 0  ;;  %s3894_s29 = smov [#allocation11]  }
  0x7a   : > { %s367_s23 = sshll.u32 %s3894_s29, 4  ;;  %s3136_s11 = sshll.u32 %s4075_s20, 4  ;;  %s368_s23 = int_to_ptr.vmem [resolvable:$true] %s367_s23 }
  0x7b   : > { %3355 = dma.hbm_to_vmem [thread:$0]  (!%p6326_p1), %s6247_s5, 1024, %s352_s17, [#allocation9], %s3892_s3, %s3892_s3, %s3893_s26  }
  0x7c   : > { %s3703_s9 = scalar_lea.hbm %s6249_s7, 1024 }
  0x7d   : > { %p3704_p8 = scmp.ne.s32.totalorder %s6249_s7, %s3703_s9  ;;  %p3710_p5 = scmp.lt.u32.totalorder %s3703_s9, %s6249_s7 }
  0x7f   : > { %p3706_p0 = pnand %p3704_p8, %p6325_p7 }
  0x81   : > { %p3707_p13 = pneg %p3706_p0 }
  0x83   : > { %p3712_p9 = pnand %p3710_p5, %p3707_p13 }
  0x85   : > { %3715 = shalt.err (!%p3712_p9)
}
  0x86   : > { %s3716_s17 = scalar_lea.vmem %s368_s23, 1024  ;;  %p3724_p12 = scmp.lt.s32.totalorder %s368_s23, %s368_s23 }
  0x87   : > { %p3717_p3 = scmp.ne.s32.totalorder %s368_s23, %s3716_s17  ;;  %p3725_p2 = scmp.lt.s32.totalorder %s3716_s17, %s3716_s17 }
  0x89   : > { %p3719_p6 = pnand %p3717_p3, %p6325_p7  ;;  %p3726_p11 = por %p3725_p2, %p3724_p12 }
  0x8b   : > { %p3720_p4 = pneg %p3719_p6 }
  0x8d   : > { %p3727_p10 = pnand %p3726_p11, %p3720_p4 }
  0x8f   : > { %3730 = shalt.err (!%p3727_p10)
}
  0x90   : > { %3358 = dma.hbm_to_vmem [thread:$0]  (!%p6326_p1), %s6249_s7, 1024, %s368_s23, [#allocation12], %s3892_s3, %s3892_s3, %s3893_s26  }
  0x91   : > { %s4180_s10 = scalar_lea.hbm %s6242_s0, %s4080_s13  ;;  %s391_s1 = scalar_lea.vmem [#allocation2], %s3136_s11 }
  0x92   : > { %s404_s15 = sshll.u32 %s391_s1, 4  ;;  %s4184_s28 = scalar_lea.vmem [#allocation7], %s3136_s11  ;;  %s4182_s15 = int_to_ptr.vmem [resolvable:$true] %s404_s15 }
  0x93   : > { %s455_s29 = sshll.u32 %s4184_s28, 4  ;;  %s388_s27 = scalar_lea.sflag [#allocation3], %s4075_s20  ;;  %s4216_s29 = int_to_ptr.vmem [resolvable:$true] %s455_s29 }
  0x94   : > { %s3731_s12 = scalar_lea.hbm %s4180_s10, 256  ;;  %p6327_p7 = scmp.ne.s32.totalorder %s6322_s24, 0 }
  0x95   : > { %p3732_p10 = scmp.ne.s32.totalorder %s4180_s10, %s3731_s12  ;;  %s3736_s23 = scalar_lea.hbm %s6242_s0, 8192 }
  0x96   : > { %p3737_p0 = scmp.lt.u32.totalorder %s4180_s10, %s6242_s0  ;;  %p3738_p13 = scmp.lt.u32.totalorder %s3736_s23, %s3731_s12 }
  0x97   : > { %p3734_p1 = pnand %p3732_p10, %p6327_p7  ;;  %p3740_p9 = scmp.lt.u32.totalorder %s3731_s12, %s4180_s10 }
  0x98   : > { %p3739_p5 = por %p3738_p13, %p3737_p0 }
  0x99   : > { %p3735_p8 = pneg %p3734_p1 }
  0x9a   : > { %p3741_p3 = por %p3740_p9, %p3739_p5 }
  0x9c   : > { %p3742_p6 = pnand %p3741_p3, %p3735_p8 }
  0x9e   : > { %3745 = shalt.err (!%p3742_p6)
}
  0x9f   : > { %s3746_s11 = scalar_lea.vmem %s4182_s15, 256  ;;  %s3895_s6 = smov [#allocation2]  }
  0xa0   : > { %p3747_p4 = scmp.ne.s32.totalorder %s4182_s15, %s3746_s11  ;;  %s3751_s8 = sshll.u32 %s3895_s6, 4  ;;  %s3752_s8 = int_to_ptr.vmem [resolvable:$false] %s3751_s8 }
  0xa1   : > { %s3753_s4 = scalar_lea.vmem %s3752_s8, 512  ;;  %p3754_p11 = scmp.lt.s32.totalorder %s4182_s15, %s3752_s8 }
  0xa2   : > { %p3749_p12 = pnand %p3747_p4, %p6327_p7  ;;  %p3755_p10 = scmp.lt.s32.totalorder %s3753_s4, %s3746_s11 }
  0xa4   : > { %p3750_p2 = pneg %p3749_p12  ;;  %p3756_p1 = por %p3755_p10, %p3754_p11 }
  0xa6   : > { %p3757_p0 = pnand %p3756_p1, %p3750_p2 }
  0xa8   : > { %3760 = shalt.err (!%p3757_p0)
}
  0xa9   : > { %p6328_p8 = scmp.ne.s32.totalorder %s6318_s16, 0  ;;  %s3182_s19 = sadd.s32 3840, %s4080_s13 }
  0xaa   : > { %s4222_s3 = scalar_lea.hbm %s6244_s2, %s3182_s19 }
  0xab   : > { %3362 = dma.hbm_to_vmem [thread:$0]  (!%p6328_p8), %s4180_s10, 256, %s4182_s15, %s388_s27, %s6324_s21, %s6324_s21, %s6323_s30  }
  0xac   : > { %s3761_s20 = scalar_lea.hbm %s4222_s3, 256  ;;  %s3766_s15 = scalar_lea.hbm %s6244_s2, 8192 }
  0xad   : > { %p3762_p13 = scmp.ne.s32.totalorder %s4222_s3, %s3761_s20  ;;  %p3767_p3 = scmp.lt.u32.totalorder %s4222_s3, %s6244_s2 }
  0xae   : > { %p3768_p6 = scmp.lt.u32.totalorder %s3766_s15, %s3761_s20  ;;  %p3770_p12 = scmp.lt.u32.totalorder %s3761_s20, %s4222_s3 }
  0xaf   : > { %p3764_p5 = pnand %p3762_p13, %p6327_p7 }
  0xb0   : > { %p3769_p4 = por %p3768_p6, %p3767_p3 }
  0xb1   : > { %p3765_p9 = pneg %p3764_p5 }
  0xb2   : > { %p3771_p2 = por %p3770_p12, %p3769_p4 }
  0xb4   : > { %p3772_p11 = pnand %p3771_p2, %p3765_p9 }
  0xb6   : > { %3775 = shalt.err (!%p3772_p11)
}
  0xb7   : > { %s3776_s27 = scalar_lea.vmem %s4216_s29, 256  ;;  %s3896_s23 = smov [#allocation7]  }
  0xb8   : > { %p3777_p10 = scmp.ne.s32.totalorder %s4216_s29, %s3776_s27  ;;  %s3781_s9 = sshll.u32 %s3896_s23, 4  ;;  %s3782_s9 = int_to_ptr.vmem [resolvable:$false] %s3781_s9 }
  0xb9   : > { %s3783_s17 = scalar_lea.vmem %s3782_s9, 512  ;;  %p3784_p13 = scmp.lt.s32.totalorder %s4216_s29, %s3782_s9 }
  0xba   : > { %p3779_p1 = pnand %p3777_p10, %p6327_p7  ;;  %p3785_p5 = scmp.lt.s32.totalorder %s3783_s17, %s3776_s27 }
  0xbc   : > { %p3780_p0 = pneg %p3779_p1  ;;  %p3786_p3 = por %p3785_p5, %p3784_p13 }
  0xbe   : > { %p3787_p6 = pnand %p3786_p3, %p3780_p0 }
  0xc0   : > { %3790 = shalt.err (!%p3787_p6)
}
  0xc1   : > { %3368 = dma.hbm_to_vmem [thread:$0]  (!%p6328_p8), %s4222_s3, 256, %s4216_s29, %s4105_s18, %s6324_s21, %s6324_s21, %s6323_s30  }
  0xc2   : > { %p6329_p7 = scmp.ne.s32.totalorder %s6312_s25, 0 }
  0xc4   : > { %467 = sbr.rel (%p6329_p7) target bundleno = 989 (0x3dd), region = 60 }
  0xcb   : > { %s4252_s24 = sand.u32 1, %s3869_s14   ;;  %p6330_p9 = scmp.ne.s32.totalorder %s6307_s22, 0 }
  0xcc   : > { %s3146_s11 = sshll.u32 %s4252_s24, 4  ;;  %s470_s6 = scalar_lea.sflag [#allocation3], %s4252_s24 }
  0xcd   : > { %s4256_s8 = scalar_lea.vmem [#allocation2], %s3146_s11 }
  0xce   : > { %3844 = dma.done.wait (%p6330_p9), %s470_s6, 256  }
  0xcf   : > { %3846 = vsyncadd (%p6330_p9), %s470_s6, 4294967040  ;;  %s6331_s16 = sld [smem:[#allocation24_spill]]  ;;  %s3147_s25 = sshll.u32 %s4252_s24, 8 }
  0xd0   : > { %s4266_s21 = scalar_lea.vmem [#allocation5], %s3147_s25 }
  0xd5   : > { %s478_s18 = sand.u32 1, %s6331_s16  }
  0xd6   : > { %s479_s30 = scalar_lea.sflag [#allocation6], %s478_s18 }
  0xd7   : > { %3848 = dma.done.wait (%p6330_p9), %s479_s30, 4352  }
  0xd8   : > { %3850 = vsyncadd (%p6330_p9), %s479_s30, 4294962944  ;;  %s4272_s29 = scalar_lea.vmem [#allocation7], %s3146_s11  ;;  %p6332_p8 = scmp.eq.s32.totalorder %s6331_s16, 0 }
  0xda   : > { %3852 = dma.done.wait (%p6332_p8), [#allocation9], 1280   ;;  %p6333_p4 = pmov %p6332_p8 }
  0xdc   : > { %3854 = vsyncadd (%p6333_p4), [#allocation9], 4294966016  ;;  %p6334_p12 = pmov %p6333_p4 }
  0xdd   : > { %p6335_p2 = pmov %p6333_p4 }
  0xde   : > { %3856 = dma.done.wait (%p6334_p12), [#allocation12], 1024  }
  0xdf   : > { %3858 = vsyncadd (%p6335_p2), [#allocation12], 4294966272  ;;  %v865_v0 = vlaneseq  ;;  %v3438_v1 = vld [vmem:[#allocation10] sm:$0xff]   ;;  %v3439_v2 = vld [vmem:[#allocation10 + $0x8] sm:$0xff]   ;;  %vm645_vm0 = vcmask 1040384   ;;  %vm754_vm1 = vcmask 1046528  }
  0xe0   : > { %3233 = vmatprep.subr.bf16.mxu0 %v3438_v1  ;;  %v3440_v4 = vld [vmem:[#allocation10 + $0x10] sm:$0xff]   ;;  %v3441_v9 = vld [vmem:[#allocation10 + $0x18] sm:$0xff]   ;;  %v4296_v13 = vld [vmem:[%s4266_s21 + $0x10] sm:$0xff]  ;;  %s6336_s19 = sld [smem:[#allocation49_spill]]  ;;  %s6337_s26 = sld [smem:[#allocation50_spill]] }
  0xe1   : > { %v4282_v3 = vshrl.u32 %v865_v0, 7  ;;  %3234 = vmatpush3.bf16.msra.mxu0 %v3438_v1  ;;  %v4290_v11 = vld [vmem:[%s4266_s21] sm:$0xff]  ;;  %v4293_v12 = vld [vmem:[%s4266_s21 + $0x8] sm:$0xff]  ;;  %v4302_v17 = vld [vmem:[%s4266_s21 + $0x18] sm:$0xff]  ;;  %v652_v22 = vrot.slane %v4296_v13, 7  ;;  %v761_v44 = vrot.slane %v4296_v13, 1 }
  0xe2   : > { %3235 = vmatprep.subr.bf16.mxu0 %v3439_v2  ;;  %v4305_v18 = vld [vmem:[%s4266_s21 + $0x20] sm:$0xff]  ;;  %v4308_v19 = vld [vmem:[%s4266_s21 + $0x28] sm:$0xff]  ;;  %v649_v20 = vrot.slane %v4290_v11, 7  ;;  %v650_v21 = vrot.slane %v4293_v12, 7  ;;  %v653_v25 = vrot.slane %v4302_v17, 7  ;;  %v758_v28 = vrot.slane %v4290_v11, 1 }
  0xe3   : > { %v867_v5 = vsub.s32 0, %v4282_v3  ;;  %v903_v6 = vsub.s32 1, %v4282_v3  ;;  %v971_v7 = vsub.s32 2, %v4282_v3  ;;  %v1039_v8 = vsub.s32 3, %v4282_v3  ;;  %v593_v23 = vld [vmem:[%s4256_s8] sm:$0xff]  ;;  %v594_v24 = vld [vmem:[%s4256_s8 + $0x8] sm:$0xff] }
  0xe4   : > { %v1107_v10 = vsub.s32 4, %v4282_v3  ;;  %v1175_v14 = vsub.s32 5, %v4282_v3  ;;  %v1243_v15 = vsub.s32 6, %v4282_v3  ;;  %v1311_v16 = vsub.s32 7, %v4282_v3  ;;  %v4325_v33 = vld [vmem:[#allocation8] sm:$0xff]  ;;  %v3442_v34 = vld [vmem:[#allocation10 + $0x20] sm:$0xff]  }
  0xe5   : > { %3236 = vmatpush3.bf16.msra.mxu0 %v3439_v2  ;;  %v655_v26 = vrot.slane %v4305_v18, 7  ;;  %v656_v27 = vrot.slane %v4308_v19, 7  ;;  %v599_v29 = vmul.f32 0.0, %v593_v23  ;;  %v600_v30 = vmul.f32 0.0, %v594_v24  ;;  %v3443_v51 = vld [vmem:[#allocation10 + $0x28] sm:$0xff]   ;;  %v3444_v0 = vld [vmem:[#allocation10 + $0x30] sm:$0xff]  }
  0xe6   : > { %3237 = vmatprep.subr.bf16.mxu0 %v3440_v4  ;;  %v4320_v31 = vsel %vm645_vm0, %v649_v20, %v650_v21  ;;  %v4323_v32 = vsel %vm645_vm0, 0.0, %v649_v20  ;;  %v4328_v35 = vsel %vm645_vm0, %v652_v22, %v653_v25  ;;  %v4334_v37 = vsel %vm645_vm0, 0.0, %v652_v22  ;;  %s6375_s27 = sld [smem:[#allocation51_spill]]  ;;  %s6376_s17 = sld [smem:[#allocation52_spill]] }
  0xe7   : > { %v4331_v36 = vsel %vm645_vm0, %v655_v26, %v656_v27  ;;  %v4337_v38 = vsel %vm645_vm0, 0.0, %v655_v26  ;;  %v646_v39 = vrot.slane %v599_v29, 7  ;;  %v647_v40 = vrot.slane %v600_v30, 7  ;;  %s6066_s11 = scalar_lea.vmem [#allocation13], %s3147_s25  ;;  %s6377_s6 = sld [smem:[#allocation21_spill]] }
  0xe8   : > { %v755_v41 = vrot.slane %v599_v29, 1  ;;  %v756_v42 = vrot.slane %v600_v30, 1  ;;  %v759_v43 = vrot.slane %v4293_v12, 1  ;;  %v762_v45 = vrot.slane %v4302_v17, 1  ;;  %s2964_s16 = sshll.u32 %s6066_s11, 4  ;;  %s6378_s18 = sld [smem:[#allocation25_spill]]  ;;  %s6189_s16 = int_to_ptr.vmem [resolvable:$true] %s2964_s16 }
  0xe9   : > { %3238 = vmatpush3.bf16.msra.mxu0 %v3440_v4  ;;  %v4343_v46 = vrot.slane %v4325_v33, %v867_v5  ;;  %v648_v47 = vsel %vm645_vm0, %v646_v39, %v647_v40  ;;  %v736_v48 = vsel %vm645_vm0, 0.0, %v646_v39  ;;  %v4372_v62 = vrot.slane %v4325_v33, %v903_v6  ;;  %s2948_s4 = scalar_lea.sflag [#allocation4], %s4252_s24  ;;  %s3791_s1 = scalar_lea.vmem %s6189_s16, 4096 }
  0xea   : > { %3239 = vmatprep.subr.bf16.mxu0 %v3441_v9  ;;  %v757_v49 = vsel %vm754_vm1, %v755_v41, %v756_v42  ;;  %v845_v50 = vsel %vm754_vm1, %v756_v42, 0.0  ;;  %v4350_v52 = vsel %vm754_vm1, %v758_v28, %v759_v43  ;;  %v4353_v53 = vsel %vm754_vm1, %v761_v44, %v762_v45  ;;  %p3792_p11 = scmp.ne.s32.totalorder %s6189_s16, %s3791_s1  ;;  %s3897_s12 = smov [#allocation13]  }
  0xeb   : > { %v4356_v54 = vsel %vm754_vm1, %v759_v43, 0.0  ;;  %v4359_v55 = vsel %vm754_vm1, %v762_v45, 0.0  ;;  %v869_v56 = vmul.f32 %v4343_v46, %v736_v48  ;;  %v870_v57 = vmul.f32 %v4343_v46, %v648_v47  ;;  %s3795_s3 = sshll.u32 %s3897_s12, 4  ;;  %s3796_s3 = int_to_ptr.vmem [resolvable:$false] %s3795_s3 }
  0xec   : > { %v871_v58 = vmul.f32 %v4343_v46, %v4323_v32  ;;  %v872_v59 = vmul.f32 %v4343_v46, %v4320_v31  ;;  %v873_v60 = vmul.f32 %v4343_v46, %v4334_v37  ;;  %v874_v61 = vmul.f32 %v4343_v46, %v4328_v35  ;;  %s3797_s20 = scalar_lea.vmem %s3796_s3, 8192  ;;  %p3798_p13 = scmp.lt.s32.totalorder %s6189_s16, %s3796_s3 }
  0xed   : > { %3240 = vmatpush3.bf16.msra.mxu0 %v3441_v9  ;;  %v4375_v63 = vrot.slane %v4325_v33, %v971_v7  ;;  %v4380_v1 = vrot.slane %v4325_v33, %v1039_v8  ;;  %v4383_v2 = vrot.slane %v4325_v33, %v1107_v10  ;;  %v4386_v4 = vrot.slane %v4325_v33, %v1175_v14  ;;  %s3183_s8 = sshll.u32 %s6377_s6, 12  ;;  %p3799_p5 = scmp.lt.s32.totalorder %s3797_s20, %s3791_s1 }
  0xee   : > { %3241 = vmatprep.subr.bf16.mxu0 %v3442_v34  ;;  %v4389_v5 = vrot.slane %v4325_v33, %v1243_v15  ;;  %v905_v6 = vmul.f32 %v4372_v62, %v599_v29  ;;  %v906_v7 = vmul.f32 %v4372_v62, %v600_v30  ;;  %v907_v9 = vmul.f32 %v4372_v62, %v4290_v11  ;;  %v3445_v29 = vld [vmem:[#allocation10 + $0x38] sm:$0xff]   ;;  %p6380_p10 = scmp.ne.s32.totalorder %s6378_s18, 0 }
  0xef   : > { %v908_v8 = vmul.f32 %v4372_v62, %v4293_v12  ;;  %v909_v10 = vmul.f32 %v4372_v62, %v4296_v13  ;;  %v910_v14 = vmul.f32 %v4372_v62, %v4302_v17  ;;  %v973_v15 = vmul.f32 %v4375_v63, %v757_v49  ;;  %p3800_p3 = por %p3799_p5, %p3798_p13 }
  0xf0   : > { %v974_v20 = vmul.f32 %v4375_v63, %v845_v50  ;;  %v937_v21 = vadd.f32 %v905_v6, %v869_v56  ;;  %v938_v22 = vadd.f32 %v906_v7, %v870_v57  ;;  %v939_v23 = vadd.f32 %v907_v9, %v871_v58  ;;  %v4435_v7 = vld [vmem:[#allocation8 + $0x8] ss:$0 sm:$0xff]  ;;  %p3793_p1 = pnand %p3792_p11, %p6380_p10 }
  0xf1   : > { %3242 = vmatpush3.bf16.msra.mxu0 %v3442_v34  ;;  %v940_v24 = vadd.f32 %v908_v8, %v872_v59  ;;  %v941_v25 = vadd.f32 %v909_v10, %v873_v60  ;;  %v942_v26 = vadd.f32 %v910_v14, %v874_v61  ;;  %v975_v27 = vmul.f32 %v4375_v63, %v4350_v52 }
  0xf2   : > { %3243 = vmatprep.subr.bf16.mxu0 %v3443_v51  ;;  %v976_v28 = vmul.f32 %v4375_v63, %v4356_v54  ;;  %v977_v30 = vmul.f32 %v4375_v63, %v4353_v53  ;;  %v978_v34 = vmul.f32 %v4375_v63, %v4359_v55  ;;  %v1005_v39 = vadd.f32 %v973_v15, %v937_v21  ;;  %p3794_p0 = pneg %p3793_p1 }
  0xf3   : > { %v1006_v40 = vadd.f32 %v974_v20, %v938_v22  ;;  %v1007_v41 = vadd.f32 %v975_v27, %v939_v23  ;;  %v1041_v43 = vmul.f32 %v4380_v1, %v4323_v32  ;;  %v1042_v44 = vmul.f32 %v4380_v1, %v4320_v31 }
  0xf4   : > { %v1008_v42 = vadd.f32 %v976_v28, %v940_v24  ;;  %v1009_v45 = vadd.f32 %v977_v30, %v941_v25  ;;  %v1010_v47 = vadd.f32 %v978_v34, %v942_v26  ;;  %v1043_v48 = vmul.f32 %v4380_v1, %v4334_v37  ;;  %p3801_p6 = pnand %p3800_p3, %p3794_p0 }
  0xf5   : > { %3244 = vmatpush3.bf16.msra.mxu0 %v3443_v51  ;;  %v1044_v49 = vmul.f32 %v4380_v1, %v4328_v35  ;;  %v1045_v50 = vmul.f32 %v4380_v1, %v4337_v38  ;;  %v1046_v51 = vmul.f32 %v4380_v1, %v4331_v36  ;;  %v1073_v56 = vadd.f32 %v1041_v43, %v1005_v39 }
  0xf6   : > { %3245 = vmatprep.subr.bf16.mxu0 %v3444_v0  ;;  %v1074_v32 = vadd.f32 %v1042_v44, %v1006_v40  ;;  %v1075_v57 = vadd.f32 %v1043_v48, %v1007_v41  ;;  %v1109_v58 = vmul.f32 %v4383_v2, %v4290_v11  ;;  %v1110_v59 = vmul.f32 %v4383_v2, %v4293_v12  ;;  %v4479_v41 = vld [vmem:[%s6336_s19] ss:$0 sm:$0xff] }
  0xf7   : > { %v1076_v31 = vadd.f32 %v1044_v49, %v1008_v42  ;;  %v4427_v60 = vadd.f32 %v1045_v50, %v1009_v45  ;;  %v4429_v61 = vadd.f32 %v1046_v51, %v1010_v47  ;;  %v1112_v6 = vmul.f32 %v4383_v2, %v4302_v17  ;;  %v4486_v50 = vld [vmem:[%s4266_s21 + $0x30] sm:$0xff] }
  0xf8   : > { %v1141_v9 = vadd.f32 %v1109_v58, %v1073_v56  ;;  %v1142_v8 = vadd.f32 %v1110_v59, %v1074_v32  ;;  %v1177_v11 = vmul.f32 %v4386_v4, %v4350_v52  ;;  %v1178_v12 = vmul.f32 %v4386_v4, %v4356_v54 }
  0xf9   : > { %3246 = vmatpush3.bf16.msra.mxu0 %v3444_v0  ;;  %v1111_v0 = vmul.f32 %v4383_v2, %v4296_v13  ;;  %v1144_v14 = vadd.f32 %v1112_v6, %v1076_v31  ;;  %v1179_v15 = vmul.f32 %v4386_v4, %v4353_v53  ;;  %v1180_v20 = vmul.f32 %v4386_v4, %v4359_v55  ;;  %v4495_v31 = vld [vmem:[%s4266_s21 + $0x38] sm:$0xff] }
  0xfa   : > { %3247 = vmatprep.subr.bf16.mxu0 %v3445_v29  ;;  %v1209_v21 = vadd.f32 %v1177_v11, %v1141_v9  ;;  %v1210_v22 = vadd.f32 %v1178_v12, %v1142_v8  ;;  %v1245_v23 = vmul.f32 %v4389_v5, %v4334_v37  ;;  %v1246_v52 = vmul.f32 %v4389_v5, %v4328_v35 }
  0xfb   : > { %v1143_v10 = vadd.f32 %v1111_v0, %v1075_v57  ;;  %v1212_v25 = vadd.f32 %v1180_v20, %v1144_v14  ;;  %v4452_v54 = vrot.slane %v4325_v33, %v1311_v16  ;;  %v1381_v26 = vmul.f32 %v4435_v7, %v4353_v53 }
  0xfc   : > { %v1277_v27 = vadd.f32 %v1245_v23, %v1209_v21  ;;  %v1278_v28 = vadd.f32 %v1246_v52, %v1210_v22  ;;  %v764_v37 = vrot.slane %v4305_v18, 1  ;;  %v765_v3 = vrot.slane %v4308_v19, 1 }
  0xfd   : > { %3248 = vmatpush3.bf16.msra.mxu0 %v3445_v29  ;;  %v1211_v24 = vadd.f32 %v1179_v15, %v1143_v10  ;;  %v1382_v29 = vmul.f32 %v4435_v7, %v4359_v55  ;;  %v1313_v35 = vmul.f32 %v4452_v54, %v4296_v13  ;;  %v1314_v30 = vmul.f32 %v4452_v54, %v4302_v17 }
  0xfe   : > { %v875_v16 = vmul.f32 %v4343_v46, %v4337_v38  ;;  %v876_v33 = vmul.f32 %v4343_v46, %v4331_v36  ;;  %v911_v53 = vmul.f32 %v4372_v62, %v4305_v18  ;;  %v912_v55 = vmul.f32 %v4372_v62, %v4308_v19 }
  0xff   : > { %v1247_v13 = vmul.f32 %v4389_v5, %v4337_v38  ;;  %v1345_v34 = vadd.f32 %v1313_v35, %v1277_v27  ;;  %v1346_v17 = vadd.f32 %v1314_v30, %v1278_v28  ;;  %v766_v39 = vsel %vm754_vm1, %v764_v37, %v765_v3 }
 0x100   : > { %v848_v40 = vsel %vm754_vm1, %v765_v3, 0.0  ;;  %v943_v42 = vadd.f32 %v911_v53, %v875_v16  ;;  %v944_v43 = vadd.f32 %v912_v55, %v876_v33  ;;  %v979_v44 = vmul.f32 %v4375_v63, %v766_v39 }
 0x101   : > { %v980_v45 = vmul.f32 %v4375_v63, %v848_v40  ;;  %v1413_v47 = vadd.f32 %v1381_v26, %v1345_v34  ;;  %v1414_v38 = vadd.f32 %v1382_v29, %v1346_v17  ;;  %v1181_v48 = vmul.f32 %v4386_v4, %v766_v39 }
 0x102   : > { %v1182_v49 = vmul.f32 %v4386_v4, %v848_v40  ;;  %v4488_v51 = vadd.f32 %v979_v44, %v943_v42  ;;  %v1248_v32 = vmul.f32 %v4389_v5, %v4331_v36  ;;  %v1279_v57 = vadd.f32 %v1247_v13, %v1211_v24  ;;  %v4533_v42 = vld [vmem:[%s4266_s21 + $0x40] sm:$0xff] }
 0x103   : > { %v4490_v56 = vadd.f32 %v980_v45, %v944_v43  ;;  %v1452_v58 = vadd.f32 %v4479_v41, %v1413_v47  ;;  %v1453_v59 = vadd.f32 %v4479_v41, %v1414_v38  ;;  %v1315_v0 = vmul.f32 %v4452_v54, %v4305_v18  ;;  %v4540_v38 = vld [vmem:[%s4266_s21 + $0x48] sm:$0xff] }
 0x104   : > { %v1316_v6 = vmul.f32 %v4452_v54, %v4308_v19  ;;  %v1280_v9 = vadd.f32 %v1248_v32, %v1212_v25  ;;  %v1383_v8 = vmul.f32 %v4435_v7, %v766_v39  ;;  %v1384_v11 = vmul.f32 %v4435_v7, %v848_v40 }
 0x105   : > { %v658_v36 = vrot.slane %v4486_v50, 7  ;;  %v1484_v12 = vpack.c.bf16 %v1453_v59, %v1452_v58  ;;  %v1347_v10 = vadd.f32 %v1315_v0, %v1279_v57  ;;  %v659_v14 = vrot.slane %v4495_v31, 7 }
 0x106   : > { %v767_v15 = vrot.slane %v4486_v50, 1  ;;  %v1348_v20 = vadd.f32 %v1316_v6, %v1280_v9  ;;  %v768_v22 = vrot.slane %v4495_v31, 1  ;;  %v913_v23 = vmul.f32 %v4372_v62, %v4486_v50 }
 0x107   : > { %v740_v21 = vsel %vm645_vm0, 0.0, %v658_v36  ;;  %3249 = vmatprep.mubr.bf16.mxu0 %v1484_v12  ;;  %v1415_v52 = vadd.f32 %v1383_v8, %v1347_v10  ;;  %v660_v24 = vsel %vm645_vm0, %v658_v36, %v659_v14  ;;  %v914_v26 = vmul.f32 %v4372_v62, %v4495_v31 }
 0x108   : > { %v877_v25 = vmul.f32 %v4343_v46, %v740_v21  ;;  %v1416_v27 = vadd.f32 %v1384_v11, %v1348_v20  ;;  %v769_v28 = vsel %vm754_vm1, %v767_v15, %v768_v22  ;;  %v849_v29 = vsel %vm754_vm1, %v768_v22, 0.0 }
 0x109   : > { %v878_v37 = vmul.f32 %v4343_v46, %v660_v24  ;;  %v1454_v35 = vadd.f32 %v4479_v41, %v1415_v52  ;;  %v981_v3 = vmul.f32 %v4375_v63, %v769_v28  ;;  %v982_v16 = vmul.f32 %v4375_v63, %v849_v29 }
 0x10a   : > { %v945_v30 = vadd.f32 %v913_v23, %v877_v25  ;;  %v1455_v33 = vadd.f32 %v4479_v41, %v1416_v27  ;;  %v1047_v55 = vmul.f32 %v4380_v1, %v740_v21  ;;  %v1048_v13 = vmul.f32 %v4380_v1, %v660_v24 }
 0x10b   : > { %v946_v53 = vadd.f32 %v914_v26, %v878_v37  ;;  %v1113_v17 = vmul.f32 %v4383_v2, %v4305_v18  ;;  %v1114_v39 = vmul.f32 %v4383_v2, %v4308_v19  ;;  %v1183_v40 = vmul.f32 %v4386_v4, %v769_v28 }
 0x10c   : > { %v4525_v34 = vadd.f32 %v981_v3, %v945_v30  ;;  %v1485_v43 = vpack.c.bf16 %v1455_v33, %v1454_v35  ;;  %v1184_v45 = vmul.f32 %v4386_v4, %v849_v29  ;;  %v1249_v47 = vmul.f32 %v4389_v5, %v740_v21 }
 0x10d   : > { %v4535_v44 = vadd.f32 %v982_v16, %v946_v53  ;;  %v1145_v32 = vadd.f32 %v1113_v17, %v4427_v60  ;;  %v1146_v18 = vadd.f32 %v1114_v39, %v4429_v61  ;;  %v1250_v57 = vmul.f32 %v4389_v5, %v660_v24 }
 0x10e   : > { %v1317_v19 = vmul.f32 %v4452_v54, %v4486_v50  ;;  %3250 = vmatmul.mubr.bf16.vlgmr.msra.gmra.mrb[0].mxu0 %v1485_v43  ;;  %v1318_v58 = vmul.f32 %v4452_v54, %v4495_v31  ;;  %v1385_v59 = vmul.f32 %v4435_v7, %v769_v28  ;;  %v1386_v0 = vmul.f32 %v4435_v7, %v849_v29 }
 0x10f   : > { %v661_v6 = vrot.slane %v4533_v42, 7  ;;  %v1213_v9 = vadd.f32 %v1181_v48, %v1145_v32  ;;  %v1214_v8 = vadd.f32 %v1182_v49, %v1146_v18  ;;  %v662_v60 = vrot.slane %v4540_v38, 7  ;;  %v4585_v32 = vld [vmem:[%s4266_s21 + $0x50] sm:$0xff] }
 0x110   : > { %v770_v61 = vrot.slane %v4533_v42, 1  ;;  %v771_v36 = vrot.slane %v4540_v38, 1  ;;  %v915_v12 = vmul.f32 %v4372_v62, %v4533_v42  ;;  %v916_v10 = vmul.f32 %v4372_v62, %v4540_v38 }
 0x111   : > { %v741_v11 = vsel %vm645_vm0, 0.0, %v661_v6  ;;  %v1281_v14 = vadd.f32 %v1249_v47, %v1213_v9  ;;  %v1282_v15 = vadd.f32 %v1250_v57, %v1214_v8  ;;  %v663_v20 = vsel %vm645_vm0, %v661_v6, %v662_v60 }
 0x112   : > { %v879_v48 = vmul.f32 %v4343_v46, %v741_v11  ;;  %v772_v49 = vsel %vm754_vm1, %v770_v61, %v771_v36  ;;  %v850_v21 = vsel %vm754_vm1, %v771_v36, 0.0  ;;  %v880_v22 = vmul.f32 %v4343_v46, %v663_v20 }
 0x113   : > { %v1049_v23 = vmul.f32 %v4380_v1, %v741_v11  ;;  %v1349_v52 = vadd.f32 %v1317_v19, %v1281_v14  ;;  %v1350_v24 = vadd.f32 %v1318_v58, %v1282_v15  ;;  %v983_v26 = vmul.f32 %v4375_v63, %v772_v49 }
 0x114   : > { %v947_v25 = vadd.f32 %v915_v12, %v879_v48  ;;  %v948_v27 = vadd.f32 %v916_v10, %v880_v22  ;;  %v984_v28 = vmul.f32 %v4375_v63, %v850_v21  ;;  %v1050_v29 = vmul.f32 %v4380_v1, %v663_v20 }
 0x115   : > { %v1079_v37 = vadd.f32 %v1047_v55, %v4488_v51  ;;  %v1417_v35 = vadd.f32 %v1385_v59, %v1349_v52  ;;  %v1418_v30 = vadd.f32 %v1386_v0, %v1350_v24  ;;  %v1080_v16 = vadd.f32 %v1048_v13, %v4490_v56  ;;  %v4588_v56 = vld [vmem:[%s4266_s21 + $0x58] sm:$0xff] }
 0x116   : > { %v4570_v3 = vadd.f32 %v983_v26, %v947_v25  ;;  %v4573_v33 = vadd.f32 %v984_v28, %v948_v27  ;;  %v1115_v53 = vmul.f32 %v4383_v2, %v4486_v50  ;;  %v1116_v17 = vmul.f32 %v4383_v2, %v4495_v31 }
 0x117   : > { %v1185_v39 = vmul.f32 %v4386_v4, %v772_v49  ;;  %v1456_v43 = vadd.f32 %v4479_v41, %v1417_v35  ;;  %v1457_v51 = vadd.f32 %v4479_v41, %v1418_v30  ;;  %v1186_v55 = vmul.f32 %v4386_v4, %v850_v21 }
 0x118   : > { %v1251_v47 = vmul.f32 %v4389_v5, %v741_v11  ;;  %v1147_v13 = vadd.f32 %v1115_v53, %v1079_v37  ;;  %v1148_v18 = vadd.f32 %v1116_v17, %v1080_v16  ;;  %v1252_v50 = vmul.f32 %v4389_v5, %v663_v20 }
 0x119   : > { %v1319_v31 = vmul.f32 %v4452_v54, %v4533_v42  ;;  %v1486_v57 = vpack.c.bf16 %v1457_v51, %v1456_v43  ;;  %v1320_v19 = vmul.f32 %v4452_v54, %v4540_v38  ;;  %v1387_v58 = vmul.f32 %v4435_v7, %v772_v49 }
 0x11a   : > { %v1388_v59 = vmul.f32 %v4435_v7, %v850_v21  ;;  %v1215_v0 = vadd.f32 %v1183_v40, %v1147_v13  ;;  %v1216_v6 = vadd.f32 %v1184_v45, %v1148_v18  ;;  %v664_v9 = vrot.slane %v4585_v32, 7 }
 0x11b   : > { %v665_v8 = vrot.slane %v4588_v56, 7  ;;  %3253 = vmatprep.mubr.bf16.mxu0 %v1486_v57  ;;  %v773_v60 = vrot.slane %v4585_v32, 1  ;;  %v774_v61 = vrot.slane %v4588_v56, 1  ;;  %v917_v11 = vmul.f32 %v4372_v62, %v4585_v32 }
 0x11c   : > { %v918_v36 = vmul.f32 %v4372_v62, %v4588_v56  ;;  %v1283_v12 = vadd.f32 %v1251_v47, %v1215_v0  ;;  %v1284_v10 = vadd.f32 %v1252_v50, %v1216_v6  ;;  %v742_v45 = vsel %vm645_vm0, 0.0, %v664_v9 }
 0x11d   : > { %v666_v40 = vsel %vm645_vm0, %v664_v9, %v665_v8  ;;  %v775_v14 = vsel %vm754_vm1, %v773_v60, %v774_v61  ;;  %v851_v15 = vsel %vm754_vm1, %v774_v61, 0.0  ;;  %v881_v20 = vmul.f32 %v4343_v46, %v742_v45 }
 0x11e   : > { %v882_v48 = vmul.f32 %v4343_v46, %v666_v40  ;;  %v1351_v49 = vadd.f32 %v1319_v31, %v1283_v12  ;;  %v1352_v21 = vadd.f32 %v1320_v19, %v1284_v10  ;;  %v985_v22 = vmul.f32 %v4375_v63, %v775_v14 }
 0x11f   : > { %v986_v52 = vmul.f32 %v4375_v63, %v851_v15  ;;  %v949_v24 = vadd.f32 %v917_v11, %v881_v20  ;;  %v1051_v26 = vmul.f32 %v4380_v1, %v742_v45  ;;  %v1052_v27 = vmul.f32 %v4380_v1, %v666_v40 }
 0x120   : > { %v950_v25 = vadd.f32 %v918_v36, %v882_v48  ;;  %v1419_v28 = vadd.f32 %v1387_v58, %v1351_v49  ;;  %v1420_v37 = vadd.f32 %v1388_v59, %v1352_v21  ;;  %v1081_v35 = vadd.f32 %v1049_v23, %v4525_v34  ;;  %v4630_v23 = vld [vmem:[%s4266_s21 + $0x60] sm:$0xff] }
 0x121   : > { %v1082_v30 = vadd.f32 %v1050_v29, %v4535_v44  ;;  %v4617_v16 = vadd.f32 %v985_v22, %v949_v24  ;;  %v1117_v17 = vmul.f32 %v4383_v2, %v4533_v42  ;;  %v1118_v43 = vmul.f32 %v4383_v2, %v4540_v38  ;;  %v4635_v42 = vld [vmem:[%s4266_s21 + $0x68] sm:$0xff] }
 0x122   : > { %v4619_v53 = vadd.f32 %v986_v52, %v950_v25  ;;  %v1458_v51 = vadd.f32 %v4479_v41, %v1419_v28  ;;  %v1459_v47 = vadd.f32 %v4479_v41, %v1420_v37  ;;  %v1187_v13 = vmul.f32 %v4386_v4, %v775_v14 }
 0x123   : > { %v1188_v34 = vmul.f32 %v4386_v4, %v851_v15  ;;  %v1149_v44 = vadd.f32 %v1117_v17, %v1081_v35  ;;  %v1150_v29 = vadd.f32 %v1118_v43, %v1082_v30  ;;  %v1253_v18 = vmul.f32 %v4389_v5, %v742_v45 }
 0x124   : > { %v1254_v50 = vmul.f32 %v4389_v5, %v666_v40  ;;  %v1487_v31 = vpack.c.bf16 %v1459_v47, %v1458_v51  ;;  %v1321_v38 = vmul.f32 %v4452_v54, %v4585_v32  ;;  %v1322_v57 = vmul.f32 %v4452_v54, %v4588_v56 }
 0x125   : > { %v1389_v19 = vmul.f32 %v4435_v7, %v775_v14  ;;  %v1217_v58 = vadd.f32 %v1185_v39, %v1149_v44  ;;  %v1218_v59 = vadd.f32 %v1186_v55, %v1150_v29  ;;  %v1390_v0 = vmul.f32 %v4435_v7, %v851_v15 }
 0x126   : > { %v667_v6 = vrot.slane %v4630_v23, 7  ;;  %3254 = vmatmul.mubr.bf16.gmra.mrb[4].mxu0 %v1487_v31  ;;  %v668_v9 = vrot.slane %v4635_v42, 7  ;;  %v776_v8 = vrot.slane %v4630_v23, 1  ;;  %v777_v60 = vrot.slane %v4635_v42, 1 }
 0x127   : > { %v919_v61 = vmul.f32 %v4372_v62, %v4630_v23  ;;  %v1285_v11 = vadd.f32 %v1253_v18, %v1217_v58  ;;  %v1286_v36 = vadd.f32 %v1254_v50, %v1218_v59  ;;  %v920_v39 = vmul.f32 %v4372_v62, %v4635_v42 }
 0x128   : > { %v743_v12 = vsel %vm645_vm0, 0.0, %v667_v6  ;;  %v669_v55 = vsel %vm645_vm0, %v667_v6, %v668_v9  ;;  %v778_v10 = vsel %vm754_vm1, %v776_v8, %v777_v60  ;;  %v852_v40 = vsel %vm754_vm1, %v777_v60, 0.0 }
 0x129   : > { %v883_v45 = vmul.f32 %v4343_v46, %v743_v12  ;;  %v1353_v14 = vadd.f32 %v1321_v38, %v1285_v11  ;;  %v1354_v15 = vadd.f32 %v1322_v57, %v1286_v36  ;;  %v884_v20 = vmul.f32 %v4343_v46, %v669_v55 }
 0x12a   : > { %v987_v48 = vmul.f32 %v4375_v63, %v778_v10  ;;  %v988_v21 = vmul.f32 %v4375_v63, %v852_v40  ;;  %v1053_v22 = vmul.f32 %v4380_v1, %v743_v12  ;;  %v1054_v52 = vmul.f32 %v4380_v1, %v669_v55 }
 0x12b   : > { %v951_v49 = vadd.f32 %v919_v61, %v883_v45  ;;  %v1421_v24 = vadd.f32 %v1389_v19, %v1353_v14  ;;  %v1422_v25 = vadd.f32 %v1390_v0, %v1354_v15  ;;  %v952_v28 = vadd.f32 %v920_v39, %v884_v20 }
 0x12c   : > { %v1083_v37 = vadd.f32 %v1051_v26, %v4570_v3  ;;  %v1084_v30 = vadd.f32 %v1052_v27, %v4573_v33  ;;  %v1119_v17 = vmul.f32 %v4383_v2, %v4585_v32  ;;  %v1120_v43 = vmul.f32 %v4383_v2, %v4588_v56  ;;  %v4677_v27 = vld [vmem:[%s4266_s21 + $0x70] sm:$0xff]  ;;  %v4680_v32 = vld [vmem:[%s4266_s21 + $0x78] sm:$0xff] }
 0x12d   : > { %v4662_v35 = vadd.f32 %v987_v48, %v951_v49  ;;  %v1460_v51 = vadd.f32 %v4479_v41, %v1421_v24  ;;  %v1461_v47 = vadd.f32 %v4479_v41, %v1422_v25  ;;  %v4671_v44 = vadd.f32 %v988_v21, %v952_v28 }
 0x12e   : > { %v1189_v29 = vmul.f32 %v4386_v4, %v778_v10  ;;  %v1151_v18 = vadd.f32 %v1119_v17, %v1083_v37  ;;  %v1152_v3 = vadd.f32 %v1120_v43, %v1084_v30  ;;  %v1190_v26 = vmul.f32 %v4386_v4, %v852_v40 }
 0x12f   : > { %v1255_v33 = vmul.f32 %v4389_v5, %v743_v12  ;;  %v1488_v50 = vpack.c.bf16 %v1461_v47, %v1460_v51  ;;  %v1256_v56 = vmul.f32 %v4389_v5, %v669_v55  ;;  %v1323_v31 = vmul.f32 %v4452_v54, %v4630_v23 }
 0x130   : > { %v1324_v38 = vmul.f32 %v4452_v54, %v4635_v42  ;;  %v1219_v57 = vadd.f32 %v1187_v13, %v1151_v18  ;;  %v1220_v19 = vadd.f32 %v1188_v34, %v1152_v3  ;;  %v1391_v58 = vmul.f32 %v4435_v7, %v778_v10 }
 0x131   : > { %v1392_v59 = vmul.f32 %v4435_v7, %v852_v40  ;;  %3257 = vmatprep.mubr.bf16.mxu0 %v1488_v50  ;;  %v670_v0 = vrot.slane %v4677_v27, 7  ;;  %v671_v6 = vrot.slane %v4680_v32, 7  ;;  %v779_v9 = vrot.slane %v4677_v27, 1 }
 0x132   : > { %v780_v8 = vrot.slane %v4680_v32, 1  ;;  %v1287_v60 = vadd.f32 %v1255_v33, %v1219_v57  ;;  %v1288_v61 = vadd.f32 %v1256_v56, %v1220_v19  ;;  %v921_v11 = vmul.f32 %v4372_v62, %v4677_v27 }
 0x133   : > { %v922_v13 = vmul.f32 %v4372_v62, %v4680_v32  ;;  %v672_v34 = vsel %vm645_vm0, %v670_v0, %v671_v6  ;;  %v744_v36 = vsel %vm645_vm0, 0.0, %v670_v0  ;;  %v1085_v28 = vadd.f32 %v1053_v22, %v4617_v16  ;;  %v4722_v22 = vld [vmem:[%s4266_s21 + $0x80] sm:$0xff] }
 0x134   : > { %v781_v12 = vsel %vm754_vm1, %v779_v9, %v780_v8  ;;  %v853_v39 = vsel %vm754_vm1, %v780_v8, 0.0  ;;  %v1355_v55 = vadd.f32 %v1323_v31, %v1287_v60  ;;  %v1356_v10 = vadd.f32 %v1324_v38, %v1288_v61 }
 0x135   : > { %v885_v40 = vmul.f32 %v4343_v46, %v744_v36  ;;  %v886_v45 = vmul.f32 %v4343_v46, %v672_v34  ;;  %v989_v14 = vmul.f32 %v4375_v63, %v781_v12  ;;  %v990_v15 = vmul.f32 %v4375_v63, %v853_v39 }
 0x136   : > { %v1055_v20 = vmul.f32 %v4380_v1, %v744_v36  ;;  %v1056_v48 = vmul.f32 %v4380_v1, %v672_v34  ;;  %v1423_v49 = vadd.f32 %v1391_v58, %v1355_v55  ;;  %v1424_v21 = vadd.f32 %v1392_v59, %v1356_v10 }
 0x137   : > { %v953_v24 = vadd.f32 %v921_v11, %v885_v40  ;;  %v954_v25 = vadd.f32 %v922_v13, %v886_v45  ;;  %v1086_v37 = vadd.f32 %v1054_v52, %v4619_v53  ;;  %v1121_v30 = vmul.f32 %v4383_v2, %v4630_v23  ;;  %v4725_v23 = vld [vmem:[%s4266_s21 + $0x88] sm:$0xff] }
 0x138   : > { %v1122_v17 = vmul.f32 %v4383_v2, %v4635_v42  ;;  %v1462_v43 = vadd.f32 %v4479_v41, %v1423_v49  ;;  %v1463_v51 = vadd.f32 %v4479_v41, %v1424_v21  ;;  %v1191_v16 = vmul.f32 %v4386_v4, %v781_v12 }
 0x139   : > { %v4715_v47 = vadd.f32 %v989_v14, %v953_v24  ;;  %v4717_v18 = vadd.f32 %v990_v15, %v954_v25  ;;  %v1153_v3 = vadd.f32 %v1121_v30, %v1085_v28  ;;  %v1192_v53 = vmul.f32 %v4386_v4, %v853_v39 }
 0x13a   : > { %v1154_v33 = vadd.f32 %v1122_v17, %v1086_v37  ;;  %v1489_v52 = vpack.c.bf16 %v1463_v51, %v1462_v43  ;;  %v1257_v42 = vmul.f32 %v4389_v5, %v744_v36  ;;  %v1258_v50 = vmul.f32 %v4389_v5, %v672_v34 }
 0x13b   : > { %v1325_v56 = vmul.f32 %v4452_v54, %v4677_v27  ;;  %v1221_v31 = vadd.f32 %v1189_v29, %v1153_v3  ;;  %v1326_v57 = vmul.f32 %v4452_v54, %v4680_v32  ;;  %v1393_v19 = vmul.f32 %v4435_v7, %v781_v12 }
 0x13c   : > { %v1222_v38 = vadd.f32 %v1190_v26, %v1154_v33  ;;  %3258 = vmatmul.mubr.bf16.gmra.mrb[8].mxu0 %v1489_v52  ;;  %v1394_v58 = vmul.f32 %v4435_v7, %v853_v39  ;;  %v673_v59 = vrot.slane %v4722_v22, 7  ;;  %v674_v0 = vrot.slane %v4725_v23, 7 }
 0x13d   : > { %v782_v6 = vrot.slane %v4722_v22, 1  ;;  %v1289_v9 = vadd.f32 %v1257_v42, %v1221_v31  ;;  %v783_v60 = vrot.slane %v4725_v23, 1  ;;  %v923_v29 = vmul.f32 %v4372_v62, %v4722_v22 }
 0x13e   : > { %v1290_v8 = vadd.f32 %v1258_v50, %v1222_v38  ;;  %v675_v26 = vsel %vm645_vm0, %v673_v59, %v674_v0  ;;  %v745_v61 = vsel %vm645_vm0, 0.0, %v673_v59  ;;  %v924_v11 = vmul.f32 %v4372_v62, %v4725_v23 }
 0x13f   : > { %v1087_v13 = vadd.f32 %v1055_v20, %v4662_v35  ;;  %v1357_v34 = vadd.f32 %v1325_v56, %v1289_v9  ;;  %v784_v12 = vsel %vm754_vm1, %v782_v6, %v783_v60  ;;  %v854_v39 = vsel %vm754_vm1, %v783_v60, 0.0 }
 0x140   : > { %v1358_v36 = vadd.f32 %v1326_v57, %v1290_v8  ;;  %v887_v55 = vmul.f32 %v4343_v46, %v745_v61  ;;  %v888_v10 = vmul.f32 %v4343_v46, %v675_v26  ;;  %v991_v40 = vmul.f32 %v4375_v63, %v784_v12 }
 0x141   : > { %v992_v45 = vmul.f32 %v4375_v63, %v854_v39  ;;  %v1425_v14 = vadd.f32 %v1393_v19, %v1357_v34  ;;  %v1057_v35 = vmul.f32 %v4380_v1, %v745_v61  ;;  %v1058_v20 = vmul.f32 %v4380_v1, %v675_v26 }
 0x142   : > { %v1426_v15 = vadd.f32 %v1394_v58, %v1358_v36  ;;  %v955_v49 = vadd.f32 %v923_v29, %v887_v55  ;;  %v956_v21 = vadd.f32 %v924_v11, %v888_v10  ;;  %v1088_v24 = vadd.f32 %v1056_v48, %v4671_v44  ;;  %v4768_v44 = vld [vmem:[%s4266_s21 + $0x90] sm:$0xff]  ;;  %v4771_v48 = vld [vmem:[%s4266_s21 + $0x98] sm:$0xff] }
 0x143   : > { %v1123_v25 = vmul.f32 %v4383_v2, %v4677_v27  ;;  %v1464_v28 = vadd.f32 %v4479_v41, %v1425_v14  ;;  %v1124_v30 = vmul.f32 %v4383_v2, %v4680_v32  ;;  %v1193_v17 = vmul.f32 %v4386_v4, %v784_v12 }
 0x144   : > { %v1465_v37 = vadd.f32 %v4479_v41, %v1426_v15  ;;  %v4762_v43 = vadd.f32 %v991_v40, %v955_v49  ;;  %v4764_v51 = vadd.f32 %v992_v45, %v956_v21  ;;  %v1194_v33 = vmul.f32 %v4386_v4, %v854_v39 }
 0x145   : > { %v1155_v3 = vadd.f32 %v1123_v25, %v1087_v13  ;;  %v1156_v52 = vadd.f32 %v1124_v30, %v1088_v24  ;;  %v1259_v42 = vmul.f32 %v4389_v5, %v745_v61  ;;  %v1260_v50 = vmul.f32 %v4389_v5, %v675_v26 }
 0x146   : > { %v1490_v27 = vpack.c.bf16 %v1465_v37, %v1464_v28  ;;  %v1327_v56 = vmul.f32 %v4452_v54, %v4722_v22  ;;  %v1328_v31 = vmul.f32 %v4452_v54, %v4725_v23  ;;  %v1395_v38 = vmul.f32 %v4435_v7, %v784_v12 }
 0x147   : > { %v1223_v32 = vadd.f32 %v1191_v16, %v1155_v3  ;;  %v1224_v57 = vadd.f32 %v1192_v53, %v1156_v52  ;;  %v1396_v19 = vmul.f32 %v4435_v7, %v854_v39  ;;  %v676_v58 = vrot.slane %v4768_v44, 7 }
 0x148   : > { %3261 = vmatprep.mubr.bf16.mxu0 %v1490_v27  ;;  %v677_v59 = vrot.slane %v4771_v48, 7  ;;  %v785_v6 = vrot.slane %v4768_v44, 1  ;;  %v786_v16 = vrot.slane %v4771_v48, 1  ;;  %v925_v9 = vmul.f32 %v4372_v62, %v4768_v44 }
 0x149   : > { %v1291_v0 = vadd.f32 %v1259_v42, %v1223_v32  ;;  %v1292_v8 = vadd.f32 %v1260_v50, %v1224_v57  ;;  %v746_v29 = vsel %vm645_vm0, 0.0, %v676_v58  ;;  %v926_v53 = vmul.f32 %v4372_v62, %v4771_v48 }
 0x14a   : > { %v678_v60 = vsel %vm645_vm0, %v676_v58, %v677_v59  ;;  %v787_v61 = vsel %vm754_vm1, %v785_v6, %v786_v16  ;;  %v855_v11 = vsel %vm754_vm1, %v786_v16, 0.0  ;;  %v889_v13 = vmul.f32 %v4343_v46, %v746_v29 }
 0x14b   : > { %v1359_v26 = vadd.f32 %v1327_v56, %v1291_v0  ;;  %v1360_v34 = vadd.f32 %v1328_v31, %v1292_v8  ;;  %v890_v36 = vmul.f32 %v4343_v46, %v678_v60  ;;  %v993_v12 = vmul.f32 %v4375_v63, %v787_v61 }
 0x14c   : > { %v994_v39 = vmul.f32 %v4375_v63, %v855_v11  ;;  %v957_v10 = vadd.f32 %v925_v9, %v889_v13  ;;  %v1059_v40 = vmul.f32 %v4380_v1, %v746_v29  ;;  %v1060_v45 = vmul.f32 %v4380_v1, %v678_v60 }
 0x14d   : > { %v1427_v55 = vadd.f32 %v1395_v38, %v1359_v26  ;;  %v1428_v14 = vadd.f32 %v1396_v19, %v1360_v34  ;;  %v958_v15 = vadd.f32 %v926_v53, %v890_v36  ;;  %v1089_v49 = vadd.f32 %v1057_v35, %v4715_v47  ;;  %v4814_v35 = vld [vmem:[%s4266_s21 + $0xa0] sm:$0xff] }
 0x14e   : > { %v1090_v21 = vadd.f32 %v1058_v20, %v4717_v18  ;;  %v4802_v25 = vadd.f32 %v993_v12, %v957_v10  ;;  %v1125_v28 = vmul.f32 %v4383_v2, %v4722_v22  ;;  %v1126_v37 = vmul.f32 %v4383_v2, %v4725_v23  ;;  %v4819_v22 = vld [vmem:[%s4266_s21 + $0xa8] sm:$0xff] }
 0x14f   : > { %v1466_v24 = vadd.f32 %v4479_v41, %v1427_v55  ;;  %v1467_v30 = vadd.f32 %v4479_v41, %v1428_v14  ;;  %v4809_v3 = vadd.f32 %v994_v39, %v958_v15  ;;  %v1195_v27 = vmul.f32 %v4386_v4, %v787_v61 }
 0x150   : > { %v1196_v47 = vmul.f32 %v4386_v4, %v855_v11  ;;  %v1157_v18 = vadd.f32 %v1125_v28, %v1089_v49  ;;  %v1158_v20 = vadd.f32 %v1126_v37, %v1090_v21  ;;  %v1261_v52 = vmul.f32 %v4389_v5, %v746_v29 }
 0x151   : > { %v1262_v42 = vmul.f32 %v4389_v5, %v678_v60  ;;  %v1491_v50 = vpack.c.bf16 %v1467_v30, %v1466_v24  ;;  %v1329_v23 = vmul.f32 %v4452_v54, %v4768_v44  ;;  %v1330_v32 = vmul.f32 %v4452_v54, %v4771_v48 }
 0x152   : > { %v1397_v56 = vmul.f32 %v4435_v7, %v787_v61  ;;  %v1225_v31 = vadd.f32 %v1193_v17, %v1157_v18  ;;  %v1226_v38 = vadd.f32 %v1194_v33, %v1158_v20  ;;  %v1398_v57 = vmul.f32 %v4435_v7, %v855_v11 }
 0x153   : > { %v679_v19 = vrot.slane %v4814_v35, 7  ;;  %3262 = vmatmul.mubr.bf16.gmra.mrb[12].mxu0 %v1491_v50  ;;  %v680_v58 = vrot.slane %v4819_v22, 7  ;;  %v788_v59 = vrot.slane %v4814_v35, 1  ;;  %v789_v0 = vrot.slane %v4819_v22, 1 }
 0x154   : > { %v927_v6 = vmul.f32 %v4372_v62, %v4814_v35  ;;  %v1293_v16 = vadd.f32 %v1261_v52, %v1225_v31  ;;  %v1294_v9 = vadd.f32 %v1262_v42, %v1226_v38  ;;  %v928_v17 = vmul.f32 %v4372_v62, %v4819_v22 }
 0x155   : > { %v747_v8 = vsel %vm645_vm0, 0.0, %v679_v19  ;;  %v681_v33 = vsel %vm645_vm0, %v679_v19, %v680_v58  ;;  %v790_v60 = vsel %vm754_vm1, %v788_v59, %v789_v0  ;;  %v856_v29 = vsel %vm754_vm1, %v789_v0, 0.0 }
 0x156   : > { %v891_v53 = vmul.f32 %v4343_v46, %v747_v8  ;;  %v1361_v26 = vadd.f32 %v1329_v23, %v1293_v16  ;;  %v1362_v61 = vadd.f32 %v1330_v32, %v1294_v9  ;;  %v892_v11 = vmul.f32 %v4343_v46, %v681_v33 }
 0x157   : > { %v995_v13 = vmul.f32 %v4375_v63, %v790_v60  ;;  %v996_v36 = vmul.f32 %v4375_v63, %v856_v29  ;;  %v1061_v12 = vmul.f32 %v4380_v1, %v747_v8  ;;  %v1062_v39 = vmul.f32 %v4380_v1, %v681_v33 }
 0x158   : > { %v959_v34 = vadd.f32 %v927_v6, %v891_v53  ;;  %v1429_v55 = vadd.f32 %v1397_v56, %v1361_v26  ;;  %v1430_v10 = vadd.f32 %v1398_v57, %v1362_v61  ;;  %v960_v14 = vadd.f32 %v928_v17, %v892_v11 }
 0x159   : > { %v1091_v15 = vadd.f32 %v1059_v40, %v4762_v43  ;;  %v1092_v21 = vadd.f32 %v1060_v45, %v4764_v51  ;;  %v1127_v24 = vmul.f32 %v4383_v2, %v4768_v44  ;;  %v1128_v28 = vmul.f32 %v4383_v2, %v4771_v48  ;;  %v4861_v45 = vld [vmem:[%s4266_s21 + $0xb0] sm:$0xff]  ;;  %v4864_v44 = vld [vmem:[%s4266_s21 + $0xb8] sm:$0xff] }
 0x15a   : > { %v4846_v49 = vadd.f32 %v995_v13, %v959_v34  ;;  %v1468_v37 = vadd.f32 %v4479_v41, %v1429_v55  ;;  %v1469_v30 = vadd.f32 %v4479_v41, %v1430_v10  ;;  %v4855_v18 = vadd.f32 %v996_v36, %v960_v14 }
 0x15b   : > { %v1197_v20 = vmul.f32 %v4386_v4, %v790_v60  ;;  %v1159_v52 = vadd.f32 %v1127_v24, %v1091_v15  ;;  %v1160_v43 = vadd.f32 %v1128_v28, %v1092_v21  ;;  %v1198_v40 = vmul.f32 %v4386_v4, %v856_v29 }
 0x15c   : > { %v1263_v51 = vmul.f32 %v4389_v5, %v747_v8  ;;  %v1492_v42 = vpack.c.bf16 %v1469_v30, %v1468_v37  ;;  %v1264_v48 = vmul.f32 %v4389_v5, %v681_v33  ;;  %v1331_v50 = vmul.f32 %v4452_v54, %v4814_v35 }
 0x15d   : > { %v1332_v23 = vmul.f32 %v4452_v54, %v4819_v22  ;;  %v1227_v32 = vadd.f32 %v1195_v27, %v1159_v52  ;;  %v1228_v56 = vadd.f32 %v1196_v47, %v1160_v43  ;;  %v1399_v31 = vmul.f32 %v4435_v7, %v790_v60 }
 0x15e   : > { %v1400_v38 = vmul.f32 %v4435_v7, %v856_v29  ;;  %3265 = vmatprep.mubr.bf16.mxu0 %v1492_v42  ;;  %v682_v57 = vrot.slane %v4861_v45, 7  ;;  %v683_v19 = vrot.slane %v4864_v44, 7  ;;  %v791_v58 = vrot.slane %v4861_v45, 1 }
 0x15f   : > { %v792_v59 = vrot.slane %v4864_v44, 1  ;;  %v1295_v0 = vadd.f32 %v1263_v51, %v1227_v32  ;;  %v1296_v6 = vadd.f32 %v1264_v48, %v1228_v56  ;;  %v929_v16 = vmul.f32 %v4372_v62, %v4861_v45 }
 0x160   : > { %v930_v27 = vmul.f32 %v4372_v62, %v4864_v44  ;;  %v684_v47 = vsel %vm645_vm0, %v682_v57, %v683_v19  ;;  %v748_v9 = vsel %vm645_vm0, 0.0, %v682_v57  ;;  %v1093_v14 = vadd.f32 %v1061_v12, %v4802_v25  ;;  %v4906_v12 = vld [vmem:[%s4266_s21 + $0xc0] sm:$0xff] }
 0x161   : > { %v793_v8 = vsel %vm754_vm1, %v791_v58, %v792_v59  ;;  %v857_v17 = vsel %vm754_vm1, %v792_v59, 0.0  ;;  %v1363_v33 = vadd.f32 %v1331_v50, %v1295_v0  ;;  %v1364_v60 = vadd.f32 %v1332_v23, %v1296_v6 }
 0x162   : > { %v893_v29 = vmul.f32 %v4343_v46, %v748_v9  ;;  %v894_v53 = vmul.f32 %v4343_v46, %v684_v47  ;;  %v997_v26 = vmul.f32 %v4375_v63, %v793_v8  ;;  %v998_v61 = vmul.f32 %v4375_v63, %v857_v17 }
 0x163   : > { %v1063_v11 = vmul.f32 %v4380_v1, %v748_v9  ;;  %v1064_v13 = vmul.f32 %v4380_v1, %v684_v47  ;;  %v1431_v34 = vadd.f32 %v1399_v31, %v1363_v33  ;;  %v1432_v36 = vadd.f32 %v1400_v38, %v1364_v60 }
 0x164   : > { %v961_v55 = vadd.f32 %v929_v16, %v893_v29  ;;  %v962_v10 = vadd.f32 %v930_v27, %v894_v53  ;;  %v1094_v15 = vadd.f32 %v1062_v39, %v4809_v3  ;;  %v1129_v21 = vmul.f32 %v4383_v2, %v4814_v35  ;;  %v4909_v35 = vld [vmem:[%s4266_s21 + $0xc8] sm:$0xff] }
 0x165   : > { %v1130_v24 = vmul.f32 %v4383_v2, %v4819_v22  ;;  %v1470_v28 = vadd.f32 %v4479_v41, %v1431_v34  ;;  %v1471_v37 = vadd.f32 %v4479_v41, %v1432_v36  ;;  %v1199_v25 = vmul.f32 %v4386_v4, %v793_v8 }
 0x166   : > { %v4899_v30 = vadd.f32 %v997_v26, %v961_v55  ;;  %v4901_v52 = vadd.f32 %v998_v61, %v962_v10  ;;  %v1161_v43 = vadd.f32 %v1129_v21, %v1093_v14  ;;  %v1200_v3 = vmul.f32 %v4386_v4, %v857_v17 }
 0x167   : > { %v1162_v51 = vadd.f32 %v1130_v24, %v1094_v15  ;;  %v1493_v39 = vpack.c.bf16 %v1471_v37, %v1470_v28  ;;  %v1265_v22 = vmul.f32 %v4389_v5, %v748_v9  ;;  %v1266_v42 = vmul.f32 %v4389_v5, %v684_v47 }
 0x168   : > { %v1333_v48 = vmul.f32 %v4452_v54, %v4861_v45  ;;  %v1229_v50 = vadd.f32 %v1197_v20, %v1161_v43  ;;  %v1334_v32 = vmul.f32 %v4452_v54, %v4864_v44  ;;  %v1401_v56 = vmul.f32 %v4435_v7, %v793_v8 }
 0x169   : > { %v1230_v23 = vadd.f32 %v1198_v40, %v1162_v51  ;;  %3266 = vmatmul.mubr.bf16.gmra.mrb[16].mxu0 %v1493_v39  ;;  %v1402_v31 = vmul.f32 %v4435_v7, %v857_v17  ;;  %v685_v38 = vrot.slane %v4906_v12, 7  ;;  %v686_v57 = vrot.slane %v4909_v35, 7 }
 0x16a   : > { %v794_v19 = vrot.slane %v4906_v12, 1  ;;  %v1297_v58 = vadd.f32 %v1265_v22, %v1229_v50  ;;  %v795_v0 = vrot.slane %v4909_v35, 1  ;;  %v931_v20 = vmul.f32 %v4372_v62, %v4906_v12 }
 0x16b   : > { %v1298_v59 = vadd.f32 %v1266_v42, %v1230_v23  ;;  %v687_v40 = vsel %vm645_vm0, %v685_v38, %v686_v57  ;;  %v749_v6 = vsel %vm645_vm0, 0.0, %v685_v38  ;;  %v932_v7 = vmul.f32 %v4372_v62, %v4909_v35 }
 0x16c   : > { %v1095_v16 = vadd.f32 %v1063_v11, %v4846_v49  ;;  %v1365_v27 = vadd.f32 %v1333_v48, %v1297_v58  ;;  %v796_v9 = vsel %vm754_vm1, %v794_v19, %v795_v0  ;;  %v858_v8 = vsel %vm754_vm1, %v795_v0, 0.0  ;;  %v4965_v48 = vld [vmem:[#allocation8 + $0x8] ss:$0 sm:$0xff] }
 0x16d   : > { %v1366_v47 = vadd.f32 %v1334_v32, %v1298_v59  ;;  %v895_v17 = vmul.f32 %v4343_v46, %v749_v6  ;;  %v896_v33 = vmul.f32 %v4343_v46, %v687_v40  ;;  %v999_v60 = vmul.f32 %v4375_v63, %v796_v9 }
 0x16e   : > { %v1000_v29 = vmul.f32 %v4375_v63, %v858_v8  ;;  %v1433_v53 = vadd.f32 %v1401_v56, %v1365_v27  ;;  %v1065_v49 = vmul.f32 %v4380_v1, %v749_v6  ;;  %v1066_v61 = vmul.f32 %v4380_v1, %v687_v40 }
 0x16f   : > { %v1434_v26 = vadd.f32 %v1402_v31, %v1366_v47  ;;  %v963_v11 = vadd.f32 %v931_v20, %v895_v17  ;;  %v964_v34 = vadd.f32 %v932_v7, %v896_v33  ;;  %v1096_v36 = vadd.f32 %v1064_v13, %v4855_v18  ;;  %v4954_v13 = vld [vmem:[%s4266_s21 + $0xd0] sm:$0xff] }
 0x170   : > { %v1131_v55 = vmul.f32 %v4383_v2, %v4861_v45  ;;  %v1472_v10 = vadd.f32 %v4479_v41, %v1433_v53  ;;  %v1132_v15 = vmul.f32 %v4383_v2, %v4864_v44  ;;  %v4946_v21 = vmul.f32 %v4386_v4, %v796_v9  ;;  %v4957_v45 = vld [vmem:[%s4266_s21 + $0xd8] sm:$0xff] }
 0x171   : > { %v1473_v14 = vadd.f32 %v4479_v41, %v1434_v26  ;;  %v4948_v24 = vadd.f32 %v999_v60, %v963_v11  ;;  %v4950_v28 = vadd.f32 %v1000_v29, %v964_v34  ;;  %v1202_v18 = vmul.f32 %v4386_v4, %v858_v8  ;;  %v4992_v34 = vld [vmem:[%s6336_s19] ss:$0 sm:$0xff] }
 0x172   : > { %v1163_v37 = vadd.f32 %v1131_v55, %v1095_v16  ;;  %v1164_v51 = vadd.f32 %v1132_v15, %v1096_v36  ;;  %v1267_v41 = vmul.f32 %v4389_v5, %v749_v6  ;;  %v1268_v44 = vmul.f32 %v4389_v5, %v687_v40  ;;  %v5007_v15 = vld [vmem:[%s4266_s21 + $0xe0] sm:$0xff] }
 0x173   : > { %v1494_v43 = vpack.c.bf16 %v1473_v14, %v1472_v10  ;;  %v1335_v22 = vmul.f32 %v4452_v54, %v4906_v12  ;;  %v1336_v42 = vmul.f32 %v4452_v54, %v4909_v35  ;;  %v1403_v50 = vmul.f32 %v4965_v48, %v796_v9 }
 0x174   : > { %v1231_v39 = vadd.f32 %v1199_v25, %v1163_v37  ;;  %v1232_v23 = vadd.f32 %v1200_v3, %v1164_v51  ;;  %v1404_v32 = vmul.f32 %v4965_v48, %v858_v8  ;;  %v688_v56 = vrot.slane %v4954_v13, 7 }
 0x175   : > { %3269 = vmatprep.mubr.bf16.mxu0 %v1494_v43  ;;  %v689_v31 = vrot.slane %v4957_v45, 7  ;;  %v797_v25 = vrot.slane %v4954_v13, 1  ;;  %v798_v57 = vrot.slane %v4957_v45, 1  ;;  %v933_v19 = vmul.f32 %v4372_v62, %v4954_v13 }
 0x176   : > { %v1299_v38 = vadd.f32 %v1267_v41, %v1231_v39  ;;  %v1300_v58 = vadd.f32 %v1268_v44, %v1232_v23  ;;  %v750_v0 = vsel %vm645_vm0, 0.0, %v688_v56  ;;  %v934_v3 = vmul.f32 %v4372_v62, %v4957_v45 }
 0x177   : > { %v690_v59 = vsel %vm645_vm0, %v688_v56, %v689_v31  ;;  %v799_v40 = vsel %vm754_vm1, %v797_v25, %v798_v57  ;;  %v859_v6 = vsel %vm754_vm1, %v798_v57, 0.0  ;;  %v897_v7 = vmul.f32 %v4343_v46, %v750_v0 }
 0x178   : > { %v1367_v20 = vadd.f32 %v1335_v22, %v1299_v38  ;;  %v1368_v16 = vadd.f32 %v1336_v42, %v1300_v58  ;;  %v898_v27 = vmul.f32 %v4343_v46, %v690_v59  ;;  %v1001_v47 = vmul.f32 %v4375_v63, %v799_v40 }
 0x179   : > { %v1002_v9 = vmul.f32 %v4375_v63, %v859_v6  ;;  %v965_v17 = vadd.f32 %v933_v19, %v897_v7  ;;  %v1067_v33 = vmul.f32 %v4380_v1, %v750_v0  ;;  %v1068_v60 = vmul.f32 %v4380_v1, %v690_v59 }
 0x17a   : > { %v1435_v8 = vadd.f32 %v1403_v50, %v1367_v20  ;;  %v1436_v29 = vadd.f32 %v1404_v32, %v1368_v16  ;;  %v966_v53 = vadd.f32 %v934_v3, %v898_v27  ;;  %v1097_v26 = vadd.f32 %v1065_v49, %v4899_v30 }
 0x17b   : > { %v1098_v11 = vadd.f32 %v1066_v61, %v4901_v52  ;;  %v4995_v55 = vadd.f32 %v1001_v47, %v965_v17  ;;  %v1133_v10 = vmul.f32 %v4383_v2, %v4906_v12  ;;  %v1134_v14 = vmul.f32 %v4383_v2, %v4909_v35  ;;  %v5012_v12 = vld [vmem:[%s4266_s21 + $0xe8] sm:$0xff] }
 0x17c   : > { %v1474_v36 = vadd.f32 %v4992_v34, %v1435_v8  ;;  %v1475_v30 = vadd.f32 %v4992_v34, %v1436_v29  ;;  %v5002_v49 = vadd.f32 %v1002_v9, %v966_v53  ;;  %v1203_v52 = vmul.f32 %v4386_v4, %v799_v40 }
 0x17d   : > { %v1204_v61 = vmul.f32 %v4386_v4, %v859_v6  ;;  %v1165_v37 = vadd.f32 %v1133_v10, %v1097_v26  ;;  %v1166_v43 = vadd.f32 %v1134_v14, %v1098_v11  ;;  %v1269_v51 = vmul.f32 %v4389_v5, %v750_v0 }
 0x17e   : > { %v1270_v41 = vmul.f32 %v4389_v5, %v690_v59  ;;  %v1495_v44 = vpack.c.bf16 %v1475_v30, %v1474_v36  ;;  %v1337_v35 = vmul.f32 %v4452_v54, %v4954_v13  ;;  %v1338_v39 = vmul.f32 %v4452_v54, %v4957_v45 }
 0x17f   : > { %v1405_v22 = vmul.f32 %v4965_v48, %v799_v40  ;;  %v1233_v42 = vadd.f32 %v4946_v21, %v1165_v37  ;;  %v1234_v50 = vadd.f32 %v1202_v18, %v1166_v43  ;;  %v1406_v23 = vmul.f32 %v4965_v48, %v859_v6 }
 0x180   : > { %v691_v32 = vrot.slane %v5007_v15, 7  ;;  %3270 = vmatmul.mubr.bf16.gmra.mrb[20].mxu0 %v1495_v44  ;;  %v692_v56 = vrot.slane %v5012_v12, 7  ;;  %v800_v31 = vrot.slane %v5007_v15, 1  ;;  %v801_v38 = vrot.slane %v5012_v12, 1 }
 0x181   : > { %v935_v25 = vmul.f32 %v4372_v62, %v5007_v15  ;;  %v1301_v57 = vadd.f32 %v1269_v51, %v1233_v42  ;;  %v1302_v19 = vadd.f32 %v1270_v41, %v1234_v50  ;;  %v936_v21 = vmul.f32 %v4372_v62, %v5012_v12 }
 0x182   : > { %v751_v58 = vsel %vm645_vm0, 0.0, %v691_v32  ;;  %v693_v18 = vsel %vm645_vm0, %v691_v32, %v692_v56  ;;  %v802_v59 = vsel %vm754_vm1, %v800_v31, %v801_v38  ;;  %v860_v0 = vsel %vm754_vm1, %v801_v38, 0.0 }
 0x183   : > { %v899_v3 = vmul.f32 %v4343_v46, %v751_v58  ;;  %v1369_v20 = vadd.f32 %v1337_v35, %v1301_v57  ;;  %v1370_v40 = vadd.f32 %v1338_v39, %v1302_v19  ;;  %v900_v6 = vmul.f32 %v4343_v46, %v693_v18 }
 0x184   : > { %v1003_v7 = vmul.f32 %v4375_v63, %v802_v59  ;;  %v1004_v27 = vmul.f32 %v4375_v63, %v860_v0  ;;  %v1069_v47 = vmul.f32 %v4380_v1, %v751_v58  ;;  %v1070_v62 = vmul.f32 %v4380_v1, %v693_v18 }
 0x185   : > { %v967_v16 = vadd.f32 %v935_v25, %v899_v3  ;;  %v1437_v9 = vadd.f32 %v1405_v22, %v1369_v20  ;;  %v1438_v8 = vadd.f32 %v1406_v23, %v1370_v40  ;;  %v968_v17 = vadd.f32 %v936_v21, %v900_v6 }
 0x186   : > { %v1099_v29 = vadd.f32 %v1067_v33, %v4948_v24  ;;  %v1100_v26 = vadd.f32 %v1068_v60, %v4950_v28  ;;  %v1135_v46 = vmul.f32 %v4383_v2, %v4954_v13  ;;  %v1136_v63 = vmul.f32 %v4383_v2, %v4957_v45  ;;  %v591_v28 = vld [vmem:[%s4266_s21 + $0xf0] sm:$0xff]  ;;  %v592_v60 = vld [vmem:[%s4266_s21 + $0xf8] sm:$0xff] }
 0x187   : > { %v1035_v53 = vadd.f32 %v1003_v7, %v967_v16  ;;  %v1476_v11 = vadd.f32 %v4992_v34, %v1437_v9  ;;  %v1477_v36 = vadd.f32 %v4992_v34, %v1438_v8  ;;  %v1036_v10 = vadd.f32 %v1004_v27, %v968_v17  ;;  %v601_v7 = vld [vmem:[%s4272_s29] sm:$0xff]  ;;  %v602_v16 = vld [vmem:[%s4272_s29 + $0x8] sm:$0xff]  ;;  %s6379_s29 = sld [smem:[#allocation53_spill]] }
 0x188   : > { %v1205_v14 = vmul.f32 %v4386_v4, %v802_v59  ;;  %v1167_v30 = vadd.f32 %v1135_v46, %v1099_v29  ;;  %v1168_v37 = vadd.f32 %v1136_v63, %v1100_v26  ;;  %v1206_v24 = vmul.f32 %v4386_v4, %v860_v0 }
 0x189   : > { %v1271_v33 = vmul.f32 %v4389_v5, %v751_v58  ;;  %v1496_v43 = vpack.c.bf16 %v1477_v36, %v1476_v11  ;;  %v1272_v13 = vmul.f32 %v4389_v5, %v693_v18  ;;  %v1339_v45 = vmul.f32 %v4452_v54, %v5007_v15 }
 0x18a   : > { %v1340_v51 = vmul.f32 %v4452_v54, %v5012_v12  ;;  %v1235_v41 = vadd.f32 %v1203_v52, %v1167_v30  ;;  %v1236_v44 = vadd.f32 %v1204_v61, %v1168_v37  ;;  %v1407_v35 = vmul.f32 %v4965_v48, %v802_v59 }
 0x18b   : > { %v1408_v39 = vmul.f32 %v4965_v48, %v860_v0  ;;  %3273 = vmatprep.mubr.bf16.mxu0 %v1496_v43  ;;  %v694_v22 = vrot.slane %v591_v28, 7  ;;  %v695_v42 = vrot.slane %v592_v60, 7  ;;  %v803_v50 = vrot.slane %v591_v28, 1 }
 0x18c   : > { %v804_v23 = vrot.slane %v592_v60, 1  ;;  %v1303_v32 = vadd.f32 %v1271_v33, %v1235_v41  ;;  %v1304_v56 = vadd.f32 %v1272_v13, %v1236_v44  ;;  %v1101_v31 = vadd.f32 %v1069_v47, %v4995_v55 }
 0x18d   : > { %v1102_v38 = vadd.f32 %v1070_v62, %v5002_v49  ;;  %v696_v25 = vsel %vm645_vm0, %v694_v22, %v695_v42  ;;  %v752_v52 = vsel %vm645_vm0, 0.0, %v694_v22  ;;  %v1137_v55 = vmul.f32 %v4383_v2, %v5007_v15  ;;  %s6187_s22 = scalar_lea.hbm %s6379_s29, %s3183_s8 }
 0x18e   : > { %v805_v61 = vsel %vm754_vm1, %v803_v50, %v804_v23  ;;  %v861_v57 = vsel %vm754_vm1, %v804_v23, 0.0  ;;  %v1371_v19 = vadd.f32 %v1339_v45, %v1303_v32  ;;  %v1372_v58 = vadd.f32 %v1340_v51, %v1304_v56 }
 0x18f   : > { %v1071_v21 = vmul.f32 %v4380_v1, %v752_v52  ;;  %v1072_v18 = vmul.f32 %v4380_v1, %v696_v25  ;;  %v1138_v49 = vmul.f32 %v4383_v2, %v5012_v12  ;;  %v1207_v59 = vmul.f32 %v4386_v4, %v805_v61 }
 0x190   : > { %v1208_v0 = vmul.f32 %v4386_v4, %v861_v57  ;;  %v1439_v3 = vadd.f32 %v1407_v35, %v1371_v19  ;;  %v1440_v20 = vadd.f32 %v1408_v39, %v1372_v58  ;;  %v1273_v40 = vmul.f32 %v4389_v5, %v752_v52 }
 0x191   : > { %v1274_v6 = vmul.f32 %v4389_v5, %v696_v25  ;;  %v1169_v27 = vadd.f32 %v1137_v55, %v1101_v31  ;;  %v1170_v1 = vadd.f32 %v1138_v49, %v1102_v38  ;;  %v1341_v47 = vmul.f32 %v4452_v54, %v591_v28  ;;  %v3446_v49 = vld [vmem:[#allocation11] sm:$0xff]  }
 0x192   : > { %v1342_v15 = vmul.f32 %v4452_v54, %v592_v60  ;;  %v1478_v12 = vadd.f32 %v4992_v34, %v1439_v3  ;;  %v1479_v62 = vadd.f32 %v4992_v34, %v1440_v20  ;;  %v1409_v4 = vmul.f32 %v4965_v48, %v805_v61  ;;  %3281 = vmatprep.subr.bf16.mxu1 %v3446_v49 }
 0x193   : > { %v1410_v9 = vmul.f32 %v4965_v48, %v861_v57  ;;  %v1237_v8 = vadd.f32 %v1205_v14, %v1169_v27  ;;  %v1238_v17 = vadd.f32 %v1206_v24, %v1170_v1  ;;  %v607_v29 = vmul.f32 0.0, %v601_v7  ;;  %3282 = vmatpush3.bf16.msra.mxu1 %v3446_v49  ;;  %v3449_v27 = vld [vmem:[#allocation11 + $0x18] sm:$0xff]  }
 0x194   : > { %v608_v26 = vmul.f32 0.0, %v602_v16  ;;  %v1497_v46 = vpack.c.bf16 %v1479_v62, %v1478_v12  ;;  %v1103_v63 = vadd.f32 %v1071_v21, %v1035_v53  ;;  %v1104_v11 = vadd.f32 %v1072_v18, %v1036_v10 }
 0x195   : > { %v1139_v36 = vmul.f32 %v4383_v2, %v591_v28  ;;  %v1305_v30 = vadd.f32 %v1273_v40, %v1237_v8  ;;  %v1306_v37 = vadd.f32 %v1274_v6, %v1238_v17  ;;  %v697_v33 = vrot.slane %v607_v29, 7 }
 0x196   : > { %v698_v43 = vrot.slane %v608_v26, 7  ;;  %3274 = vmatmul.mubr.bf16.gmra.mrb[24].mxu0 %v1497_v46  ;;  %v806_v13 = vrot.slane %v607_v29, 1  ;;  %v807_v45 = vrot.slane %v608_v26, 1  ;;  %v1140_v51 = vmul.f32 %v4383_v2, %v592_v60  ;;  %v3451_v46 = vld [vmem:[#allocation11 + $0x28] sm:$0xff]  }
 0x197   : > { %v1171_v41 = vadd.f32 %v1139_v36, %v1103_v63  ;;  %v1373_v44 = vadd.f32 %v1341_v47, %v1305_v30  ;;  %v1374_v14 = vadd.f32 %v1342_v15, %v1306_v37  ;;  %v753_v35 = vsel %vm645_vm0, 0.0, %v697_v33 }
 0x198   : > { %v699_v24 = vsel %vm645_vm0, %v697_v33, %v698_v43  ;;  %v808_v53 = vsel %vm754_vm1, %v806_v13, %v807_v45  ;;  %v862_v10 = vsel %vm754_vm1, %v807_v45, 0.0  ;;  %v1172_v28 = vadd.f32 %v1140_v51, %v1104_v11 }
 0x199   : > { %v1239_v39 = vadd.f32 %v1207_v59, %v1171_v41  ;;  %v1441_v22 = vadd.f32 %v1409_v4, %v1373_v44  ;;  %v1442_v42 = vadd.f32 %v1410_v9, %v1374_v14  ;;  %v1275_v50 = vmul.f32 %v4389_v5, %v753_v35  ;;  %v3447_v59 = vld [vmem:[#allocation11 + $0x8] sm:$0xff]   ;;  %v3450_v9 = vld [vmem:[#allocation11 + $0x20] sm:$0xff]  }
 0x19a   : > { %v1276_v23 = vmul.f32 %v4389_v5, %v699_v24  ;;  %v1240_v2 = vadd.f32 %v1208_v0, %v1172_v28  ;;  %v1343_v60 = vmul.f32 %v4452_v54, %v607_v29  ;;  %v1344_v32 = vmul.f32 %v4452_v54, %v608_v26  ;;  %3283 = vmatprep.subr.bf16.mxu1 %v3447_v59  ;;  %v3448_v0 = vld [vmem:[#allocation11 + $0x10] sm:$0xff]  }
 0x19b   : > { %v1480_v56 = vadd.f32 %v4992_v34, %v1441_v22  ;;  %v1481_v31 = vadd.f32 %v4992_v34, %v1442_v42  ;;  %v1307_v38 = vadd.f32 %v1275_v50, %v1239_v39  ;;  %v1411_v25 = vmul.f32 %v4965_v48, %v808_v53  ;;  %3284 = vmatpush3.bf16.msra.mxu1 %v3447_v59  ;;  %v3452_v50 = vld [vmem:[#allocation11 + $0x30] sm:$0xff]  }
 0x19c   : > { %v1308_v52 = vadd.f32 %v1276_v23, %v1240_v2  ;;  %v1412_v61 = vmul.f32 %v4965_v48, %v862_v10  ;;  %v5102_v48 = vld [vmem:[%s6337_s26] ss:$0 sm:$0xff]  ;;  %3285 = vmatprep.subr.bf16.mxu1 %v3448_v0 }
 0x19d   : > { %v1498_v57 = vpack.c.bf16 %v1481_v31, %v1480_v56  ;;  %v1375_v19 = vadd.f32 %v1343_v60, %v1307_v38 }
 0x19e   : > { %v1376_v58 = vadd.f32 %v1344_v32, %v1308_v52 }
 0x19f   : > { %3277 = vmatprep.mubr.bf16.mxu0 %v1498_v57  ;;  %v1443_v5 = vadd.f32 %v1411_v25, %v1375_v19  ;;  %3286 = vmatpush3.bf16.msra.mxu1 %v3448_v0 }
 0x1a0   : > { %v1444_v21 = vadd.f32 %v1412_v61, %v1376_v58  ;;  %3287 = vmatprep.subr.bf16.mxu1 %v3449_v27 }
 0x1a1   : > { %v1482_v18 = vadd.f32 %v4992_v34, %v1443_v5 }
 0x1a2   : > { %v1483_v54 = vadd.f32 %v4992_v34, %v1444_v21 }
 0x1a3   : > { %3288 = vmatpush3.bf16.msra.mxu1 %v3449_v27 }
 0x1a4   : > { %v1499_v55 = vpack.c.bf16 %v1483_v54, %v1482_v18  ;;  %3289 = vmatprep.subr.bf16.mxu1 %v3450_v9 }
 0x1a6   : > { %3278 = vmatmul.mubr.bf16.gmra.mrb[28].mxu0 %v1499_v55 }
 0x1a7   : > { %3290 = vmatpush3.bf16.msra.mxu1 %v3450_v9 }
 0x1a8   : > { %3291 = vmatprep.subr.bf16.mxu1 %v3451_v46 }
 0x1ab   : > { %3292 = vmatpush3.bf16.msra.mxu1 %v3451_v46 }
 0x1ac   : > { %3293 = vmatprep.subr.bf16.mxu1 %v3452_v50 }
 0x1af   : > { %3294 = vmatpush3.bf16.msra.mxu1 %v3452_v50 }
 0x1e1   : > { %v3251_v3 = vpop.f32.mrb[0].mxu0 }
 0x1e2   : > { %v5105_v20 = vadd.f32 %v3251_v3, %v5102_v48  ;;  %v1605_v40 = vpop.f32.mrb[1].mxu0 }
 0x1e3   : > { %v3252_v34 = vpop.f32.mrb[2].mxu0  ;;  %v5122_v8 = vadd.f32 %v5102_v48, %v1605_v40 }
 0x1e4   : > { %v5108_v6 = vmul.f32 0.70710677, %v5105_v20  ;;  %v5111_v7 = vadd.f32 %v3252_v34, %v5102_v48  ;;  %v1608_v16 = vpop.f32.mrb[3].mxu0 }
 0x1e5   : > { %v5125_v29 = vmul.f32 0.70710677, %v5122_v8  ;;  %v5137_v51 = vadd.f32 %v5102_v48, %v1608_v16 }
 0x1e6   : > { %v1798_v1 = vand.u32 2147483647, %v5108_v6  ;;  %v5115_v47 = vmul.f32 0.70710677, %v5111_v7  ;;  %v5201_v50 = vmul.f32 0.5, %v5111_v7  ;;  %vm2438_vm2 = vcmp.ge.f32.partialorder %v5108_v6, 0.0 }
 0x1e7   : > { %6338 = vst [vmem:[#allocation29_spill] sm:$0xff] %v5125_v29  ;;  %v1796_v26 = vand.u32 2147483647, %v5125_v29  ;;  %v5157_v22 = vmul.f32 0.70710677, %v5137_v51  ;;  %v5212_v7 = vmul.f32 0.5, %v5137_v51 }
 0x1e8   : > { %v1830_v15 = vmul.f32 0.3275911, %v1798_v1  ;;  %v5118_v12 = vand.u32 2147483647, %v5115_v47  ;;  %v2246_v32 = vsub.f32 0.0, %v1798_v1  ;;  %vm2439_vm3 = vcmp.ge.f32.partialorder %v5115_v47, 0.0 }
 0x1e9   : > { %v1828_v36 = vmul.f32 0.3275911, %v1796_v26  ;;  %6339 = vst [vmem:[#allocation30_spill] sm:$0xff] %v5157_v22  ;;  %v1797_v61 = vand.u32 2147483647, %v5157_v22  ;;  %v2244_v21 = vsub.f32 0.0, %v1796_v26 }
 0x1ea   : > { %v1862_v62 = vadd.f32 1.0, %v1830_v15  ;;  %v1831_v4 = vmul.f32 0.3275911, %v5118_v12  ;;  %v2278_v5 = vmul.f32 %v2246_v32, %v1798_v1  ;;  %v2247_v55 = vsub.f32 0.0, %v5118_v12  ;;  %6341 = vst [vmem:[#allocation32_spill] sm:$0xff] %v5212_v7 }
 0x1eb   : > { %v1860_v45 = vadd.f32 1.0, %v1828_v36  ;;  %v1829_v59 = vmul.f32 0.3275911, %v1797_v61  ;;  %v2245_v0 = vsub.f32 0.0, %v1797_v61  ;;  %v2276_v27 = vmul.f32 %v2244_v21, %v1796_v26 }
 0x1ec   : > { %3454 = vrcp.f32 %v1862_v62  ;;  %v1863_v17 = vadd.f32 1.0, %v1831_v4  ;;  %v2312_v16 = vmul.f32 1.442695, %v2278_v5  ;;  %v2279_v15 = vmul.f32 %v2247_v55, %v5118_v12  ;;  %v3453_v12 = vld [vmem:[#allocation11 + $0x38] sm:$0xff]  }
 0x1ed   : > { %v1861_v4 = vadd.f32 1.0, %v1829_v59  ;;  %v2277_v9 = vmul.f32 %v2245_v0, %v1797_v61  ;;  %v2308_v36 = vmul.f32 1.442695, %v2276_v27  ;;  %v5194_v26 = vmul.f32 0.5, %v5105_v20  ;;  %3295 = vmatprep.subr.bf16.mxu1 %v3453_v12 }
 0x1ee   : > { %3456 = vrcp.f32 %v1863_v17  ;;  %3296 = vmatpush3.bf16.msra.mxu1 %v3453_v12 }
 0x1ef   : > { %3458 = vrcp.f32 %v1860_v45  ;;  %v5197_v45 = vmul.f32 0.5, %v5122_v8 }
 0x1f1   : > { %6340 = vst [vmem:[#allocation31_spill] sm:$0xff] %v5197_v45 }
 0x1f6   : > { %v5128_v63 = vpop.eup %3454 }
 0x1f7   : > { %v1958_v11 = vmul.f32 1.0614054, %v5128_v63 }
 0x1f8   : > { %v5131_v33 = vpop.eup %3456 }
 0x1f9   : > { %v1990_v30 = vadd.f32 -1.4531521, %v1958_v11  ;;  %v3255_v37 = vpop.f32.mrb[4].mxu0  ;;  %v1959_v10 = vmul.f32 1.0614054, %v5131_v33  ;;  %v5184_v34 = vpop.eup %3458 }
 0x1fa   : > { %v5134_v43 = vadd.f32 %v3255_v37, %v5102_v48  ;;  %v1621_v13 = vpop.f32.mrb[5].mxu0  ;;  %v1956_v11 = vmul.f32 1.0614054, %v5184_v34 }
 0x1fb   : > { %v5140_v41 = vadd.f32 %v5102_v48, %v1621_v13  ;;  %v3256_v44 = vpop.f32.mrb[6].mxu0  ;;  %v2022_v14 = vmul.f32 %v5128_v63, %v1990_v30  ;;  %v1991_v56 = vadd.f32 -1.4531521, %v1959_v10  ;;  %v2314_v13 = vmul.f32 1.442695, %v2279_v15 }
 0x1fc   : > { %v5144_v24 = vmul.f32 0.70710677, %v5134_v43  ;;  %v5147_v35 = vadd.f32 %v3256_v44, %v5102_v48  ;;  %v1624_v53 = vpop.f32.mrb[7].mxu0  ;;  %v2310_v44 = vmul.f32 1.442695, %v2277_v9  ;;  %v5221_v5 = vmul.f32 0.5, %v5134_v43 }
 0x1fd   : > { %v5154_v39 = vmul.f32 0.70710677, %v5140_v41  ;;  %v2054_v23 = vadd.f32 1.4214138, %v2022_v14  ;;  %v5171_v52 = vadd.f32 %v5102_v48, %v1624_v53  ;;  %v2023_v18 = vmul.f32 %v5131_v33, %v1991_v56 }
 0x1fe   : > { %v5151_v28 = vand.u32 2147483647, %v5144_v24  ;;  %v5160_v42 = vmul.f32 0.70710677, %v5147_v35  ;;  %vm2442_vm4 = vcmp.ge.f32.partialorder %v5144_v24, 0.0 }
 0x1ff   : > { %v5164_v60 = vand.u32 2147483647, %v5154_v39  ;;  %v2086_v19 = vmul.f32 %v5128_v63, %v2054_v23  ;;  %v5179_v49 = vmul.f32 0.70710677, %v5171_v52  ;;  %v2055_v1 = vadd.f32 1.4214138, %v2023_v18 }
 0x200   : > { %v1834_v2 = vmul.f32 0.3275911, %v5151_v28  ;;  %v5167_v31 = vand.u32 2147483647, %v5160_v42  ;;  %v2250_v51 = vsub.f32 0.0, %v5151_v28  ;;  %vm2440_vm5 = vcmp.ge.f32.partialorder %v5154_v39, 0.0 }
 0x201   : > { %v1832_v25 = vmul.f32 0.3275911, %v5164_v60  ;;  %v2118_v3 = vadd.f32 -0.28449672, %v2086_v19  ;;  %v5182_v40 = vand.u32 2147483647, %v5179_v49  ;;  %v2087_v30 = vmul.f32 %v5131_v33, %v2055_v1 }
 0x202   : > { %v1866_v38 = vadd.f32 1.0, %v1834_v2  ;;  %v1835_v57 = vmul.f32 0.3275911, %v5167_v31  ;;  %v1988_v2 = vadd.f32 -1.4531521, %v1956_v11  ;;  %v2248_v15 = vsub.f32 0.0, %v5164_v60 }
 0x203   : > { %v1864_v58 = vadd.f32 1.0, %v1832_v25  ;;  %v1833_v62 = vmul.f32 0.3275911, %v5182_v40  ;;  %v2150_v17 = vmul.f32 %v5128_v63, %v2118_v3  ;;  %v2119_v8 = vadd.f32 -0.28449672, %v2087_v30 }
 0x204   : > { %3460 = vrcp.f32 %v1866_v38  ;;  %v1867_v54 = vadd.f32 1.0, %v1835_v57  ;;  %v2020_v59 = vmul.f32 %v5184_v34, %v1988_v2  ;;  %v2251_v12 = vsub.f32 0.0, %v5167_v31 }
 0x205   : > { %3462 = vrcp.f32 %v1864_v58  ;;  %v1865_v46 = vadd.f32 1.0, %v1833_v62  ;;  %v2182_v10 = vadd.f32 0.2548296, %v2150_v17  ;;  %v2151_v27 = vmul.f32 %v5131_v33, %v2119_v8 }
 0x206   : > { %3464 = vrcp.f32 %v1867_v54  ;;  %v5242_v17 = vmul.f32 0.5, %v5140_v41  ;;  %v2280_v8 = vmul.f32 %v2248_v15, %v5164_v60  ;;  %vm2443_vm6 = vcmp.ge.f32.partialorder %v5160_v42, 0.0 }
 0x207   : > { %3466 = vpow2.f32 %v2312_v16  ;;  %v2214_v0 = vmul.f32 %v5128_v63, %v2182_v10  ;;  %vm2441_vm7 = vcmp.ge.f32.partialorder %v5179_v49, 0.0 }
 0x208   : > { %3468 = vrcp.f32 %v1865_v46 }
 0x209   : > { %3470 = vrcp.f32 %v1861_v4 }
 0x20a   : > { %3472 = vpow2.f32 %v2308_v36  ;;  %v2282_v36 = vmul.f32 %v2250_v51, %v5151_v28 }
 0x20b   : > { %3474 = vpow2.f32 %v2314_v13 }
 0x20c   : > { %3476 = vpow2.f32 %v2310_v44 }
 0x20e   : > { %v5191_v37 = vpop.eup %3460 }
 0x20f   : > { %v1962_v14 = vmul.f32 1.0614054, %v5191_v37  ;;  %v3259_v53 = vpop.f32.mrb[8].mxu0  ;;  %v5206_v32 = vpop.eup %3462 }
 0x210   : > { %v5204_v23 = vadd.f32 %v3259_v53, %v5102_v48  ;;  %v1637_v20 = vpop.f32.mrb[9].mxu0  ;;  %v1960_v61 = vmul.f32 1.0614054, %v5206_v32  ;;  %v5218_v58 = vpop.eup %3464 }
 0x211   : > { %v1994_v56 = vadd.f32 -1.4531521, %v1962_v14  ;;  %v5209_v38 = vadd.f32 %v5102_v48, %v1637_v20  ;;  %v3260_v25 = vpop.f32.mrb[10].mxu0  ;;  %v1963_v55 = vmul.f32 1.0614054, %v5218_v58  ;;  %v3467_v4 = vpop.eup %3466 }
 0x212   : > { %v5216_v57 = vmul.f32 0.70710677, %v5204_v23  ;;  %v1640_v19 = vpop.f32.mrb[11].mxu0  ;;  %v1992_v54 = vadd.f32 -1.4531521, %v1960_v61  ;;  %v5246_v11 = vpop.eup %3468  ;;  %v2374_v14 = vmul.f32 %v3467_v4, %v2214_v0  ;;  %v5255_v10 = vadd.f32 %v3260_v25, %v5102_v48 }
 0x213   : > { %v2026_v21 = vmul.f32 %v5191_v37, %v1994_v56  ;;  %v5225_v18 = vmul.f32 0.70710677, %v5209_v38  ;;  %v1995_v62 = vadd.f32 -1.4531521, %v1963_v55  ;;  %v5251_v44 = vpop.eup %3470  ;;  %v1961_v53 = vmul.f32 1.0614054, %v5246_v11 }
 0x214   : > { %v5232_v16 = vand.u32 2147483647, %v5216_v57  ;;  %v2024_v1 = vmul.f32 %v5206_v32, %v1992_v54  ;;  %6342 = vst [vmem:[#allocation33_spill] sm:$0xff] %v5251_v44  ;;  %v2183_v20 = vadd.f32 0.2548296, %v2151_v27  ;;  %v5258_v28 = vpop.eup %3472  ;;  %v2406_v27 = vsub.f32 1.0, %v2374_v14 }
 0x215   : > { %v2058_v3 = vadd.f32 1.4214138, %v2026_v21  ;;  %v5235_v43 = vand.u32 2147483647, %v5225_v18  ;;  %v2027_v13 = vmul.f32 %v5218_v58, %v1995_v62  ;;  %6343 = vst [vmem:[#allocation34_spill] sm:$0xff] %v5258_v28  ;;  %v3475_v54 = vpop.eup %3474  ;;  %vm2446_vm8 = vcmp.ge.f32.partialorder %v5216_v57, 0.0 }
 0x216   : > { %v1838_v63 = vmul.f32 0.3275911, %v5232_v16  ;;  %v2056_v30 = vadd.f32 1.4214138, %v2024_v1  ;;  %v1993_v51 = vadd.f32 -1.4531521, %v1961_v53  ;;  %v2215_v62 = vmul.f32 %v5131_v33, %v2183_v20 }
 0x217   : > { %v2090_v9 = vmul.f32 %v5191_v37, %v2058_v3  ;;  %v1836_v46 = vmul.f32 0.3275911, %v5235_v43  ;;  %v2059_v21 = vadd.f32 1.4214138, %v2027_v13  ;;  %v2320_v55 = vmul.f32 1.442695, %v2282_v36  ;;  %v5263_v3 = vpop.eup %3476 }
 0x218   : > { %v1870_v41 = vadd.f32 1.0, %v1838_v63  ;;  %v2088_v61 = vmul.f32 %v5206_v32, %v2056_v30  ;;  %v1957_v25 = vmul.f32 1.0614054, %v5251_v44  ;;  %v2052_v0 = vadd.f32 1.4214138, %v2020_v59  ;;  %6344 = vst [vmem:[#allocation35_spill] sm:$0xff] %v5263_v3 }
 0x219   : > { %v2122_v2 = vadd.f32 -0.28449672, %v2090_v9  ;;  %v1868_v56 = vadd.f32 1.0, %v1836_v46  ;;  %v2025_v60 = vmul.f32 %v5246_v11, %v1993_v51  ;;  %v2249_v1 = vsub.f32 0.0, %v5182_v40 }
 0x21a   : > { %3478 = vrcp.f32 %v1870_v41  ;;  %v5268_v15 = vmul.f32 0.70710677, %v5255_v10  ;;  %v2316_v4 = vmul.f32 1.442695, %v2280_v8  ;;  %v2283_v9 = vmul.f32 %v2251_v12, %v5167_v31 }
 0x21b   : > { %3480 = vrcp.f32 %v1868_v56  ;;  %v5273_v63 = vadd.f32 %v5102_v48, %v1640_v19  ;;  %v2154_v59 = vmul.f32 %v5191_v37, %v2122_v2  ;;  %v2120_v46 = vadd.f32 -0.28449672, %v2088_v61 }
 0x21c   : > { %v2091_v36 = vmul.f32 %v5218_v58, %v2059_v21  ;;  %v5278_v30 = vand.u32 2147483647, %v5268_v15  ;;  %3482 = vpow2.f32 %v2320_v55  ;;  %v2057_v13 = vadd.f32 1.4214138, %v2025_v60 }
 0x21d   : > { %v5281_v14 = vmul.f32 0.70710677, %v5273_v63  ;;  %v1989_v33 = vadd.f32 -1.4531521, %v1957_v25  ;;  %v2470_v53 = vsub.f32 0.0, %v2406_v27  ;;  %v2281_v31 = vmul.f32 %v2249_v1, %v5182_v40 }
 0x21e   : > { %v1839_v19 = vmul.f32 0.3275911, %v5278_v30  ;;  %v2084_v12 = vmul.f32 %v5184_v34, %v2052_v0  ;;  %v2375_v41 = vmul.f32 %v3475_v54, %v2215_v62  ;;  %v5287_v20 = vmul.f32 0.5, %v5147_v35 }
 0x21f   : > { %v2322_v2 = vmul.f32 1.442695, %v2283_v9  ;;  %v5290_v8 = vand.u32 2147483647, %v5281_v14  ;;  %v2186_v56 = vadd.f32 0.2548296, %v2154_v59  ;;  %v2152_v61 = vmul.f32 %v5206_v32, %v2120_v46 }
 0x220   : > { %v2123_v21 = vadd.f32 -0.28449672, %v2091_v36  ;;  %v1871_v51 = vadd.f32 1.0, %v1839_v19  ;;  %3484 = vpow2.f32 %v2316_v4  ;;  %v2089_v40 = vmul.f32 %v5246_v11, %v2057_v13 }
 0x221   : > { %v1837_v55 = vmul.f32 0.3275911, %v5290_v8  ;;  %v2021_v25 = vmul.f32 %v5251_v44, %v1989_v33  ;;  %v2502_v35 = vsel %vm2438_vm2, %v2406_v27, %v2470_v53  ;;  %v2318_v0 = vmul.f32 1.442695, %v2281_v31 }
 0x222   : > { %3486 = vrcp.f32 %v1871_v51  ;;  %v5301_v60 = vadd.f32 -0.28449672, %v2084_v12  ;;  %v2407_v62 = vsub.f32 1.0, %v2375_v41  ;;  %v2254_v9 = vsub.f32 0.0, %v5232_v16 }
 0x223   : > { %v1869_v59 = vadd.f32 1.0, %v1837_v55  ;;  %v2218_v36 = vmul.f32 %v5191_v37, %v2186_v56  ;;  %v2184_v13 = vadd.f32 0.2548296, %v2152_v61  ;;  %v2155_v6 = vmul.f32 %v5218_v58, %v2123_v21 }
 0x224   : > { %v5296_v54 = vpop.eup %3478  ;;  %3488 = vpow2.f32 %v2322_v2  ;;  %v5311_v53 = vmul.f32 0.5, %v5171_v52  ;;  %v2121_v31 = vadd.f32 -0.28449672, %v2089_v40  ;;  %v2252_v51 = vsub.f32 0.0, %v5235_v43 }
 0x225   : > { %v5303_v1 = vpop.eup %3480  ;;  %v1966_v4 = vmul.f32 1.0614054, %v5296_v54  ;;  %3490 = vrcp.f32 %v1869_v59  ;;  %v2053_v37 = vadd.f32 1.4214138, %v2021_v25  ;;  %v2534_v61 = vadd.f32 1.0, %v2502_v35 }
 0x226   : > { %v3263_v46 = vpop.f32.mrb[12].mxu0  ;;  %v1964_v27 = vmul.f32 1.0614054, %v5303_v1  ;;  %v3483_v56 = vpop.eup %3482  ;;  %v2471_v21 = vsub.f32 0.0, %v2407_v62  ;;  %v2286_v2 = vmul.f32 %v2254_v9, %v5232_v16  ;;  %v2216_v52 = vmul.f32 %v5206_v32, %v2184_v13 }
 0x227   : > { %v1653_v33 = vpop.f32.mrb[13].mxu0  ;;  %v1998_v19 = vadd.f32 -1.4531521, %v1966_v4  ;;  %v5318_v45 = vmul.f32 %v3483_v56, %v2218_v36  ;;  %v2187_v40 = vadd.f32 0.2548296, %v2155_v6  ;;  %3492 = vpow2.f32 %v2318_v0 }
 0x228   : > { %v3264_v12 = vpop.f32.mrb[14].mxu0  ;;  %v1996_v41 = vadd.f32 -1.4531521, %v1964_v27  ;;  %v2153_v27 = vmul.f32 %v5246_v11, %v2121_v31  ;;  %v5324_v25 = vadd.f32 %v3263_v46, %v5102_v48  ;;  %v2284_v3 = vmul.f32 %v2252_v51, %v5235_v43 }
 0x229   : > { %v5314_v55 = vpop.f32.mrb[15].mxu0  ;;  %v2030_v7 = vmul.f32 %v5296_v54, %v1998_v19  ;;  %v5328_v19 = vadd.f32 %v5102_v48, %v1653_v33  ;;  %v5331_v16 = vmul.f32 %v5251_v44, %v2053_v37  ;;  %v5334_v9 = vmul.f32 %v2534_v61, %v5194_v26 }
 0x22a   : > { %v2028_v4 = vmul.f32 %v5303_v1, %v1996_v41  ;;  %v3485_v32 = vpop.eup %3484  ;;  %v2503_v0 = vsel %vm2439_vm3, %v2407_v62, %v2471_v21  ;;  %v5339_v46 = vmul.f32 0.70710677, %v5324_v25  ;;  %v2410_v43 = vsub.f32 1.0, %v5318_v45 }
 0x22b   : > { %v2062_v59 = vadd.f32 1.4214138, %v2030_v7  ;;  %6345 = vst [vmem:[#allocation36_spill] sm:$0xff] %v5334_v9  ;;  %v2328_v7 = vmul.f32 1.442695, %v2286_v2  ;;  %v2376_v13 = vmul.f32 %v3485_v32, %v2216_v52  ;;  %v2219_v6 = vmul.f32 %v5218_v58, %v2187_v40 }
 0x22c   : > { %v2060_v35 = vadd.f32 1.4214138, %v2028_v4  ;;  %v5341_v36 = vpop.eup %3486  ;;  %v5346_v33 = vmul.f32 0.5, %v5204_v23  ;;  %v2185_v26 = vadd.f32 0.2548296, %v2153_v27  ;;  %v2535_v41 = vadd.f32 1.0, %v2503_v0 }
 0x22d   : > { %v2094_v47 = vmul.f32 %v5296_v54, %v2062_v59  ;;  %v1967_v62 = vmul.f32 1.0614054, %v5341_v36  ;;  %v5352_v31 = vand.u32 2147483647, %v5339_v46  ;;  %v2324_v45 = vmul.f32 1.442695, %v2284_v3 }
 0x22e   : > { %v2092_v51 = vmul.f32 %v5303_v1, %v2060_v35  ;;  %v5356_v37 = vmul.f32 0.70710677, %v5328_v19  ;;  %v3489_v58 = vpop.eup %3488  ;;  %3494 = vpow2.f32 %v2328_v7  ;;  %v2255_v56 = vsub.f32 0.0, %v5278_v30 }
 0x22f   : > { %v1999_v23 = vadd.f32 -1.4531521, %v1967_v62  ;;  %v1842_v61 = vmul.f32 0.3275911, %v5352_v31  ;;  %v5361_v21 = vpop.eup %3490  ;;  %v2474_v2 = vsub.f32 0.0, %v2410_v43  ;;  %v2408_v52 = vsub.f32 1.0, %v2376_v13 }
 0x230   : > { %v2379_v40 = vmul.f32 %v3489_v58, %v2219_v6  ;;  %v5364_v4 = vand.u32 2147483647, %v5356_v37  ;;  %v2217_v3 = vmul.f32 %v5246_v11, %v2185_v26  ;;  %v2126_v27 = vadd.f32 -0.28449672, %v2094_v47 }
 0x231   : > { %v2031_v59 = vmul.f32 %v5341_v36, %v1999_v23  ;;  %v1965_v35 = vmul.f32 1.0614054, %v5361_v21  ;;  %v2124_v32 = vadd.f32 -0.28449672, %v2092_v51  ;;  %v1874_v0 = vadd.f32 1.0, %v1842_v61  ;;  %v3493_v28 = vpop.eup %3492 }
 0x232   : > { %v1840_v7 = vmul.f32 0.3275911, %v5364_v4  ;;  %v5371_v62 = vadd.f32 %v3264_v12, %v5102_v48  ;;  %3496 = vpow2.f32 %v2324_v45  ;;  %v2287_v6 = vmul.f32 %v2255_v56, %v5278_v30 }
 0x233   : > { %v2063_v13 = vadd.f32 1.4214138, %v2031_v59  ;;  %v1997_v58 = vadd.f32 -1.4531521, %v1965_v35  ;;  %v2472_v22 = vsub.f32 0.0, %v2408_v52  ;;  %v2253_v11 = vsub.f32 0.0, %v5290_v8 }
 0x234   : > { %3498 = vrcp.f32 %v1874_v0  ;;  %v1872_v26 = vadd.f32 1.0, %v1840_v7  ;;  %v2411_v47 = vsub.f32 1.0, %v2379_v40  ;;  %v2158_v51 = vmul.f32 %v5296_v54, %v2126_v27 }
 0x235   : > { %v2095_v23 = vmul.f32 %v5341_v36, %v2063_v13  ;;  %v2029_v12 = vmul.f32 %v5361_v21, %v1997_v58  ;;  %v2506_v45 = vsel %vm2442_vm4, %v2410_v43, %v2474_v2  ;;  %v2377_v61 = vmul.f32 %v3493_v28, %v2217_v3 }
 0x236   : > { %v2156_v30 = vmul.f32 %v5303_v1, %v2124_v32  ;;  %v5383_v56 = vmul.f32 0.70710677, %v5371_v62  ;;  %v5386_v59 = vmul.f32 0.5, %v5209_v38  ;;  %v2330_v35 = vmul.f32 1.442695, %v2287_v6 }
 0x237   : > { %v2061_v40 = vadd.f32 1.4214138, %v2029_v12  ;;  %3500 = vrcp.f32 %v1872_v26  ;;  %v2504_v27 = vsel %vm2440_vm5, %v2408_v52, %v2472_v22  ;;  %v2127_v0 = vadd.f32 -0.28449672, %v2095_v23 }
 0x238   : > { %v2285_v7 = vmul.f32 %v2253_v11, %v5290_v8  ;;  %v5392_v24 = vand.u32 2147483647, %v5383_v56  ;;  %v3495_v28 = vpop.eup %3494  ;;  %v2538_v43 = vadd.f32 1.0, %v2506_v45  ;;  %v2475_v2 = vsub.f32 0.0, %v2411_v47 }
 0x239   : > { %v2190_v3 = vadd.f32 0.2548296, %v2158_v51  ;;  %v5397_v38 = vadd.f32 %v5102_v48, %v5314_v55  ;;  %v5400_v39 = vmul.f32 %v2535_v41, %v5201_v50  ;;  %v2409_v22 = vsub.f32 1.0, %v2377_v61 }
 0x23a   : > { %v2188_v52 = vadd.f32 0.2548296, %v2156_v30  ;;  %v1843_v8 = vmul.f32 0.3275911, %v5392_v24  ;;  %v2536_v6 = vadd.f32 1.0, %v2504_v27  ;;  %v5404_v58 = vmul.f32 0.5, %v5255_v10 }
 0x23b   : > { %6346 = vst [vmem:[#allocation37_spill] sm:$0xff] %v5400_v39  ;;  %v5407_v11 = vmul.f32 0.5, %v5273_v63  ;;  %v2093_v26 = vmul.f32 %v5361_v21, %v2061_v40  ;;  %v2159_v51 = vmul.f32 %v5341_v36, %v2127_v0  ;;  %3502 = vpow2.f32 %v2330_v35 }
 0x23c   : > { %v3267_v32 = vpop.f32.mrb[16].mxu0  ;;  %v2326_v50 = vmul.f32 1.442695, %v2285_v7  ;;  %v1875_v41 = vadd.f32 1.0, %v1843_v8  ;;  %v3497_v12 = vpop.eup %3496  ;;  %v5416_v45 = vmul.f32 %v2538_v43, %v5221_v5  ;;  %v2507_v10 = vsel %vm2443_vm6, %v2411_v47, %v2475_v2 }
 0x23d   : > { %v1669_v13 = vpop.f32.mrb[17].mxu0  ;;  %v2222_v63 = vmul.f32 %v5296_v54, %v2190_v3  ;;  %v5422_v61 = vmul.f32 0.70710677, %v5397_v38  ;;  %v2473_v40 = vsub.f32 0.0, %v2409_v22  ;;  %v2220_v35 = vmul.f32 %v5303_v1, %v2188_v52 }
 0x23e   : > { %v5410_v55 = vpop.f32.mrb[18].mxu0  ;;  %6347 = vst [vmem:[#allocation38_spill] sm:$0xff] %v5416_v45  ;;  %v5424_v30 = vpop.eup %3498  ;;  %3504 = vrcp.f32 %v1875_v41  ;;  %v5428_v27 = vadd.f32 %v3267_v32, %v5102_v48  ;;  %v5431_v5 = vmul.f32 %v2536_v6, %v5242_v17  ;;  %v2125_v0 = vadd.f32 -0.28449672, %v2093_v26 }
 0x23f   : > { %v5413_v23 = vpop.f32.mrb[19].mxu0  ;;  %v1970_v42 = vmul.f32 1.0614054, %v5424_v30  ;;  %v2258_v54 = vsub.f32 0.0, %v5352_v31  ;;  %v2539_v47 = vadd.f32 1.0, %v2507_v10  ;;  %3506 = vpow2.f32 %v2326_v50 }
 0x240   : > { %6348 = vst [vmem:[#allocation39_spill] sm:$0xff] %v5431_v5  ;;  %v2191_v7 = vadd.f32 0.2548296, %v2159_v51  ;;  %v5436_v43 = vand.u32 2147483647, %v5422_v61  ;;  %v2382_v1 = vmul.f32 %v3495_v28, %v2222_v63  ;;  %v5441_v3 = vmul.f32 0.5, %v5324_v25 }
 0x241   : > { %v5438_v2 = vpop.eup %3500  ;;  %v2002_v32 = vadd.f32 -1.4531521, %v1970_v42  ;;  %v5444_v17 = vmul.f32 0.70710677, %v5428_v27  ;;  %v2505_v52 = vsel %vm2441_vm7, %v2409_v22, %v2473_v40  ;;  %v2380_v8 = vmul.f32 %v3497_v12, %v2220_v35 }
 0x242   : > { %v1968_v6 = vmul.f32 1.0614054, %v5438_v2  ;;  %v1841_v26 = vmul.f32 0.3275911, %v5436_v43  ;;  %v2157_v51 = vmul.f32 %v5361_v21, %v2125_v0  ;;  %v2290_v28 = vmul.f32 %v2258_v54, %v5352_v31 }
 0x243   : > { %v2034_v50 = vmul.f32 %v5424_v30, %v2002_v32  ;;  %v5454_v25 = vand.u32 2147483647, %v5444_v17  ;;  %v2223_v41 = vmul.f32 %v5341_v36, %v2191_v7  ;;  %v2256_v49 = vsub.f32 0.0, %v5364_v4 }
 0x244   : > { %v2000_v10 = vadd.f32 -1.4531521, %v1968_v6  ;;  %v1873_v22 = vadd.f32 1.0, %v1841_v26  ;;  %v2537_v12 = vadd.f32 1.0, %v2505_v52  ;;  %v2414_v63 = vsub.f32 1.0, %v2382_v1 }
 0x245   : > { %vm2444_vm9 = vcmp.ge.f32.partialorder %v5225_v18, 0.0  ;;  %v2066_v40 = vadd.f32 1.4214138, %v2034_v50  ;;  %v1846_v35 = vmul.f32 0.3275911, %v5454_v25  ;;  %v3503_v0 = vpop.eup %3502  ;;  %v2412_v31 = vsub.f32 1.0, %v2380_v8 }
 0x246   : > { %v2032_v42 = vmul.f32 %v5438_v2, %v2000_v10  ;;  %3508 = vrcp.f32 %v1873_v22  ;;  %v5463_v36 = vadd.f32 %v5102_v48, %v1669_v13  ;;  %v5466_v54 = vmul.f32 %v2539_v47, %v5287_v20 }
 0x247   : > { %v2189_v7 = vadd.f32 0.2548296, %v2157_v51  ;;  %v5469_v1 = vmul.f32 0.5, %v5328_v19  ;;  %v1878_v32 = vadd.f32 1.0, %v1846_v35  ;;  %v2383_v6 = vmul.f32 %v3503_v0, %v2223_v41 }
 0x248   : > { %6349 = vst [vmem:[#allocation40_spill] sm:$0xff] %v5466_v54  ;;  %v5471_v52 = vpop.eup %3504  ;;  %v2336_v26 = vmul.f32 1.442695, %v2290_v28  ;;  %v2064_v50 = vadd.f32 1.4214138, %v2032_v42  ;;  %v2288_v8 = vmul.f32 %v2256_v49, %v5364_v4  ;;  %v5475_v10 = vmul.f32 %v2537_v12, %v5311_v53 }
 0x249   : > { %v2098_v13 = vmul.f32 %v5424_v30, %v2066_v40  ;;  %v1971_v20 = vmul.f32 1.0614054, %v5471_v52  ;;  %3510 = vrcp.f32 %v1878_v32  ;;  %v3507_v47 = vpop.eup %3506  ;;  %v2478_v51 = vsub.f32 0.0, %v2414_v63 }
 0x24a   : > { %6350 = vst [vmem:[#allocation41_spill] sm:$0xff] %v5475_v10  ;;  %v2476_v19 = vsub.f32 0.0, %v2412_v31  ;;  %v2096_v22 = vmul.f32 %v5438_v2, %v2064_v50  ;;  %v5481_v35 = vmul.f32 0.70710677, %v5463_v36  ;;  %vm2447_vm10 = vcmp.ge.f32.partialorder %v5268_v15, 0.0 }
 0x24b   : > { %v2221_v4 = vmul.f32 %v5361_v21, %v2189_v7  ;;  %v2003_v28 = vadd.f32 -1.4531521, %v1971_v20  ;;  %v2259_v53 = vsub.f32 0.0, %v5392_v24  ;;  %v5488_v41 = vadd.f32 %v5410_v55, %v5102_v48 }
 0x24c   : > { %v2415_v49 = vsub.f32 1.0, %v2383_v6  ;;  %3512 = vpow2.f32 %v2336_v26  ;;  %v2332_v12 = vmul.f32 1.442695, %v2288_v8  ;;  %v5491_v40 = vand.u32 2147483647, %v5481_v35 }
 0x24d   : > { %v2130_v0 = vadd.f32 -0.28449672, %v2098_v13  ;;  %v2128_v42 = vadd.f32 -0.28449672, %v2096_v22  ;;  %v5494_v32 = vmul.f32 0.5, %v5371_v62  ;;  %v2035_v21 = vmul.f32 %v5471_v52, %v2003_v28 }
 0x24e   : > { %v2510_v7 = vsel %vm2446_vm8, %v2414_v63, %v2478_v51  ;;  %v2508_v55 = vsel %vm2444_vm9, %v2412_v31, %v2476_v19  ;;  %v1844_v6 = vmul.f32 0.3275911, %v5491_v40  ;;  %v5504_v26 = vadd.f32 %v5102_v48, %v5413_v23 }
 0x24f   : > { %v2381_v50 = vmul.f32 %v3507_v47, %v2221_v4  ;;  %v2291_v8 = vmul.f32 %v2259_v53, %v5392_v24  ;;  %v2257_v62 = vsub.f32 0.0, %v5436_v43  ;;  %v5509_v13 = vmul.f32 0.70710677, %v5488_v41 }
 0x250   : > { %v5511_v20 = vpop.eup %3508  ;;  %v2479_v57 = vsub.f32 0.0, %v2415_v49  ;;  %3514 = vpow2.f32 %v2332_v12  ;;  %v2067_v18 = vadd.f32 1.4214138, %v2035_v21  ;;  %v1876_v63 = vadd.f32 1.0, %v1844_v6 }
 0x251   : > { %v2162_v51 = vmul.f32 %v5424_v30, %v2130_v0  ;;  %v2160_v23 = vmul.f32 %v5438_v2, %v2128_v42  ;;  %v1969_v47 = vmul.f32 1.0614054, %v5511_v20  ;;  %v5517_v24 = vand.u32 2147483647, %v5509_v13 }
 0x252   : > { %v2542_v22 = vadd.f32 1.0, %v2510_v7  ;;  %v2540_v4 = vadd.f32 1.0, %v2508_v55  ;;  %vm2445_vm11 = vcmp.ge.f32.partialorder %v5281_v14, 0.0  ;;  %3516 = vrcp.f32 %v1876_v63 }
 0x253   : > { %v3271_v31 = vpop.f32.mrb[20].mxu0  ;;  %v5523_v28 = vmul.f32 0.70710677, %v5504_v26  ;;  %v5527_v12 = vpop.eup %3510  ;;  %v2413_v0 = vsub.f32 1.0, %v2381_v50  ;;  %v2338_v42 = vmul.f32 1.442695, %v2291_v8  ;;  %v2289_v6 = vmul.f32 %v2257_v62, %v5436_v43 }
 0x254   : > { %v5519_v19 = vpop.f32.mrb[21].mxu0  ;;  %v2001_v21 = vadd.f32 -1.4531521, %v1969_v47  ;;  %v2511_v54 = vsel %vm2447_vm10, %v2415_v49, %v2479_v57  ;;  %v2099_v7 = vmul.f32 %v5471_v52, %v2067_v18  ;;  %v1974_v55 = vmul.f32 1.0614054, %v5527_v12 }
 0x255   : > { %v5525_v53 = vpop.f32.mrb[22].mxu0  ;;  %v1847_v63 = vmul.f32 0.3275911, %v5517_v24  ;;  %v2194_v10 = vadd.f32 0.2548296, %v2162_v51  ;;  %v2262_v50 = vsub.f32 0.0, %v5454_v25  ;;  %v5546_v57 = vmul.f32 %v2542_v22, %v5346_v33 }
 0x256   : > { %v5535_v45 = vpop.f32.mrb[23].mxu0  ;;  %v2192_v5 = vadd.f32 0.2548296, %v2160_v23  ;;  %v2033_v39 = vmul.f32 %v5511_v20, %v2001_v21  ;;  %v3513_v8 = vpop.eup %3512  ;;  %v5540_v43 = vmul.f32 0.5, %v5397_v38  ;;  %v2006_v15 = vadd.f32 -1.4531521, %v1974_v55 }
 0x257   : > { %v1879_v49 = vadd.f32 1.0, %v1847_v63  ;;  %v5543_v62 = vand.u32 2147483647, %v5523_v28  ;;  %v2543_v18 = vadd.f32 1.0, %v2511_v54  ;;  %v2477_v47 = vsub.f32 0.0, %v2413_v0 }
 0x258   : > { %v2065_v51 = vadd.f32 1.4214138, %v2033_v39  ;;  %v5549_v23 = vmul.f32 %v2540_v4, %v5386_v59  ;;  %v2131_v21 = vadd.f32 -0.28449672, %v2099_v7  ;;  %v2038_v9 = vmul.f32 %v5527_v12, %v2006_v15 }
 0x259   : > { %3518 = vrcp.f32 %v1879_v49  ;;  %v2334_v55 = vmul.f32 1.442695, %v2289_v6  ;;  %v2294_v63 = vmul.f32 %v2262_v50, %v5454_v25  ;;  %v1845_v29 = vmul.f32 0.3275911, %v5543_v62 }
 0x25a   : > { %v2097_v38 = vmul.f32 %v5511_v20, %v2065_v51  ;;  %v3515_v44 = vpop.eup %3514  ;;  %v2226_v33 = vmul.f32 %v5424_v30, %v2194_v10  ;;  %v2224_v54 = vmul.f32 %v5438_v2, %v2192_v5  ;;  %3520 = vpow2.f32 %v2338_v42 }
 0x25b   : > { %v2070_v39 = vadd.f32 1.4214138, %v2038_v9  ;;  %v5558_v59 = vmul.f32 %v2543_v18, %v5404_v58  ;;  %v2509_v22 = vsel %vm2445_vm11, %v2413_v0, %v2477_v47  ;;  %v5563_v4 = vmul.f32 0.5, %v5428_v27 }
 0x25c   : > { %v1877_v6 = vadd.f32 1.0, %v1845_v29  ;;  %v5565_v25 = vpop.eup %3516  ;;  %v2163_v7 = vmul.f32 %v5471_v52, %v2131_v21  ;;  %v2129_v50 = vadd.f32 -0.28449672, %v2097_v38  ;;  %v5570_v5 = vadd.f32 %v3271_v31, %v5102_v48 }
 0x25d   : > { %6351 = vst [vmem:[#allocation42_spill] sm:$0xff] %v5558_v59  ;;  %v2102_v30 = vmul.f32 %v5527_v12, %v2070_v39  ;;  %3522 = vpow2.f32 %v2334_v55  ;;  %v2344_v9 = vmul.f32 1.442695, %v2294_v63  ;;  %v1972_v58 = vmul.f32 1.0614054, %v5565_v25 }
 0x25e   : > { %v2260_v14 = vsub.f32 0.0, %v5491_v40  ;;  %v2386_v2 = vmul.f32 %v3513_v8, %v2226_v33  ;;  %v5574_v27 = vmul.f32 %v3515_v44, %v2224_v54  ;;  %3524 = vrcp.f32 %v1877_v6 }
 0x25f   : > { %v2134_v29 = vadd.f32 -0.28449672, %v2102_v30  ;;  %v2541_v10 = vadd.f32 1.0, %v2509_v22  ;;  %v5577_v0 = vmul.f32 0.5, %v5463_v36  ;;  %v2004_v42 = vadd.f32 -1.4531521, %v1972_v58 }
 0x260   : > { %v5581_v31 = vadd.f32 %v5102_v48, %v5519_v19  ;;  %v2195_v15 = vadd.f32 0.2548296, %v2163_v7  ;;  %v2161_v49 = vmul.f32 %v5511_v20, %v2129_v50  ;;  %v5586_v8 = vmul.f32 0.70710677, %v5570_v5 }
 0x261   : > { %v2166_v18 = vmul.f32 %v5527_v12, %v2134_v29  ;;  %vm2450_vm12 = vcmp.ge.f32.partialorder %v5339_v46, 0.0  ;;  %3526 = vpow2.f32 %v2344_v9  ;;  %v2036_v44 = vmul.f32 %v5565_v25, %v2004_v42 }
 0x262   : > { %v2292_v36 = vmul.f32 %v2260_v14, %v5491_v40  ;;  %v5592_v47 = vmul.f32 0.5, %v5488_v41  ;;  %v2418_v19 = vsub.f32 1.0, %v2386_v2  ;;  %v2416_v51 = vsub.f32 1.0, %v5574_v27 }
 0x263   : > { %v5594_v48 = vpop.eup %3518  ;;  %vm2448_vm13 = vcmp.ge.f32.partialorder %v5356_v37, 0.0  ;;  %v2263_v21 = vsub.f32 0.0, %v5517_v24  ;;  %v5600_v38 = vand.u32 2147483647, %v5586_v8  ;;  %v5603_v55 = vmul.f32 %v2541_v10, %v5407_v11 }
 0x264   : > { %v2068_v63 = vadd.f32 1.4214138, %v2036_v44  ;;  %v1975_v40 = vmul.f32 1.0614054, %v5594_v48  ;;  %v5607_v41 = vmul.f32 0.70710677, %v5581_v31  ;;  %v3521_v33 = vpop.eup %3520  ;;  %v2227_v54 = vmul.f32 %v5471_v52, %v2195_v15 }
 0x265   : > { %v2193_v39 = vadd.f32 0.2548296, %v2161_v49  ;;  %v2198_v22 = vadd.f32 0.2548296, %v2166_v18  ;;  %v1850_v6 = vmul.f32 0.3275911, %v5600_v38  ;;  %v2295_v14 = vmul.f32 %v2263_v21, %v5517_v24 }
 0x266   : > { %v2100_v7 = vmul.f32 %v5565_v25, %v2068_v63  ;;  %v2340_v50 = vmul.f32 1.442695, %v2292_v36  ;;  %v2007_v30 = vadd.f32 -1.4531521, %v1975_v40  ;;  %v5613_v11 = vand.u32 2147483647, %v5607_v41 }
 0x267   : > { %v2482_v9 = vsub.f32 0.0, %v2418_v19  ;;  %v2480_v58 = vsub.f32 0.0, %v2416_v51  ;;  %v1882_v2 = vadd.f32 1.0, %v1850_v6  ;;  %v3523_v29 = vpop.eup %3522  ;;  %v2261_v42 = vsub.f32 0.0, %v5543_v62 }
 0x268   : > { %v2132_v10 = vadd.f32 -0.28449672, %v2100_v7  ;;  %v2039_v52 = vmul.f32 %v5594_v48, %v2007_v30  ;;  %v1848_v15 = vmul.f32 0.3275911, %v5613_v11  ;;  %v5621_v18 = vpop.eup %3524  ;;  %v2387_v44 = vmul.f32 %v3521_v33, %v2227_v54 }
 0x269   : > { %v3275_v27 = vpop.f32.mrb[24].mxu0  ;;  %v2225_v36 = vmul.f32 %v5511_v20, %v2193_v39  ;;  %v2230_v63 = vmul.f32 %v5527_v12, %v2198_v22  ;;  %3528 = vrcp.f32 %v1882_v2  ;;  %v1973_v6 = vmul.f32 1.0614054, %v5621_v18  ;;  %v5636_v20 = vld [vmem:[%s6337_s26] ss:$0 sm:$0xff] }
 0x26a   : > { %v5619_v49 = vpop.f32.mrb[25].mxu0  ;;  %v2164_v21 = vmul.f32 %v5565_v25, %v2132_v10  ;;  %3530 = vpow2.f32 %v2340_v50  ;;  %v2071_v40 = vadd.f32 1.4214138, %v2039_v52  ;;  %v2514_v30 = vsel %vm2450_vm12, %v2418_v19, %v2482_v9 }
 0x26b   : > { %v5625_v24 = vpop.f32.mrb[26].mxu0  ;;  %v2346_v59 = vmul.f32 1.442695, %v2295_v14  ;;  %v1880_v33 = vadd.f32 1.0, %v1848_v15  ;;  %v5640_v12 = vadd.f32 %v5636_v20, %v5525_v53  ;;  %v3527_v54 = vpop.eup %3526  ;;  %v2512_v39 = vsel %vm2448_vm13, %v2416_v51, %v2480_v58 }
 0x26c   : > { %v5629_v7 = vpop.f32.mrb[27].mxu0  ;;  %vm2451_vm14 = vcmp.ge.f32.partialorder %v5383_v56, 0.0  ;;  %v2103_v46 = vmul.f32 %v5594_v48, %v2071_v40  ;;  %v2005_v19 = vadd.f32 -1.4531521, %v1973_v6  ;;  %v2293_v22 = vmul.f32 %v2261_v42, %v5543_v62 }
 0x26d   : > { %v2419_v50 = vsub.f32 1.0, %v2387_v44  ;;  %v2385_v9 = vmul.f32 %v3523_v29, %v2225_v36  ;;  %v2390_v14 = vmul.f32 %v3527_v54, %v2230_v63  ;;  %3532 = vrcp.f32 %v1880_v33 }
 0x26e   : > { %v2196_v2 = vadd.f32 0.2548296, %v2164_v21  ;;  %v2135_v10 = vadd.f32 -0.28449672, %v2103_v46  ;;  %v5648_v53 = vmul.f32 0.5, %v5504_v26  ;;  %v2037_v52 = vmul.f32 %v5621_v18, %v2005_v19 }
 0x26f   : > { %v2546_v37 = vadd.f32 1.0, %v2514_v30  ;;  %v2544_v51 = vadd.f32 1.0, %v2512_v39  ;;  %v5652_v58 = vmul.f32 0.70710677, %v5640_v12  ;;  %v5656_v15 = vadd.f32 %v5636_v20, %v5535_v45 }
 0x270   : > { %vm2449_vm15 = vcmp.ge.f32.partialorder %v5422_v61, 0.0  ;;  %v2167_v62 = vmul.f32 %v5594_v48, %v2135_v10  ;;  %3534 = vpow2.f32 %v2346_v59  ;;  %v2069_v29 = vadd.f32 1.4214138, %v2037_v52 }
 0x271   : > { %v2342_v42 = vmul.f32 1.442695, %v2293_v22  ;;  %v2483_v26 = vsub.f32 0.0, %v2419_v50  ;;  %v2417_v44 = vsub.f32 1.0, %v2385_v9  ;;  %v2422_v36 = vsub.f32 1.0, %v2390_v14 }
 0x272   : > { %vm2454_vm0 = vcmp.ge.f32.partialorder %v5444_v17, 0.0  ;;  %v5662_v63 = vand.u32 2147483647, %v5652_v58  ;;  %v2228_v21 = vmul.f32 %v5565_v25, %v2196_v2  ;;  %v2101_v45 = vmul.f32 %v5621_v18, %v2069_v29 }
 0x273   : > { %v5667_v40 = vmul.f32 0.70710677, %v5656_v15  ;;  %v5670_v6 = vadd.f32 %v5636_v20, %v3275_v27  ;;  %v5672_v59 = vpop.eup %3528  ;;  %v5675_v30 = vmul.f32 %v2546_v37, %v5441_v3  ;;  %v5678_v33 = vmul.f32 %v2544_v51, %v5469_v1 }
 0x274   : > { %v2199_v54 = vadd.f32 0.2548296, %v2167_v62  ;;  %v1851_v39 = vmul.f32 0.3275911, %v5662_v63  ;;  %v3531_v25 = vpop.eup %3530  ;;  %v2133_v46 = vadd.f32 -0.28449672, %v2101_v45  ;;  %3536 = vpow2.f32 %v2342_v42 }
 0x275   : > { %v1978_v19 = vmul.f32 1.0614054, %v5672_v59  ;;  %v2266_v22 = vsub.f32 0.0, %v5600_v38  ;;  %v2515_v27 = vsel %vm2451_vm14, %v2419_v50, %v2483_v26  ;;  %v2481_v9 = vsub.f32 0.0, %v2417_v44 }
 0x276   : > { %v1883_v14 = vadd.f32 1.0, %v1851_v39  ;;  %v5686_v3 = vand.u32 2147483647, %v5667_v40  ;;  %v2486_v1 = vsub.f32 0.0, %v2422_v36  ;;  %v5688_v2 = vmul.f32 %v3531_v25, %v2228_v21 }
 0x277   : > { %v2010_v10 = vadd.f32 -1.4531521, %v1978_v19  ;;  %v5691_v52 = vmul.f32 0.70710677, %v5670_v6  ;;  %v5693_v37 = vpop.eup %3532  ;;  %v2231_v51 = vmul.f32 %v5594_v48, %v2199_v54  ;;  %v2165_v62 = vmul.f32 %v5621_v18, %v2133_v46 }
 0x278   : > { %3538 = vrcp.f32 %v1883_v14  ;;  %v1849_v56 = vmul.f32 0.3275911, %v5686_v3  ;;  %v2298_v42 = vmul.f32 %v2266_v22, %v5600_v38  ;;  %v1976_v26 = vmul.f32 1.0614054, %v5693_v37 }
 0x279   : > { %v5698_v50 = vpop.f32.mrb[28].mxu0  ;;  %v2042_v29 = vmul.f32 %v5672_v59, %v2010_v10  ;;  %v2264_v21 = vsub.f32 0.0, %v5613_v11  ;;  %v2547_v39 = vadd.f32 1.0, %v2515_v27  ;;  %v2513_v48 = vsel %vm2449_vm15, %v2417_v44, %v2481_v9 }
 0x27a   : > { %v5704_v45 = vpop.f32.mrb[29].mxu0  ;;  %v5709_v54 = vmul.f32 0.5, %v5570_v5  ;;  %v1881_v25 = vadd.f32 1.0, %v1849_v56  ;;  %v3535_v19 = vpop.eup %3534  ;;  %v2518_v38 = vsel %vm2454_vm0, %v2422_v36, %v2486_v1  ;;  %v2420_v22 = vsub.f32 1.0, %v5688_v2 }
 0x27b   : > { %v5711_v46 = vpop.f32.mrb[30].mxu0  ;;  %vm2452_vm1 = vcmp.ge.f32.partialorder %v5481_v35, 0.0  ;;  %v2074_v14 = vadd.f32 1.4214138, %v2042_v29  ;;  %v2008_v10 = vadd.f32 -1.4531521, %v1976_v26  ;;  %v2391_v61 = vmul.f32 %v3535_v19, %v2231_v51 }
 0x27c   : > { %v5717_v27 = vpop.f32.mrb[31].mxu0  ;;  %v2197_v44 = vadd.f32 0.2548296, %v2165_v62  ;;  %3540 = vrcp.f32 %v1881_v25  ;;  %v5720_v5 = vand.u32 2147483647, %v5691_v52  ;;  %v2296_v36 = vmul.f32 %v2264_v21, %v5613_v11 }
 0x27d   : > { %v2106_v9 = vmul.f32 %v5672_v59, %v2074_v14  ;;  %v2352_v56 = vmul.f32 1.442695, %v2298_v42  ;;  %v2040_v17 = vmul.f32 %v5693_v37, %v2008_v10  ;;  %v5726_v1 = vmul.f32 %v2547_v39, %v5494_v32 }
 0x27e   : > { %v2545_v2 = vadd.f32 1.0, %v2513_v48  ;;  %v5729_v29 = vmul.f32 0.5, %v5581_v31  ;;  %v1854_v51 = vmul.f32 0.3275911, %v5720_v5  ;;  %v3537_v62 = vpop.eup %3536  ;;  %v2550_v26 = vadd.f32 1.0, %v2518_v38 }
 0x27f   : > { %6352 = vst [vmem:[#allocation43_spill] sm:$0xff] %v5726_v1  ;;  %vm2455_vm2 = vcmp.ge.f32.partialorder %v5509_v13, 0.0  ;;  %v2138_v25 = vadd.f32 -0.28449672, %v2106_v9  ;;  %v2072_v19 = vadd.f32 1.4214138, %v2040_v17  ;;  %v5735_v42 = vadd.f32 %v5636_v20, %v5619_v49 }
 0x280   : > { %v2484_v11 = vsub.f32 0.0, %v2420_v22  ;;  %v2423_v21 = vsub.f32 1.0, %v2391_v61  ;;  %v2229_v32 = vmul.f32 %v5621_v18, %v2197_v44  ;;  %v1886_v39 = vadd.f32 1.0, %v1854_v51 }
 0x281   : > { %v2170_v31 = vmul.f32 %v5672_v59, %v2138_v25  ;;  %3542 = vpow2.f32 %v2352_v56  ;;  %v2104_v48 = vmul.f32 %v5693_v37, %v2072_v19  ;;  %v2348_v14 = vmul.f32 1.442695, %v2296_v36 }
 0x282   : > { %v5740_v38 = vpop.eup %3538  ;;  %v2267_v10 = vsub.f32 0.0, %v5662_v63  ;;  %3544 = vrcp.f32 %v1886_v39  ;;  %v5744_v9 = vmul.f32 0.70710677, %v5735_v42  ;;  %v5748_v49 = vadd.f32 %v5636_v20, %v5625_v24 }
 0x283   : > { %v5751_v18 = vmul.f32 %v2545_v2, %v5540_v43  ;;  %v5754_v61 = vmul.f32 %v2550_v26, %v5563_v4  ;;  %v5757_v44 = vmul.f32 0.5, %v5640_v12  ;;  %v1979_v56 = vmul.f32 1.0614054, %v5740_v38 }
 0x284   : > { %v2516_v17 = vsel %vm2452_vm1, %v2420_v22, %v2484_v11  ;;  %v2487_v36 = vsub.f32 0.0, %v2423_v21  ;;  %v2389_v51 = vmul.f32 %v3537_v62, %v2229_v32  ;;  %v5763_v25 = vand.u32 2147483647, %v5744_v9 }
 0x285   : > { %6353 = vst [vmem:[#allocation44_spill] sm:$0xff] %v5754_v61  ;;  %v2202_v24 = vadd.f32 0.2548296, %v2170_v31  ;;  %v2136_v19 = vadd.f32 -0.28449672, %v2104_v48  ;;  %3546 = vpow2.f32 %v2348_v14  ;;  %v2299_v4 = vmul.f32 %v2267_v10, %v5662_v63 }
 0x286   : > { %v2011_v43 = vadd.f32 -1.4531521, %v1979_v56  ;;  %v5765_v2 = vpop.eup %3540  ;;  %v5769_v12 = vmul.f32 0.5, %v5656_v15  ;;  %v1852_v26 = vmul.f32 0.3275911, %v5763_v25  ;;  %v2548_v22 = vadd.f32 1.0, %v2516_v17 }
 0x287   : > { %v5773_v35 = vmul.f32 0.70710677, %v5748_v49  ;;  %vm2453_vm3 = vcmp.ge.f32.partialorder %v5523_v28, 0.0  ;;  %v1977_v11 = vmul.f32 1.0614054, %v5765_v2  ;;  %v2265_v32 = vsub.f32 0.0, %v5686_v3 }
 0x288   : > { %v2043_v62 = vmul.f32 %v5740_v38, %v2011_v43  ;;  %v2519_v63 = vsel %vm2455_vm2, %v2423_v21, %v2487_v36  ;;  %v2421_v39 = vsub.f32 1.0, %v2389_v51  ;;  %v1884_v15 = vadd.f32 1.0, %v1852_v26 }
 0x289   : > { %v5782_v31 = vand.u32 2147483647, %v5773_v35  ;;  %v2234_v48 = vmul.f32 %v5672_v59, %v2202_v24  ;;  %v2168_v14 = vmul.f32 %v5693_v37, %v2136_v19  ;;  %v2009_v56 = vadd.f32 -1.4531521, %v1977_v11 }
 0x28a   : > { %v2075_v10 = vadd.f32 1.4214138, %v2043_v62  ;;  %v2354_v17 = vmul.f32 1.442695, %v2299_v4  ;;  %v2270_v43 = vsub.f32 0.0, %v5720_v5  ;;  %3548 = vrcp.f32 %v1884_v15 }
 0x28b   : > { %v1855_v61 = vmul.f32 0.3275911, %v5782_v31  ;;  %v3543_v1 = vpop.eup %3542  ;;  %v2551_v13 = vadd.f32 1.0, %v2519_v63  ;;  %v2041_v36 = vmul.f32 %v5765_v2, %v2009_v56  ;;  %v2297_v51 = vmul.f32 %v2265_v32, %v5686_v3 }
 0x28c   : > { %v2107_v21 = vmul.f32 %v5740_v38, %v2075_v10  ;;  %v5791_v26 = vpop.eup %3544  ;;  %v2485_v59 = vsub.f32 0.0, %v2421_v39  ;;  %v5794_v24 = vmul.f32 0.5, %v5670_v6  ;;  %v5798_v4 = vadd.f32 %v5636_v20, %v5629_v7 }
 0x28d   : > { %v1887_v19 = vadd.f32 1.0, %v1855_v61  ;;  %v5801_v62 = vmul.f32 %v2548_v22, %v5577_v0  ;;  %v2394_v11 = vmul.f32 %v3543_v1, %v2234_v48  ;;  %v2200_v63 = vadd.f32 0.2548296, %v2168_v14 }
 0x28e   : > { %v2073_v15 = vadd.f32 1.4214138, %v2041_v36  ;;  %v2139_v10 = vadd.f32 -0.28449672, %v2107_v21  ;;  %v1982_v3 = vmul.f32 1.0614054, %v5791_v26  ;;  %v2302_v32 = vmul.f32 %v2270_v43, %v5720_v5 }
 0x28f   : > { %3550 = vrcp.f32 %v1887_v19  ;;  %v3547_v56 = vpop.eup %3546  ;;  %v5806_v6 = vmul.f32 %v2551_v13, %v5592_v47  ;;  %v2350_v61 = vmul.f32 1.442695, %v2297_v51  ;;  %v2268_v7 = vsub.f32 0.0, %v5763_v25 }
 0x290   : > { %3552 = vpow2.f32 %v2354_v17  ;;  %v2517_v0 = vsel %vm2453_vm3, %v2421_v39, %v2485_v59  ;;  %vm2458_vm4 = vcmp.ge.f32.partialorder %v5586_v8, 0.0  ;;  %v2105_v1 = vmul.f32 %v5765_v2, %v2073_v15 }
 0x291   : > { %v2014_v22 = vadd.f32 -1.4531521, %v1982_v3  ;;  %v5814_v48 = vmul.f32 0.70710677, %v5798_v4  ;;  %v2426_v5 = vsub.f32 1.0, %v2394_v11  ;;  %v2232_v14 = vmul.f32 %v5693_v37, %v2200_v63 }
 0x292   : > { %v5818_v47 = vmul.f32 0.5, %v5735_v42  ;;  %v5822_v17 = vadd.f32 %v5636_v20, %v5698_v50  ;;  %v2171_v28 = vmul.f32 %v5740_v38, %v2139_v10  ;;  %v2360_v43 = vmul.f32 1.442695, %v2302_v32 }
 0x293   : > { %v2046_v39 = vmul.f32 %v5791_v26, %v2014_v22  ;;  %v1821_v13 = vand.u32 2147483647, %v5814_v48  ;;  %v2549_v21 = vadd.f32 1.0, %v2517_v0  ;;  %v2300_v36 = vmul.f32 %v2268_v7, %v5763_v25 }
 0x294   : > { %6354 = vst [vmem:[#allocation45_spill] sm:$0xff] %v5822_v17  ;;  %v2271_v51 = vsub.f32 0.0, %v5782_v31  ;;  %v5830_v37 = vmul.f32 0.70710677, %v5822_v17  ;;  %v5832_v42 = vpop.eup %3548  ;;  %v2137_v59 = vadd.f32 -0.28449672, %v2105_v1  ;;  %3554 = vpow2.f32 %v2350_v61 }
 0x295   : > { %v2078_v50 = vadd.f32 1.4214138, %v2046_v39  ;;  %v1853_v19 = vmul.f32 0.3275911, %v1821_v13  ;;  %v2490_v11 = vsub.f32 0.0, %v2426_v5  ;;  %v5834_v63 = vmul.f32 %v3547_v56, %v2232_v14 }
 0x296   : > { %6355 = vst [vmem:[#allocation46_spill] sm:$0xff] %v5830_v37  ;;  %v1980_v15 = vmul.f32 1.0614054, %v5832_v42  ;;  %v5838_v10 = vand.u32 2147483647, %v5830_v37  ;;  %v5842_v32 = vmul.f32 0.5, %v5748_v49  ;;  %3556 = vpow2.f32 %v2360_v43 }
 0x297   : > { %v2203_v25 = vadd.f32 0.2548296, %v2171_v28  ;;  %v2110_v3 = vmul.f32 %v5791_v26, %v2078_v50  ;;  %v1885_v7 = vadd.f32 1.0, %v1853_v19  ;;  %v2356_v61 = vmul.f32 1.442695, %v2300_v36 }
 0x298   : > { %v2012_v0 = vadd.f32 -1.4531521, %v1980_v15  ;;  %v1858_v1 = vmul.f32 0.3275911, %v5838_v10  ;;  %v2169_v56 = vmul.f32 %v5765_v2, %v2137_v59  ;;  %v2303_v39 = vmul.f32 %v2271_v51, %v5782_v31 }
 0x299   : > { %v5845_v22 = vpop.eup %3550  ;;  %v2142_v14 = vadd.f32 -0.28449672, %v2110_v3  ;;  %3558 = vrcp.f32 %v1885_v7  ;;  %v2522_v50 = vsel %vm2458_vm4, %v2426_v5, %v2490_v11  ;;  %v2424_v49 = vsub.f32 1.0, %v5834_v63 }
 0x29a   : > { %v3553_v28 = vpop.eup %3552  ;;  %v2044_v43 = vmul.f32 %v5832_v42, %v2012_v0  ;;  %v1983_v36 = vmul.f32 1.0614054, %v5845_v22  ;;  %v2235_v19 = vmul.f32 %v5740_v38, %v2203_v25  ;;  %v2269_v17 = vsub.f32 0.0, %v1821_v13 }
 0x29b   : > { %v2174_v15 = vmul.f32 %v5791_v26, %v2142_v14  ;;  %v1890_v59 = vadd.f32 1.0, %v1858_v1  ;;  %v5857_v3 = vmul.f32 %v2549_v21, %v5648_v53  ;;  %vm2456_vm5 = vcmp.ge.f32.partialorder %v5607_v41, 0.0 }
 0x29c   : > { %v2076_v31 = vadd.f32 1.4214138, %v2044_v43  ;;  %3560 = vpow2.f32 %v2356_v61  ;;  %v2015_v8 = vadd.f32 -1.4531521, %v1983_v36  ;;  %v5860_v5 = vadd.f32 1.0, %v2522_v50 }
 0x29d   : > { %v2201_v51 = vadd.f32 0.2548296, %v2169_v56  ;;  %v2362_v11 = vmul.f32 1.442695, %v2303_v39  ;;  %3562 = vrcp.f32 %v1890_v59  ;;  %v2488_v63 = vsub.f32 0.0, %v2424_v49  ;;  %v6356_v39 = vld [vmem:[#allocation33_spill] sm:$0xff] }
 0x29e   : > { %v2108_v38 = vmul.f32 %v5832_v42, %v2076_v31  ;;  %v2047_v25 = vmul.f32 %v5845_v22, %v2015_v8  ;;  %v2117_v7 = vadd.f32 -0.28449672, %v5331_v16  ;;  %v3555_v0 = vpop.eup %3554  ;;  %v5865_v53 = vmul.f32 %v3553_v28, %v2235_v19 }
 0x29f   : > { %v2206_v21 = vadd.f32 0.2548296, %v2174_v15  ;;  %v2301_v1 = vmul.f32 %v2269_v17, %v1821_v13  ;;  %v2148_v61 = vmul.f32 %v5184_v34, %v5301_v60  ;;  %v5870_v56 = vmul.f32 0.5, %v5798_v4  ;;  %v6357_v17 = vld [vmem:[#allocation29_spill] sm:$0xff]  ;;  %v6358_v4 = vld [vmem:[#allocation36_spill] sm:$0xff] }
 0x2a0   : > { %v2140_v14 = vadd.f32 -0.28449672, %v2108_v38  ;;  %v2079_v50 = vadd.f32 1.4214138, %v2047_v25  ;;  %v2149_v43 = vmul.f32 %v6356_v39, %v2117_v7  ;;  %v2233_v36 = vmul.f32 %v5765_v2, %v2201_v51  ;;  %v3557_v28 = vpop.eup %3556  ;;  %v6359_v15 = vld [vmem:[#allocation37_spill] sm:$0xff]  ;;  %v6360_v38 = vld [vmem:[#allocation30_spill] sm:$0xff] }
 0x2a1   : > { %3564 = vpow2.f32 %v2362_v11  ;;  %v2180_v59 = vadd.f32 0.2548296, %v2148_v61  ;;  %v5876_v16 = vadd.f32 %v5636_v20, %v5704_v45  ;;  %vm2436_vm6 = vcmp.ge.f32.partialorder %v6357_v17, 0.0 }
 0x2a2   : > { %v2172_v60 = vmul.f32 %v5832_v42, %v2140_v14  ;;  %v2111_v13 = vmul.f32 %v5845_v22, %v2079_v50  ;;  %v2181_v19 = vadd.f32 0.2548296, %v2149_v43  ;;  %v2427_v2 = vsub.f32 1.0, %v5865_v53  ;;  %v6361_v53 = vld [vmem:[#allocation34_spill] sm:$0xff] }
 0x2a3   : > { %v5883_v8 = vpop.eup %3558  ;;  %vm2459_vm7 = vcmp.ge.f32.partialorder %v5652_v58, 0.0  ;;  %v2238_v45 = vmul.f32 %v5791_v26, %v2206_v21  ;;  %v2358_v51 = vmul.f32 1.442695, %v2301_v1  ;;  %v2212_v11 = vmul.f32 %v5184_v34, %v2180_v59  ;;  %v6362_v59 = vld [vmem:[#allocation35_spill] sm:$0xff] }
 0x2a4   : > { %vm2437_vm8 = vcmp.ge.f32.partialorder %v6360_v38, 0.0  ;;  %v2204_v25 = vadd.f32 0.2548296, %v2172_v60  ;;  %v2143_v7 = vadd.f32 -0.28449672, %v2111_v13  ;;  %v2213_v14 = vmul.f32 %v6356_v39, %v2181_v19 }
 0x2a5   : > { %v1981_v61 = vmul.f32 1.0614054, %v5883_v8  ;;  %v2520_v50 = vsel %vm2456_vm5, %v2424_v49, %v2488_v63  ;;  %v2393_v43 = vmul.f32 %v3555_v0, %v2233_v36  ;;  %v2372_v31 = vmul.f32 %v6361_v53, %v2212_v11 }
 0x2a6   : > { %v5896_v37 = vmul.f32 0.70710677, %v5876_v16  ;;  %v3561_v26 = vpop.eup %3560  ;;  %v2236_v34 = vmul.f32 %v5832_v42, %v2204_v25  ;;  %v2175_v21 = vmul.f32 %v5845_v22, %v2143_v7  ;;  %v2373_v60 = vmul.f32 %v6362_v59, %v2213_v14 }
 0x2a7   : > { %v2013_v1 = vadd.f32 -1.4531521, %v1981_v61  ;;  %v5901_v13 = vpop.eup %3562  ;;  %v2491_v39 = vsub.f32 0.0, %v2427_v2  ;;  %v2274_v41 = vsub.f32 0.0, %v5838_v10  ;;  %v2404_v49 = vsub.f32 1.0, %v2372_v31 }
 0x2a8   : > { %v5905_v63 = vand.u32 2147483647, %v5896_v37  ;;  %v5907_v0 = vmul.f32 %v3557_v28, %v2238_v45  ;;  %v2207_v36 = vadd.f32 0.2548296, %v2175_v21  ;;  %3566 = vpow2.f32 %v2358_v51 }
 0x2a9   : > { %v2045_v19 = vmul.f32 %v5883_v8, %v2013_v1  ;;  %vm2457_vm9 = vcmp.ge.f32.partialorder %v5667_v40, 0.0  ;;  %v1986_v42 = vmul.f32 1.0614054, %v5901_v13  ;;  %v2405_v11 = vsub.f32 1.0, %v2373_v60 }
 0x2aa   : > { %v2468_v25 = vsub.f32 0.0, %v2404_v49  ;;  %v1856_v7 = vmul.f32 0.3275911, %v5905_v63  ;;  %v2425_v61 = vsub.f32 1.0, %v2393_v43  ;;  %v2396_v14 = vmul.f32 %v3561_v26, %v2236_v34 }
 0x2ab   : > { %v2239_v31 = vmul.f32 %v5845_v22, %v2207_v36  ;;  %v2077_v53 = vadd.f32 1.4214138, %v2045_v19  ;;  %v3565_v59 = vpop.eup %3564  ;;  %vm2463_vm10 = vcmp.ge.f32.partialorder %v5773_v35, 0.0  ;;  %v2018_v28 = vadd.f32 -1.4531521, %v1986_v42 }
 0x2ac   : > { %v2469_v45 = vsub.f32 0.0, %v2405_v11  ;;  %v2500_v51 = vsel %vm2436_vm6, %v2404_v49, %v2468_v25  ;;  %v1888_v21 = vadd.f32 1.0, %v1856_v7  ;;  %v2523_v1 = vsel %vm2459_vm7, %v2427_v2, %v2491_v39 }
 0x2ad   : > { %vm2462_vm11 = vcmp.ge.f32.partialorder %v5691_v52, 0.0  ;;  %v2399_v60 = vmul.f32 %v3565_v59, %v2239_v31  ;;  %v2109_v43 = vmul.f32 %v5883_v8, %v2077_v53  ;;  %v2532_v26 = vadd.f32 1.0, %v2500_v51  ;;  %v6364_v31 = vld [vmem:[#allocation32_spill] sm:$0xff] }
 0x2ae   : > { %v2430_v22 = vsub.f32 1.0, %v5907_v0  ;;  %v2501_v34 = vsel %vm2437_vm8, %v2405_v11, %v2469_v45  ;;  %3568 = vrcp.f32 %v1888_v21  ;;  %v5926_v17 = vadd.f32 %v5636_v20, %v5711_v46  ;;  %v6363_v11 = vld [vmem:[#allocation31_spill] sm:$0xff] }
 0x2af   : > { %v2489_v49 = vsub.f32 0.0, %v2425_v61  ;;  %vm2460_vm12 = vcmp.ge.f32.partialorder %v5744_v9, 0.0  ;;  %v2431_v58 = vsub.f32 1.0, %v2399_v60  ;;  %v2141_v2 = vadd.f32 -0.28449672, %v2109_v43 }
 0x2b0   : > { %v2533_v39 = vadd.f32 1.0, %v2501_v34  ;;  %v2552_v36 = vadd.f32 1.0, %v2520_v50  ;;  %v2428_v19 = vsub.f32 1.0, %v2396_v14  ;;  %v2050_v42 = vmul.f32 %v5901_v13, %v2018_v28 }
 0x2b1   : > { %v2306_v0 = vmul.f32 %v2274_v41, %v5838_v10  ;;  %v2495_v25 = vsub.f32 0.0, %v2431_v58  ;;  %v2173_v38 = vmul.f32 %v5883_v8, %v2141_v2  ;;  %v2564_v7 = vmul.f32 %v2532_v26, %v6363_v11  ;;  %v6367_v2 = vld [vmem:[#allocation41_spill] sm:$0xff] }
 0x2b2   : > { %v2565_v46 = vmul.f32 %v2533_v39, %v6364_v31  ;;  %v5936_v53 = vmul.f32 %v5860_v5, %v5709_v54  ;;  %v2555_v59 = vadd.f32 1.0, %v2523_v1  ;;  %v2494_v45 = vsub.f32 0.0, %v2430_v22  ;;  %v3567_v14 = vpop.eup %3566 }
 0x2b3   : > { %v5939_v50 = vmul.f32 0.70710677, %v5926_v17  ;;  %v2521_v10 = vsel %vm2457_vm9, %v2425_v61, %v2489_v49  ;;  %v2205_v41 = vadd.f32 0.2548296, %v2173_v38  ;;  %v5945_v51 = vadd.f32 %v5636_v20, %v5717_v27 }
 0x2b4   : > { %v2596_v28 = vpack.c.bf16 %v2565_v46, %v2564_v7  ;;  %v5948_v21 = vmul.f32 %v2552_v36, %v5729_v29  ;;  %v2492_v54 = vsub.f32 0.0, %v2428_v19  ;;  %vm2461_vm13 = vcmp.ge.f32.partialorder %v5814_v48, 0.0  ;;  %v6372_v48 = vld [vmem:[#allocation44_spill] sm:$0xff] }
 0x2b5   : > { %v2368_v5 = vmul.f32 1.442695, %v2306_v0  ;;  %v5952_v1 = vand.u32 2147483647, %v5939_v50  ;;  %v2527_v40 = vsel %vm2463_vm10, %v2431_v58, %v2495_v25  ;;  %v2237_v61 = vmul.f32 %v5883_v8, %v2205_v41  ;;  %v6366_v58 = vld [vmem:[#allocation39_spill] sm:$0xff]  ;;  %v6370_v41 = vld [vmem:[#allocation42_spill] sm:$0xff] }
 0x2b6   : > { %v2082_v60 = vadd.f32 1.4214138, %v2050_v42  ;;  %3297 = vmatprep.mubr.bf16.mxu1 %v2596_v28  ;;  %v5958_v20 = vmul.f32 0.70710677, %v5945_v51  ;;  %v5961_v27 = vmul.f32 %v2555_v59, %v5757_v44  ;;  %v2553_v29 = vadd.f32 1.0, %v2521_v10  ;;  %v6368_v42 = vld [vmem:[#allocation38_spill] sm:$0xff] }
 0x2b7   : > { %v2526_v43 = vsel %vm2462_vm11, %v2430_v22, %v2494_v45  ;;  %v6365_v26 = vpack.c.bf16 %v6359_v15, %v6358_v4  ;;  %v1859_v35 = vmul.f32 0.3275911, %v5952_v1  ;;  %v2397_v34 = vmul.f32 %v3567_v14, %v2237_v61  ;;  %v6369_v4 = vld [vmem:[#allocation40_spill] sm:$0xff] }
 0x2b8   : > { %v2272_v8 = vsub.f32 0.0, %v5905_v63  ;;  %v1825_v49 = vand.u32 2147483647, %v5958_v20  ;;  %v2598_v39 = vpack.c.bf16 %v6367_v2, %v6366_v58  ;;  %v5973_v44 = vpop.eup %3568  ;;  %v2524_v52 = vsel %vm2460_vm12, %v2428_v19, %v2492_v54 }
 0x2b9   : > { %3298 = vmatmul.mubr.bf16.vlgmr.msra.gmra.mrb[0].mxu1 %v6365_v26  ;;  %v2559_v22 = vadd.f32 1.0, %v2527_v40  ;;  %v1891_v36 = vadd.f32 1.0, %v1859_v35  ;;  %v2599_v15 = vpack.c.bf16 %v6369_v4, %v6368_v42  ;;  %v2429_v0 = vsub.f32 1.0, %v2397_v34 }
 0x2ba   : > { %v2114_v25 = vmul.f32 %v5901_v13, %v2082_v60  ;;  %v1984_v38 = vmul.f32 1.0614054, %v5973_v44  ;;  %v1857_v11 = vmul.f32 0.3275911, %v1825_v49  ;;  %3301 = vmatprep.mubr.bf16.mxu1 %v2598_v39  ;;  %v5982_v7 = vmul.f32 %v2553_v29, %v5769_v12 }
 0x2bb   : > { %v2558_v31 = vadd.f32 1.0, %v2526_v43  ;;  %3570 = vrcp.f32 %v1891_v36  ;;  %v2600_v9 = vpack.c.bf16 %v5603_v55, %v5549_v23  ;;  %v2556_v19 = vadd.f32 1.0, %v2524_v52 }
 0x2bc   : > { %v2493_v46 = vsub.f32 0.0, %v2429_v0  ;;  %v2016_v59 = vadd.f32 -1.4531521, %v1984_v38  ;;  %v1889_v45 = vadd.f32 1.0, %v1857_v11  ;;  %v5987_v14 = vmul.f32 %v2559_v22, %v5842_v32 }
 0x2bd   : > { %v2304_v10 = vmul.f32 %v2272_v8, %v5905_v63  ;;  %v2601_v28 = vpack.c.bf16 %v6370_v41, %v5546_v57  ;;  %v2602_v12 = vpack.c.bf16 %v5751_v18, %v5678_v33  ;;  %v2146_v40 = vadd.f32 -0.28449672, %v2114_v25  ;;  %v6371_v63 = vld [vmem:[#allocation43_spill] sm:$0xff] }
 0x2be   : > { %v2525_v54 = vsel %vm2461_vm13, %v2429_v0, %v2493_v46  ;;  %v2048_v23 = vmul.f32 %v5973_v44, %v2016_v59  ;;  %3572 = vrcp.f32 %v1889_v45  ;;  %v5998_v55 = vmul.f32 %v2558_v31, %v5794_v24 }
 0x2bf   : > { %v2557_v32 = vadd.f32 1.0, %v2525_v54  ;;  %v2603_v61 = vpack.c.bf16 %v6371_v63, %v5675_v30  ;;  %v2604_v57 = vpack.c.bf16 %v5857_v3, %v5801_v62  ;;  %v6005_v33 = vmul.f32 %v2556_v19, %v5818_v47 }
 0x2c0   : > { %v2080_v18 = vadd.f32 1.4214138, %v2048_v23  ;;  %v2605_v60 = vpack.c.bf16 %v5806_v6, %v6372_v48  ;;  %v2606_v24 = vpack.c.bf16 %v5982_v7, %v5948_v21  ;;  %v2275_v43 = vsub.f32 0.0, %v5952_v1 }
 0x2c1   : > { %3302 = vmatmul.mubr.bf16.gmra.mrb[4].mxu1 %v2599_v15  ;;  %v6012_v29 = vmul.f32 %v2557_v32, %v5870_v56  ;;  %v2607_v30 = vpack.c.bf16 %v5961_v27, %v5936_v53  ;;  %v2609_v62 = vpack.c.bf16 %v5987_v14, %v5998_v55  ;;  %v2178_v47 = vmul.f32 %v5901_v13, %v2146_v40 }
 0x2c2   : > { %3305 = vmatprep.mubr.bf16.mxu1 %v2600_v9  ;;  %v2112_v3 = vmul.f32 %v5973_v44, %v2080_v18  ;;  %v2364_v26 = vmul.f32 1.442695, %v2304_v10  ;;  %3574 = vpow2.f32 %v2368_v5  ;;  %v2273_v56 = vsub.f32 0.0, %v1825_v49 }
 0x2c3   : > { %v2608_v6 = vpack.c.bf16 %v6012_v29, %v6005_v33  ;;  %v2307_v34 = vmul.f32 %v2275_v43, %v5952_v1  ;;  %v2210_v8 = vadd.f32 0.2548296, %v2178_v47  ;;  %vm2464_vm15 = vcmp.ge.f32.partialorder %v5896_v37, 0.0 }
 0x2c4   : > { %v2144_v21 = vadd.f32 -0.28449672, %v2112_v3  ;;  %3576 = vpow2.f32 %v2364_v26  ;;  %v2305_v22 = vmul.f32 %v2273_v56, %v1825_v49  ;;  %vm2467_vm0 = vcmp.ge.f32.partialorder %v5939_v50, 0.0 }
 0x2c5   : > { %v3571_v35 = vpop.eup %3570  ;;  %v2370_v5 = vmul.f32 1.442695, %v2307_v34  ;;  %v2242_v4 = vmul.f32 %v5901_v13, %v2210_v8  ;;  %vm2465_vm1 = vcmp.ge.f32.partialorder %v5958_v20, 0.0  ;;  %v6047_v20 = vld [vmem:[%s6375_s27] ss:$0 sm:$0xff] }
 0x2c6   : > { %v2176_v58 = vmul.f32 %v5973_v44, %v2144_v21  ;;  %v1987_v2 = vmul.f32 1.0614054, %v3571_v35  ;;  %v2366_v38 = vmul.f32 1.442695, %v2305_v22  ;;  %v1760_v22 = vmul.f32 0.5, %v5876_v16 }
 0x2c7   : > { %3578 = vpow2.f32 %v2370_v5 }
 0x2c8   : > { %v3573_v39 = vpop.eup %3572  ;;  %v2019_v52 = vadd.f32 -1.4531521, %v1987_v2  ;;  %v2208_v36 = vadd.f32 0.2548296, %v2176_v58  ;;  %3580 = vpow2.f32 %v2366_v38 }
 0x2c9   : > { %3306 = vmatmul.mubr.bf16.gmra.mrb[8].mxu1 %v2601_v28  ;;  %v1985_v42 = vmul.f32 1.0614054, %v3573_v39 }
 0x2ca   : > { %3309 = vmatprep.mubr.bf16.mxu1 %v2602_v12  ;;  %v2051_v15 = vmul.f32 %v3571_v35, %v2019_v52  ;;  %v2240_v11 = vmul.f32 %v5973_v44, %v2208_v36 }
 0x2cb   : > { %v2017_v0 = vadd.f32 -1.4531521, %v1985_v42 }
 0x2cc   : > { %v2083_v25 = vadd.f32 1.4214138, %v2051_v15  ;;  %v3575_v1 = vpop.eup %3574 }
 0x2cd   : > { %v2049_v7 = vmul.f32 %v3573_v39, %v2017_v0  ;;  %v2402_v31 = vmul.f32 %v3575_v1, %v2242_v4  ;;  %v3585_v0 = vld [vmem:[%s4266_s21 + $0x10] sm:$0xff]  ;;  %v3586_v1 = vld [vmem:[%s4266_s21] sm:$0xff] }
 0x2ce   : > { %v2115_v9 = vmul.f32 %v3571_v35, %v2083_v25  ;;  %v3577_v49 = vpop.eup %3576 }
 0x2cf   : > { %v2081_v19 = vadd.f32 1.4214138, %v2049_v7  ;;  %v2400_v59 = vmul.f32 %v3577_v49, %v2240_v11  ;;  %v2434_v13 = vsub.f32 1.0, %v2402_v31  ;;  %v3587_v31 = vld [vmem:[%s4266_s21 + $0x18] sm:$0xff] }
 0x2d0   : > { %v2147_v46 = vadd.f32 -0.28449672, %v2115_v9 }
 0x2d1   : > { %3310 = vmatmul.mubr.bf16.gmra.mrb[12].mxu1 %v2603_v61  ;;  %v2113_v45 = vmul.f32 %v3573_v39, %v2081_v19  ;;  %v2432_v12 = vsub.f32 1.0, %v2400_v59  ;;  %v2498_v40 = vsub.f32 0.0, %v2434_v13  ;;  %v3579_v23 = vpop.eup %3578  ;;  %v6373_v61 = vld [vmem:[#allocation46_spill] sm:$0xff]  ;;  %v3588_v19 = vld [vmem:[%s4266_s21 + $0x8] sm:$0xff] }
 0x2d2   : > { %3313 = vmatprep.mubr.bf16.mxu1 %v2604_v57  ;;  %v2179_v10 = vmul.f32 %v3571_v35, %v2147_v46  ;;  %vm2466_vm14 = vcmp.ge.f32.partialorder %v6373_v61, 0.0  ;;  %v3581_v57 = vpop.eup %3580 }
 0x2d3   : > { %v2145_v41 = vadd.f32 -0.28449672, %v2113_v45  ;;  %v2496_v18 = vsub.f32 0.0, %v2432_v12  ;;  %v2530_v43 = vsel %vm2466_vm14, %v2434_v13, %v2498_v40 }
 0x2d4   : > { %v2211_v28 = vadd.f32 0.2548296, %v2179_v10  ;;  %v2562_v21 = vadd.f32 1.0, %v2530_v43  ;;  %v3592_v43 = vld [vmem:[%s4266_s21 + $0x28] sm:$0xff] }
 0x2d5   : > { %v2177_v54 = vmul.f32 %v3573_v39, %v2145_v41  ;;  %v2528_v56 = vsel %vm2464_vm15, %v2432_v12, %v2496_v18 }
 0x2d6   : > { %v2243_v44 = vmul.f32 %v3571_v35, %v2211_v28 }
 0x2d7   : > { %v2209_v32 = vadd.f32 0.2548296, %v2177_v54 }
 0x2d8   : > { %v2403_v63 = vmul.f32 %v3579_v23, %v2243_v44  ;;  %v3589_v44 = vld [vmem:[%s4266_s21 + $0x30] sm:$0xff] }
 0x2d9   : > { %3314 = vmatmul.mubr.bf16.gmra.mrb[16].mxu1 %v2605_v60  ;;  %v2241_v48 = vmul.f32 %v3573_v39, %v2209_v32  ;;  %v6374_v60 = vld [vmem:[#allocation45_spill] sm:$0xff]  ;;  %v2560_v39 = vadd.f32 1.0, %v2528_v56 }
 0x2da   : > { %3317 = vmatprep.mubr.bf16.mxu1 %v2606_v24  ;;  %v2435_v47 = vsub.f32 1.0, %v2403_v63  ;;  %v1762_v8 = vmul.f32 0.5, %v6374_v60  ;;  %v1763_v24 = vmul.f32 0.5, %v5926_v17  ;;  %v1761_v17 = vmul.f32 0.5, %v5945_v51  ;;  %v6052_v51 = vld [vmem:[%s6376_s17] ss:$0 sm:$0xff] }
 0x2db   : > { %v2401_v3 = vmul.f32 %v3581_v57, %v2241_v48  ;;  %v2592_v42 = vmul.f32 %v2560_v39, %v1760_v22  ;;  %v3590_v63 = vld [vmem:[%s4266_s21 + $0x20] sm:$0xff]  ;;  %v3591_v48 = vld [vmem:[%s4266_s21 + $0x38] sm:$0xff] }
 0x2dc   : > { %v2499_v26 = vsub.f32 0.0, %v2435_v47  ;;  %v2594_v37 = vmul.f32 %v2562_v21, %v1762_v8 }
 0x2dd   : > { %v2433_v35 = vsub.f32 1.0, %v2401_v3 }
 0x2de   : > { %v2531_v34 = vsel %vm2467_vm0, %v2435_v47, %v2499_v26 }
 0x2df   : > { %v2563_v58 = vadd.f32 1.0, %v2531_v34  ;;  %v2497_v2 = vsub.f32 0.0, %v2433_v35 }
 0x2e1   : > { %3318 = vmatmul.mubr.bf16.gmra.mrb[20].mxu1 %v2607_v30  ;;  %v2595_v50 = vmul.f32 %v2563_v58, %v1763_v24  ;;  %v2529_v52 = vsel %vm2465_vm1, %v2433_v35, %v2497_v2  ;;  %v3593_v2 = vld [vmem:[%s4266_s21 + $0x50] sm:$0xff] }
 0x2e2   : > { %3321 = vmatprep.mubr.bf16.mxu1 %v2608_v6  ;;  %v2561_v36 = vadd.f32 1.0, %v2529_v52 }
 0x2e3   : > { %v2611_v5 = vpack.c.bf16 %v2595_v50, %v2594_v37  ;;  %v3594_v50 = vld [vmem:[%s4266_s21 + $0x40] sm:$0xff] }
 0x2e4   : > { %v2593_v4 = vmul.f32 %v2561_v36, %v1761_v17  ;;  %v3595_v17 = vld [vmem:[%s4266_s21 + $0x58] sm:$0xff] }
 0x2e6   : > { %v2610_v53 = vpack.c.bf16 %v2593_v4, %v2592_v42 }
 0x2e9   : > { %3322 = vmatmul.mubr.bf16.gmra.mrb[24].mxu1 %v2609_v62 }
 0x2ea   : > { %3325 = vmatprep.mubr.bf16.mxu1 %v2610_v53 }
 0x2f1   : > { %3326 = vmatmul.mubr.bf16.gmra.mrb[28].mxu1 %v2611_v5  ;;  %v3596_v5 = vld [vmem:[%s4266_s21 + $0x48] sm:$0xff] }
 0x38c   : > { %v3299_v16 = vpop.f32.mrb[0].mxu1 }
 0x38d   : > { %v2726_v27 = vadd.f32 %v3299_v16, %v6047_v20  ;;  %v2717_v14 = vpop.f32.mrb[1].mxu1 }
 0x38e   : > { %v2718_v55 = vadd.f32 %v6047_v20, %v2717_v14  ;;  %v3300_v33 = vpop.f32.mrb[2].mxu1 }
 0x38f   : > { %v2853_v29 = vmul.f32 %v6052_v51, %v2726_v27  ;;  %v2729_v30 = vadd.f32 %v3300_v33, %v6047_v20  ;;  %v2720_v62 = vpop.f32.mrb[3].mxu1 }
 0x390   : > { %v2851_v6 = vmul.f32 %v6052_v51, %v2718_v55  ;;  %v2721_v15 = vadd.f32 %v6047_v20, %v2720_v62 }
 0x391   : > { %v2885_v25 = vadd.f32 %v3585_v0, %v2853_v29  ;;  %v2854_v38 = vmul.f32 %v6052_v51, %v2729_v30 }
 0x392   : > { %v2883_v11 = vadd.f32 %v3586_v1, %v2851_v6  ;;  %v2852_v7 = vmul.f32 %v6052_v51, %v2721_v15  ;;  %v3597_v6 = vld [vmem:[%s4266_s21 + $0x70] sm:$0xff] }
 0x393   : > { %2917 = vst [vmem:[%s6066_s11 + $0x10] sm:$0xff] %v2885_v25  ;;  %v2886_v9 = vadd.f32 %v3587_v31, %v2854_v38  ;;  %v3598_v25 = vld [vmem:[%s4266_s21 + $0x60] sm:$0xff]  ;;  %v3600_v31 = vld [vmem:[%s4266_s21 + $0x68] sm:$0xff] }
 0x394   : > { %2915 = vst [vmem:[%s6066_s11] sm:$0xff] %v2883_v11  ;;  %v2884_v49 = vadd.f32 %v3588_v19, %v2852_v7  ;;  %v3303_v46 = vpop.f32.mrb[4].mxu1  ;;  %v3599_v11 = vld [vmem:[%s4266_s21 + $0x78] sm:$0xff] }
 0x395   : > { %2918 = vst [vmem:[%s6066_s11 + $0x18] sm:$0xff] %v2886_v9  ;;  %v2742_v59 = vadd.f32 %v3303_v46, %v6047_v20  ;;  %v2733_v45 = vpop.f32.mrb[5].mxu1 }
 0x396   : > { %2916 = vst [vmem:[%s6066_s11 + $0x8] sm:$0xff] %v2884_v49  ;;  %v2734_v13 = vadd.f32 %v6047_v20, %v2733_v45  ;;  %v3304_v10 = vpop.f32.mrb[6].mxu1 }
 0x397   : > { %v2857_v41 = vmul.f32 %v6052_v51, %v2742_v59  ;;  %v2745_v28 = vadd.f32 %v3304_v10, %v6047_v20  ;;  %v2736_v12 = vpop.f32.mrb[7].mxu1 }
 0x398   : > { %v2855_v54 = vmul.f32 %v6052_v51, %v2734_v13  ;;  %v2737_v40 = vadd.f32 %v6047_v20, %v2736_v12 }
 0x399   : > { %v2889_v23 = vadd.f32 %v3589_v44, %v2857_v41  ;;  %v2858_v32 = vmul.f32 %v6052_v51, %v2745_v28 }
 0x39a   : > { %v2887_v61 = vadd.f32 %v3590_v63, %v2855_v54  ;;  %v2856_v18 = vmul.f32 %v6052_v51, %v2737_v40  ;;  %v3601_v54 = vld [vmem:[%s4266_s21 + $0x90] sm:$0xff] }
 0x39b   : > { %2921 = vst [vmem:[%s6066_s11 + $0x30] sm:$0xff] %v2889_v23  ;;  %v2890_v57 = vadd.f32 %v3591_v48, %v2858_v32  ;;  %v3602_v23 = vld [vmem:[%s4266_s21 + $0x80] sm:$0xff]  ;;  %v3604_v48 = vld [vmem:[%s4266_s21 + $0x88] sm:$0xff] }
 0x39c   : > { %2919 = vst [vmem:[%s6066_s11 + $0x20] sm:$0xff] %v2887_v61  ;;  %v2888_v47 = vadd.f32 %v3592_v43, %v2856_v18  ;;  %v3307_v3 = vpop.f32.mrb[8].mxu1  ;;  %v3603_v61 = vld [vmem:[%s4266_s21 + $0x98] sm:$0xff] }
 0x39d   : > { %2922 = vst [vmem:[%s6066_s11 + $0x38] sm:$0xff] %v2890_v57  ;;  %v2758_v26 = vadd.f32 %v3307_v3, %v6047_v20  ;;  %v2749_v21 = vpop.f32.mrb[9].mxu1 }
 0x39e   : > { %2920 = vst [vmem:[%s6066_s11 + $0x28] sm:$0xff] %v2888_v47  ;;  %v2750_v56 = vadd.f32 %v6047_v20, %v2749_v21  ;;  %v3308_v35 = vpop.f32.mrb[10].mxu1 }
 0x39f   : > { %v2861_v34 = vmul.f32 %v6052_v51, %v2758_v26  ;;  %v2761_v60 = vadd.f32 %v3308_v35, %v6047_v20  ;;  %v2752_v8 = vpop.f32.mrb[11].mxu1 }
 0x3a0   : > { %v2859_v24 = vmul.f32 %v6052_v51, %v2750_v56  ;;  %v2753_v58 = vadd.f32 %v6047_v20, %v2752_v8 }
 0x3a1   : > { %v2893_v39 = vadd.f32 %v3593_v2, %v2861_v34  ;;  %v2862_v37 = vmul.f32 %v6052_v51, %v2761_v60 }
 0x3a2   : > { %v2891_v52 = vadd.f32 %v3594_v50, %v2859_v24  ;;  %v2860_v22 = vmul.f32 %v6052_v51, %v2753_v58  ;;  %v3605_v24 = vld [vmem:[%s4266_s21 + $0xb0] sm:$0xff] }
 0x3a3   : > { %2925 = vst [vmem:[%s6066_s11 + $0x50] sm:$0xff] %v2893_v39  ;;  %v2894_v36 = vadd.f32 %v3595_v17, %v2862_v37  ;;  %v3606_v39 = vld [vmem:[%s4266_s21 + $0xa0] sm:$0xff]  ;;  %v3608_v17 = vld [vmem:[%s4266_s21 + $0xa8] sm:$0xff] }
 0x3a4   : > { %2923 = vst [vmem:[%s6066_s11 + $0x40] sm:$0xff] %v2891_v52  ;;  %v2892_v42 = vadd.f32 %v3596_v5, %v2860_v22  ;;  %v3311_v4 = vpop.f32.mrb[12].mxu1  ;;  %v3607_v52 = vld [vmem:[%s4266_s21 + $0xb8] sm:$0xff] }
 0x3a5   : > { %2926 = vst [vmem:[%s6066_s11 + $0x58] sm:$0xff] %v2894_v36  ;;  %v2774_v53 = vadd.f32 %v3311_v4, %v6047_v20  ;;  %v2765_v16 = vpop.f32.mrb[13].mxu1 }
 0x3a6   : > { %2924 = vst [vmem:[%s6066_s11 + $0x48] sm:$0xff] %v2892_v42  ;;  %v2766_v27 = vadd.f32 %v6047_v20, %v2765_v16  ;;  %v3312_v14 = vpop.f32.mrb[14].mxu1 }
 0x3a7   : > { %v2865_v55 = vmul.f32 %v6052_v51, %v2774_v53  ;;  %v2777_v33 = vadd.f32 %v3312_v14, %v6047_v20  ;;  %v2768_v29 = vpop.f32.mrb[15].mxu1 }
 0x3a8   : > { %v2863_v30 = vmul.f32 %v6052_v51, %v2766_v27  ;;  %v2769_v62 = vadd.f32 %v6047_v20, %v2768_v29 }
 0x3a9   : > { %v2897_v15 = vadd.f32 %v3597_v6, %v2865_v55  ;;  %v2866_v0 = vmul.f32 %v6052_v51, %v2777_v33 }
 0x3aa   : > { %v2895_v38 = vadd.f32 %v3598_v25, %v2863_v30  ;;  %v2864_v1 = vmul.f32 %v6052_v51, %v2769_v62  ;;  %v3609_v30 = vld [vmem:[%s4266_s21 + $0xd0] sm:$0xff] }
 0x3ab   : > { %2929 = vst [vmem:[%s6066_s11 + $0x70] sm:$0xff] %v2897_v15  ;;  %v2898_v7 = vadd.f32 %v3599_v11, %v2866_v0  ;;  %v3610_v15 = vld [vmem:[%s4266_s21 + $0xc0] sm:$0xff]  ;;  %v3612_v11 = vld [vmem:[%s4266_s21 + $0xc8] sm:$0xff] }
 0x3ac   : > { %2927 = vst [vmem:[%s6066_s11 + $0x60] sm:$0xff] %v2895_v38  ;;  %v2896_v9 = vadd.f32 %v3600_v31, %v2864_v1  ;;  %v3315_v19 = vpop.f32.mrb[16].mxu1  ;;  %v3611_v38 = vld [vmem:[%s4266_s21 + $0xd8] sm:$0xff] }
 0x3ad   : > { %2930 = vst [vmem:[%s6066_s11 + $0x78] sm:$0xff] %v2898_v7  ;;  %v2790_v49 = vadd.f32 %v3315_v19, %v6047_v20  ;;  %v2781_v46 = vpop.f32.mrb[17].mxu1 }
 0x3ae   : > { %2928 = vst [vmem:[%s6066_s11 + $0x68] sm:$0xff] %v2896_v9  ;;  %v2782_v59 = vadd.f32 %v6047_v20, %v2781_v46  ;;  %v3316_v45 = vpop.f32.mrb[18].mxu1 }
 0x3af   : > { %v2869_v13 = vmul.f32 %v6052_v51, %v2790_v49  ;;  %v2793_v10 = vadd.f32 %v3316_v45, %v6047_v20  ;;  %v2784_v41 = vpop.f32.mrb[19].mxu1 }
 0x3b0   : > { %v2867_v28 = vmul.f32 %v6052_v51, %v2782_v59  ;;  %v2785_v12 = vadd.f32 %v6047_v20, %v2784_v41 }
 0x3b1   : > { %v2901_v40 = vadd.f32 %v3601_v54, %v2869_v13  ;;  %v2870_v44 = vmul.f32 %v6052_v51, %v2793_v10 }
 0x3b2   : > { %v2899_v32 = vadd.f32 %v3602_v23, %v2867_v28  ;;  %v2868_v63 = vmul.f32 %v6052_v51, %v2785_v12  ;;  %v3613_v28 = vld [vmem:[%s4266_s21 + $0xf0] sm:$0xff] }
 0x3b3   : > { %2933 = vst [vmem:[%s6066_s11 + $0x90] sm:$0xff] %v2901_v40  ;;  %v2902_v18 = vadd.f32 %v3603_v61, %v2870_v44  ;;  %v3614_v40 = vld [vmem:[%s4266_s21 + $0xe0] sm:$0xff] }
 0x3b4   : > { %2931 = vst [vmem:[%s6066_s11 + $0x80] sm:$0xff] %v2899_v32  ;;  %v2900_v57 = vadd.f32 %v3604_v48, %v2868_v63  ;;  %v3319_v43 = vpop.f32.mrb[20].mxu1  ;;  %v3615_v32 = vld [vmem:[%s4266_s21 + $0xf8] sm:$0xff] }
 0x3b5   : > { %2934 = vst [vmem:[%s6066_s11 + $0x98] sm:$0xff] %v2902_v18  ;;  %v2806_v47 = vadd.f32 %v3319_v43, %v6047_v20  ;;  %v2797_v3 = vpop.f32.mrb[21].mxu1 }
 0x3b6   : > { %2932 = vst [vmem:[%s6066_s11 + $0x88] sm:$0xff] %v2900_v57  ;;  %v2798_v26 = vadd.f32 %v6047_v20, %v2797_v3  ;;  %v3320_v21 = vpop.f32.mrb[22].mxu1 }
 0x3b7   : > { %v2873_v56 = vmul.f32 %v6052_v51, %v2806_v47  ;;  %v2809_v35 = vadd.f32 %v3320_v21, %v6047_v20  ;;  %v2800_v34 = vpop.f32.mrb[23].mxu1 }
 0x3b8   : > { %v2871_v60 = vmul.f32 %v6052_v51, %v2798_v26  ;;  %v2801_v8 = vadd.f32 %v6047_v20, %v2800_v34 }
 0x3b9   : > { %v2905_v58 = vadd.f32 %v3605_v24, %v2873_v56  ;;  %v2874_v2 = vmul.f32 %v6052_v51, %v2809_v35 }
 0x3ba   : > { %v2903_v37 = vadd.f32 %v3606_v39, %v2871_v60  ;;  %v2872_v50 = vmul.f32 %v6052_v51, %v2801_v8 }
 0x3bb   : > { %2937 = vst [vmem:[%s6066_s11 + $0xb0] sm:$0xff] %v2905_v58  ;;  %v2906_v22 = vadd.f32 %v3607_v52, %v2874_v2 }
 0x3bc   : > { %2935 = vst [vmem:[%s6066_s11 + $0xa0] sm:$0xff] %v2903_v37  ;;  %v2904_v36 = vadd.f32 %v3608_v17, %v2872_v50  ;;  %v3323_v5 = vpop.f32.mrb[24].mxu1 }
 0x3bd   : > { %2938 = vst [vmem:[%s6066_s11 + $0xb8] sm:$0xff] %v2906_v22  ;;  %v2822_v42 = vadd.f32 %v3323_v5, %v6047_v20  ;;  %v2813_v4 = vpop.f32.mrb[25].mxu1 }
 0x3be   : > { %2936 = vst [vmem:[%s6066_s11 + $0xa8] sm:$0xff] %v2904_v36  ;;  %v2814_v53 = vadd.f32 %v6047_v20, %v2813_v4  ;;  %v3324_v16 = vpop.f32.mrb[26].mxu1 }
 0x3bf   : > { %v2877_v27 = vmul.f32 %v6052_v51, %v2822_v42  ;;  %v2825_v14 = vadd.f32 %v3324_v16, %v6047_v20  ;;  %v2816_v55 = vpop.f32.mrb[27].mxu1 }
 0x3c0   : > { %v2875_v33 = vmul.f32 %v6052_v51, %v2814_v53  ;;  %v2817_v29 = vadd.f32 %v6047_v20, %v2816_v55 }
 0x3c1   : > { %v2909_v62 = vadd.f32 %v3609_v30, %v2877_v27  ;;  %v2878_v6 = vmul.f32 %v6052_v51, %v2825_v14 }
 0x3c2   : > { %v2907_v0 = vadd.f32 %v3610_v15, %v2875_v33  ;;  %v2876_v25 = vmul.f32 %v6052_v51, %v2817_v29 }
 0x3c3   : > { %2941 = vst [vmem:[%s6066_s11 + $0xd0] sm:$0xff] %v2909_v62  ;;  %v2910_v1 = vadd.f32 %v3611_v38, %v2878_v6 }
 0x3c4   : > { %2939 = vst [vmem:[%s6066_s11 + $0xc0] sm:$0xff] %v2907_v0  ;;  %v2908_v7 = vadd.f32 %v3612_v11, %v2876_v25  ;;  %v3327_v31 = vpop.f32.mrb[28].mxu1 }
 0x3c5   : > { %2942 = vst [vmem:[%s6066_s11 + $0xd8] sm:$0xff] %v2910_v1  ;;  %v2838_v9 = vadd.f32 %v3327_v31, %v6047_v20  ;;  %v2829_v19 = vpop.f32.mrb[29].mxu1 }
 0x3c6   : > { %2940 = vst [vmem:[%s6066_s11 + $0xc8] sm:$0xff] %v2908_v7  ;;  %v2830_v49 = vadd.f32 %v6047_v20, %v2829_v19  ;;  %v3328_v46 = vpop.f32.mrb[30].mxu1 }
 0x3c7   : > { %v2881_v59 = vmul.f32 %v6052_v51, %v2838_v9  ;;  %v2841_v45 = vadd.f32 %v3328_v46, %v6047_v20  ;;  %v2832_v13 = vpop.f32.mrb[31].mxu1 }
 0x3c8   : > { %v2879_v10 = vmul.f32 %v6052_v51, %v2830_v49  ;;  %v2833_v41 = vadd.f32 %v6047_v20, %v2832_v13  ;;  %v3616_v20 = vld [vmem:[%s4266_s21 + $0xe8] sm:$0xff] }
 0x3c9   : > { %v2913_v12 = vadd.f32 %v3613_v28, %v2881_v59  ;;  %v2882_v54 = vmul.f32 %v6052_v51, %v2841_v45 }
 0x3ca   : > { %v2911_v44 = vadd.f32 %v3614_v40, %v2879_v10  ;;  %v2880_v23 = vmul.f32 %v6052_v51, %v2833_v41 }
 0x3cb   : > { %2945 = vst [vmem:[%s6066_s11 + $0xf0] sm:$0xff] %v2913_v12  ;;  %v2914_v63 = vadd.f32 %v3615_v32, %v2882_v54 }
 0x3cc   : > { %2943 = vst [vmem:[%s6066_s11 + $0xe0] sm:$0xff] %v2911_v44  ;;  %v2912_v61 = vadd.f32 %v3616_v20, %v2880_v23 }
 0x3cd   : > { %2946 = vst [vmem:[%s6066_s11 + $0xf8] sm:$0xff] %v2914_v63 }
 0x3ce   : > { %2944 = vst [vmem:[%s6066_s11 + $0xe8] sm:$0xff] %v2912_v61 }
 0x3cf   : > { %3804 = shalt.err (!%p3801_p6)
}
 0x3d0   : > { %s3805_s21 = scalar_lea.hbm %s6187_s22, 4096  ;;  %s3809_s28 = scalar_lea.hbm %s6379_s29, 8192 }
 0x3d1   : > { %p3806_p7 = scmp.ne.s32.totalorder %s6187_s22, %s3805_s21  ;;  %p3810_p4 = scmp.lt.u32.totalorder %s6187_s22, %s6379_s29 }
 0x3d2   : > { %p3811_p12 = scmp.lt.u32.totalorder %s3809_s28, %s3805_s21  ;;  %p3813_p11 = scmp.lt.u32.totalorder %s3805_s21, %s6187_s22 }
 0x3d3   : > { %p3807_p9 = pnand %p3806_p7, %p6380_p10 }
 0x3d4   : > { %p3812_p2 = por %p3811_p12, %p3810_p4 }
 0x3d5   : > { %p3808_p8 = pneg %p3807_p9 }
 0x3d6   : > { %p3814_p1 = por %p3813_p11, %p3812_p2 }
 0x3d8   : > { %p3815_p0 = pnand %p3814_p1, %p3808_p8 }
 0x3da   : > { %3818 = shalt.err (!%p3815_p0)
}
 0x3db   : > { %s3898_s23 = smov 128   ;;  %s3899_s9 = smov 8  }
 0x3dc   : > { %3347 = dma.vmem_to_hbm [thread:$0]  (%p6380_p10), %s6189_s16, 4096, %s6187_s22, %s2948_s4, %s3898_s23, %s3898_s23, %s3899_s9  }
 0x3dd PF: > { %s6381_s17 = sld [smem:[#allocation19_spill]]  ;;  %s6382_s11 = sld [smem:[#allocation26_spill]] }
 0x3de   : > { %s6383_s6 = sld [smem:[#allocation23_spill]] }
 0x3e3   : > { %s2979_s8 = sand.u32 1, %s6381_s17   ;;  %p6384_p13 = scmp.ne.s32.totalorder %s6382_s11, 0 }
 0x3e4   : > { %p6385_p5 = scmp.ge.s32.totalorder %s6383_s6, 2  ;;  %s2980_s25 = scalar_lea.sflag [#allocation4], %s2979_s8 }
 0x3e6   : > { %p3370_p3 = pnand %p6385_p5, %p6384_p13 }
 0x3e8   : > { %3860 = dma.done.wait (!%p3370_p3), %s2980_s25, 4096  }
 0x3e9   : > { %3862 = vsyncadd (!%p3370_p3), %s2980_s25, 4294963200  ;;  %s31_s18 = sadd.s32 1, %s6383_s6   ;;  %s6386_s30 = sld [smem:[#allocation20_spill]] }
 0x3ea   : > { %p28_p6 = scmp.ge.s32.totalorder %s31_s18, 4   ;;  %s6387_s15 = sld [smem:[#allocation28_spill]] }
 0x3eb   : > { %s6388_s16 = sld [smem:[#allocation22_spill]]  ;;  %s6389_s17 = sld [smem:[#allocation27_spill]] }
 0x3ec   : > { %s6390_s13 = smov %s3869_s14  ;;  %30 = sbr.rel (!%p28_p6) target bundleno = 18 (0x12), region = 141 }
 0x3ef   : > { %s6391_s14 = smov %s6386_s30 }
 0x3f3   :  { %2985 = vsyncpa [#allocation3], 1 }
 0x3f4   :  { %2987 = vsyncpa [#allocation3 + $0x1], 1 }
 0x3f5   :  { %2988 = vsyncpa [#allocation6], 1 }
 0x3f6   :  { %2990 = vsyncpa [#allocation6 + $0x1], 1 }
 0x3f7   :  { %2991 = vsyncpa [#allocation9], 1 }
 0x3f8   :  { %2992 = vsyncpa [#allocation12], 1 }
 0x3f9   :  { %2993 = vsyncpa [#allocation4], 1 }
 0x3fa   :  { %2995 = vsyncpa [#allocation4 + $0x1], 1 }

</bundles_post_ra>
